<compile_context>
chip_gen: v7x
topology: tpu7x:2x2x1
jax: 0.10.0
libtpu: 0.0.40
codegen_flags: <defaults>
</compile_context>

<pallas_src>
import functools

import jax
import jax.numpy as jnp
from jax.experimental import pallas as pl
from jax.experimental.pallas import tpu as pltpu

BN_EPS = 1e-5


# --------------------------- fused Pallas kernels ----------------------------

def _trunk_logits(x_ref, w3_ref, b1_ref, w1_ref, b2_ref, wc_ref, bc_ref, win_ref,
                  W, TH):
    """Shared trunk.  Returns logits (TH*W, C) in f32.

    x_ref block : (1, 1, (TH+4)*W, Cin) bf16  -- row slab with 2 halo rows each side
    win_ref     : VMEM scratch (TH*W, 9*Cin) bf16 (the im2col window buffer)
    """
    Cin = x_ref.shape[3]
    M = TH * W
    xt = x_ref[0, 0]                                        # ((TH+4)*W, Cin) bf16

    col = jax.lax.broadcasted_iota(jnp.int32, (M, 1), 0) % W
    left_ok = col > 0                                       # valid for dw = -1
    right_ok = col < (W - 1)                                # valid for dw = +1

    # Build the 9 taps as static slices of the halo'd slab (vertical halo rows
    # realize the conv zero-padding; only the two horizontal masks remain).
    j = 0
    for dh in (-1, 0, 1):
        for dw in (-1, 0, 1):
            off = (dh + 2) * W + dw                         # always in-bounds
            tap = xt[off:off + M]                           # (M, Cin) bf16
            if dw == -1:
                tap = jnp.where(left_ok, tap, 0)
            elif dw == 1:
                tap = jnp.where(right_ok, tap, 0)
            win_ref[:, j * Cin:(j + 1) * Cin] = tap
            j += 1

    # grouped 3x3 conv (block-diag dense weight, BN1 folded): one K = 9*Cin matmul,
    # spatial dim streams through the MXU, the small weight is stationary.
    y = jnp.dot(win_ref[...], w3_ref[...], preferred_element_type=jnp.float32)
    y = jnp.maximum(y + b1_ref[...], 0.0)                   # (M, Ch) f32
    # 1x1 conv (BN2 folded) + ReLU
    h = jnp.dot(y.astype(jnp.bfloat16), w1_ref[...], preferred_element_type=jnp.float32)
    h = jnp.maximum(h + b2_ref[...], 0.0)                   # (M, Ch) f32
    # classifier 1x1 conv + bias
    return jnp.dot(h.astype(jnp.bfloat16), wc_ref[...],
                   preferred_element_type=jnp.float32) + bc_ref[...]   # (M, C) f32


def _probs_kernel(x_ref, w3_ref, b1_ref, w1_ref, b2_ref, wc_ref, bc_ref,
                  o_ref, win_ref, *, W, TH):
    logits = _trunk_logits(x_ref, w3_ref, b1_ref, w1_ref, b2_ref, wc_ref, bc_ref,
                           win_ref, W, TH)
    o_ref[0, 0] = jax.nn.sigmoid(logits)                    # (TH*W, C)


def _loss_kernel(x_ref, w3_ref, b1_ref, w1_ref, b2_ref, wc_ref, bc_ref, tgt_ref,
                 o_ref, win_ref, *, W, TH, gamma, int_targets):
    logits = _trunk_logits(x_ref, w3_ref, b1_ref, w1_ref, b2_ref, wc_ref, bc_ref,
                           win_ref, W, TH)
    M, C = logits.shape

    if int_targets:
        cls = jax.lax.broadcasted_iota(jnp.int32, (M, C), 1)
        t = (cls == tgt_ref[0, 0]).astype(jnp.float32)      # one-hot, (M, C)
    else:
        t = tgt_ref[0, 0].astype(jnp.float32)               # dense targets, (M, C)

    # Shared-transcendental sigmoid + BCE:  e = exp(-|x|) reused for both.
    ax = jnp.abs(logits)
    e = jnp.exp(-ax)
    r = pl.reciprocal(1.0 + e, approx=True)
    p = jnp.where(logits >= 0, r, e * r)                    # sigmoid(logits)
    # log(1+e) (vs log1p: underflow difference < 6e-8, negligible at our tolerance)
    ce = jnp.maximum(logits, 0.0) - logits * t + jnp.log(1.0 + e)

    p_t = jnp.clip(p * t + (1.0 - p) * (1.0 - t), 1e-7, 1.0 - 1e-7)
    om = 1.0 - p_t
    if gamma == 2.0:
        fw = om * om                                        # fast path, stays on VPU
    elif float(gamma).is_integer():
        fw = om ** int(gamma)
    else:
        fw = jnp.power(om, gamma)
    focal = jnp.maximum(jnp.maximum(fw, 1e-7) * ce, 0.0)
    pc = jnp.clip(p, 1e-6, 1.0 - 1e-6)

    focal_sum = jnp.sum(focal, axis=0, keepdims=True)       # (1, C)
    inter = jnp.sum(pc * t, axis=0, keepdims=True)
    psum = jnp.sum(pc, axis=0, keepdims=True)
    tsum = jnp.sum(t, axis=0, keepdims=True)

    row = jax.lax.broadcasted_iota(jnp.int32, (8, C), 0)
    o_ref[0, 0] = (jnp.where(row == 0, focal_sum, 0.0) +
                   jnp.where(row == 1, inter, 0.0) +
                   jnp.where(row == 2, psum, 0.0) +
                   jnp.where(row == 3, tsum, 0.0))


# --------------------------- parameter setup (glue) --------------------------

def init_params(key, in_channels=32, hidden_channels=32, num_classes=6, groups=8,
                class_weights=(0.75, 0.5, 5.0, 5.0, 2.0, 1.0),
                focal_gamma=2.0, dice_weight=0.5, dice_smooth=1.0):
    assert in_channels % groups == 0 and hidden_channels % groups == 0
    assert len(class_weights) == num_classes
    cin_g = in_channels // groups
    cout_g = hidden_channels // groups
    k = jax.random.split(key, 4)

    b3 = 1.0 / (cin_g ** 0.5)
    w3_t = jax.random.uniform(k[0], (hidden_channels, cin_g, 3, 3), jnp.float32, -b3, b3)
    b1x1 = 1.0 / (hidden_channels ** 0.5)
    w1_t = jax.random.uniform(k[1], (hidden_channels, hidden_channels, 1, 1),
                              jnp.float32, -b1x1, b1x1)
    wc_t = jax.random.uniform(k[2], (num_classes, hidden_channels, 1, 1),
                              jnp.float32, -b1x1, b1x1)
    bc = jax.random.uniform(k[3], (num_classes,), jnp.float32, -b1x1, b1x1)

    # BatchNorm (eval mode): gamma=1, beta=0, running_mean=0, running_var=1
    def bn_fold(c):
        gamma = jnp.ones((c,), jnp.float32)
        beta = jnp.zeros((c,), jnp.float32)
        mean = jnp.zeros((c,), jnp.float32)
        var = jnp.ones((c,), jnp.float32)
        s = gamma / jnp.sqrt(var + BN_EPS)
        return s, beta - mean * s

    s1, bb1 = bn_fold(hidden_channels)
    s2, bb2 = bn_fold(hidden_channels)

    # grouped 3x3 weight -> dense block-diagonal (Cout, Cin, 3, 3), fold BN1 scale,
    # then lay out as (9*Cin, Ch) with row order (kh, kw, cin) matching the
    # in-kernel tap order, columns = output channels (stationary MXU operand).
    wg = w3_t.reshape(groups, cout_g, cin_g, 3, 3)
    dense = jnp.zeros((groups, cout_g, groups, cin_g, 3, 3), jnp.float32)
    gidx = jnp.arange(groups)
    dense = dense.at[gidx, :, gidx].set(wg)
    dense = dense.reshape(hidden_channels, in_channels, 3, 3)
    dense = dense * s1[:, None, None, None]
    w3k = jnp.transpose(dense, (2, 3, 1, 0)).reshape(9 * in_channels, hidden_channels)

    w1k = (w1_t[:, :, 0, 0] * s2[:, None]).T               # (Ch_in, Ch_out), BN2 folded
    wck = wc_t[:, :, 0, 0].T                                # (Ch, C)

    return dict(
        groups=groups,
        # torch-layout weights + BN params (pure-JAX reference path)
        w3_torch=w3_t, w1_torch=w1_t, wc_torch=wc_t, bc_torch=bc,
        s1=s1, bb1=bb1, s2=s2, bb2=bb2,
        # kernel-layout parameters (bf16 MXU operands, f32 biases)
        w3k=w3k.astype(jnp.bfloat16), b1k=bb1.reshape(1, -1),
        w1k=w1k.astype(jnp.bfloat16), b2k=bb2.reshape(1, -1),
        wck=wck.astype(jnp.bfloat16), bck=bc.reshape(1, -1),
        class_weights=jnp.asarray(class_weights, jnp.float32),
        focal_gamma=float(focal_gamma), dice_weight=float(dice_weight),
        dice_smooth=float(dice_smooth),
    )


# --------------------------- forward wrappers --------------------------------

def _pick_tile_rows(H, W, max_px):
    th = max(1, min(H, max(1, max_px // W)))
    while H % th:
        th -= 1
    return th


def _prep_tiles(x_nchw, TH):
    """NCHW f32 -> overlapping bf16 row slabs (B, n_t, (TH+4)*W, Cin)."""
    B, Cin, H, W = x_nchw.shape
    n_t = H // TH
    x_bf = jnp.transpose(x_nchw.astype(jnp.bfloat16), (0, 2, 3, 1))      # (B,H,W,Cin)
    xp = jnp.pad(x_bf, ((0, 0), (2, 2), (0, 0), (0, 0)))                 # zero halo rows
    rows = jnp.arange(n_t)[:, None] * TH + jnp.arange(TH + 4)[None, :]   # (n_t, TH+4)
    tiles = xp[:, rows]                                                  # (B,n_t,TH+4,W,Cin)
    return tiles.reshape(B, n_t, (TH + 4) * W, Cin), n_t


def _trunk_specs(Cin, Ch, C, TH, W):
    Mh = (TH + 4) * W
    return [
        pl.BlockSpec((1, 1, Mh, Cin), lambda b, t: (b, t, 0, 0)),  # x row slab
        pl.BlockSpec((9 * Cin, Ch), lambda b, t: (0, 0)),          # conv3x3 weight
        pl.BlockSpec((1, Ch), lambda b, t: (0, 0)),                # BN1 bias
        pl.BlockSpec((Ch, Ch), lambda b, t: (0, 0)),               # 1x1 weight
        pl.BlockSpec((1, Ch), lambda b, t: (0, 0)),                # BN2 bias
        pl.BlockSpec((Ch, C), lambda b, t: (0, 0)),                # classifier weight
        pl.BlockSpec((1, C), lambda b, t: (0, 0)),                 # classifier bias
    ]


_COMPILER_PARAMS = pltpu.CompilerParams(
    dimension_semantics=("parallel", "parallel"),
    vmem_limit_bytes=32 * 1024 * 1024,
)


def _head_probs(x_nchw, params, max_tile_px):
    B, Cin, H, W = x_nchw.shape
    Ch = params['w1k'].shape[0]
    C = params['wck'].shape[1]
    TH = _pick_tile_rows(H, W, max_tile_px)
    M = TH * W
    tiles, n_t = _prep_tiles(x_nchw, TH)

    out = pl.pallas_call(
        functools.partial(_probs_kernel, W=W, TH=TH),
        out_shape=jax.ShapeDtypeStruct((B, n_t, M, C), jnp.float32),
        grid=(B, n_t),
        in_specs=_trunk_specs(Cin, Ch, C, TH, W),
        out_specs=pl.BlockSpec((1, 1, M, C), lambda b, t: (b, t, 0, 0)),
        scratch_shapes=[pltpu.VMEM((M, 9 * Cin), jnp.bfloat16)],
        compiler_params=_COMPILER_PARAMS,
    )(tiles, params['w3k'], params['b1k'], params['w1k'], params['b2k'],
      params['wck'], params['bck'])

    out = out.reshape(B, H, W, C)                          # free reshape (row tiles contiguous)
    return jnp.transpose(out, (0, 3, 1, 2))                # NCHW to match the reference


def _head_loss_stats(x_nchw, params, tgt, *, int_targets, max_tile_px):
    B, Cin, H, W = x_nchw.shape
    Ch = params['w1k'].shape[0]
    C = params['wck'].shape[1]
    TH = _pick_tile_rows(H, W, max_tile_px)
    M = TH * W
    tiles, n_t = _prep_tiles(x_nchw, TH)

    if int_targets:
        tgt_in = tgt.astype(jnp.int32).reshape(B, n_t, M, 1)
        tgt_spec = pl.BlockSpec((1, 1, M, 1), lambda b, t: (b, t, 0, 0))
    else:
        tgt_in = jnp.transpose(tgt.astype(jnp.float32), (0, 2, 3, 1)).reshape(B, n_t, M, C)
        tgt_spec = pl.BlockSpec((1, 1, M, C), lambda b, t: (b, t, 0, 0))

    kern = functools.partial(_loss_kernel, W=W, TH=TH,
                             gamma=float(params['focal_gamma']),
                             int_targets=int_targets)

    stats = pl.pallas_call(
        kern,
        out_shape=jax.ShapeDtypeStruct((B, n_t, 8, C), jnp.float32),
        grid=(B, n_t),
        in_specs=_trunk_specs(Cin, Ch, C, TH, W) + [tgt_spec],
        out_specs=pl.BlockSpec((1, 1, 8, C), lambda b, t: (b, t, 0, 0)),
        scratch_shapes=[pltpu.VMEM((M, 9 * Cin), jnp.bfloat16)],
        compiler_params=_COMPILER_PARAMS,
    )(tiles, params['w3k'], params['b1k'], params['w1k'], params['b2k'],
      params['wck'], params['bck'], tgt_in)
    return jnp.sum(stats, axis=1)                          # (B, 8, C): per-image sums


def bev_segmentation_head(x_nchw, params, targets=None, *, max_tile_px=4096):
    """Matches BEVSegmentationHead.forward (eval mode)."""
    if targets is None:
        return _head_probs(x_nchw, params, max_tile_px)

    B, _, H, W = x_nchw.shape
    C = params['wck'].shape[1]
    if targets.ndim == 3 or (targets.ndim == 4 and targets.shape[1] == 1):
        tgt = targets if targets.ndim == 3 else targets[:, 0]
        st = _head_loss_stats(x_nchw, params, tgt, int_targets=True,
                              max_tile_px=max_tile_px)
    else:
        st = _head_loss_stats(x_nchw, params, targets, int_targets=False,
                              max_tile_px=max_tile_px)

    w = params['class_weights']                            # (C,)
    focal_sum, inter, psum, tsum = st[:, 0], st[:, 1], st[:, 2], st[:, 3]

    n_elem = float(B * C * H * W)
    focal_loss = jnp.maximum(jnp.sum(focal_sum * w[None, :]) / n_elem, 0.0)
    smooth = params['dice_smooth']
    dice = (2.0 * inter + smooth) / (psum + tsum + smooth)
    dice_loss = jnp.mean((1.0 - dice) * w[None, :])
    dwt = params['dice_weight']
    total = (1.0 - dwt) * focal_loss + dwt * dice_loss
    return {'focal_loss': focal_loss, 'dice_loss': dice_loss, 'total_loss': total}


# --------------------------- pure-JAX reference ------------------------------

def _reference_forward(x_nchw, params, targets=None):
    x = x_nchw.astype(jnp.float32)
    y = jax.lax.conv_general_dilated(
        x, params['w3_torch'], (1, 1), ((1, 1), (1, 1)),
        feature_group_count=params['groups'],
        dimension_numbers=('NCHW', 'OIHW', 'NCHW'))
    y = jnp.maximum(y * params['s1'].reshape(1, -1, 1, 1)
                    + params['bb1'].reshape(1, -1, 1, 1), 0.0)
    z = jnp.einsum('bchw,dc->bdhw', y, params['w1_torch'][:, :, 0, 0])
    z = jnp.maximum(z * params['s2'].reshape(1, -1, 1, 1)
                    + params['bb2'].reshape(1, -1, 1, 1), 0.0)
    logits = jnp.einsum('bchw,dc->bdhw', z, params['wc_torch'][:, :, 0, 0]) \
        + params['bc_torch'].reshape(1, -1, 1, 1)
    if targets is None:
        return jax.nn.sigmoid(logits)

    B, C, H, W = logits.shape
    if targets.ndim == 3:
        onehot = jnp.transpose(
            jax.nn.one_hot(targets.astype(jnp.int32), C, dtype=jnp.float32),
            (0, 3, 1, 2))
    else:
        onehot = targets.astype(jnp.float32)
    p = jax.nn.sigmoid(logits)
    ce = jnp.maximum(logits, 0.0) - logits * onehot + jnp.log1p(jnp.exp(-jnp.abs(logits)))
    p_t = jnp.clip(p * onehot + (1 - p) * (1 - onehot), 1e-7, 1 - 1e-7)
    focal = jnp.maximum(jnp.maximum((1 - p_t) ** params['focal_gamma'], 1e-7) * ce, 0.0)
    wb = params['class_weights'].reshape(1, -1, 1, 1)
    focal_loss = jnp.maximum(jnp.mean(focal * wb), 0.0)
    pc = jnp.clip(p, 1e-6, 1 - 1e-6)
    pr = pc.reshape(B, C, -1)
    tr = onehot.reshape(B, C, -1)
    inter = (pr * tr).sum(-1)
    card = pr.sum(-1) + tr.sum(-1)
    dice = (2.0 * inter + params['dice_smooth']) / (card + params['dice_smooth'])
    dice_loss = jnp.mean((1.0 - dice) * params['class_weights'][None, :])
    dwt = params['dice_weight']
    total = (1.0 - dwt) * focal_loss + dwt * dice_loss
    return {'focal_loss': focal_loss, 'dice_loss': dice_loss, 'total_loss': total}


# --------------------------- demo ---------------------------------------------

if __name__ == "__main__":
    key = jax.random.PRNGKey(0)
    kx, kt, kp = jax.random.split(key, 3)

    B, Cin, H, W = 2, 32, 16, 16
    hidden, num_classes, groups = 32, 6, 8

    params = init_params(kp, Cin, hidden, num_classes, groups)
    x = jax.random.normal(kx, (B, Cin, H, W), jnp.float32)
    tgt = jax.random.randint(kt, (B, H, W), 0, num_classes)
    onehot = jnp.transpose(jax.nn.one_hot(tgt, num_classes, dtype=jnp.float32),
                           (0, 3, 1, 2))

    ref_probs = _reference_forward(x, params)
    ref_losses = _reference_forward(x, params, targets=tgt)

    # Exercise both the single-tile and the multi-row-tile (halo) paths.
    for tile_px in (4096, 128):
        probs = jax.block_until_ready(
            bev_segmentation_head(x, params, max_tile_px=tile_px))
        assert probs.shape == (B, num_classes, H, W)
        assert bool(jnp.allclose(probs, ref_probs, atol=2e-2, rtol=2e-2))

        losses = bev_segmentation_head(x, params, targets=tgt, max_tile_px=tile_px)
        losses = {k: jax.block_until_ready(v) for k, v in losses.items()}
        losses_oh = bev_segmentation_head(x, params, targets=onehot,
                                          max_tile_px=tile_px)
        losses_oh = {k: jax.block_until_ready(v) for k, v in losses_oh.items()}
        for k in losses:
            assert bool(jnp.allclose(losses[k], ref_losses[k], atol=2e-2, rtol=2e-2)), k
            assert bool(jnp.allclose(losses_oh[k], ref_losses[k], atol=2e-2, rtol=2e-2)), k

    print("KERNEL_OK")
</pallas_src>

<mosaic_0001>
module attributes {stable_mosaic.version = 11 : i64} {
  func.func @_probs_kernel(%arg0: i32, %arg1: i32, %arg2: memref<1x1x320x32xbf16, #tpu.memory_space<vmem>>, %arg3: memref<288x32xbf16, #tpu.memory_space<vmem>>, %arg4: memref<1x32xf32, #tpu.memory_space<vmem>>, %arg5: memref<32x32xbf16, #tpu.memory_space<vmem>>, %arg6: memref<1x32xf32, #tpu.memory_space<vmem>>, %arg7: memref<32x6xbf16, #tpu.memory_space<vmem>>, %arg8: memref<1x6xf32, #tpu.memory_space<vmem>>, %arg9: memref<1x1x256x6xf32, #tpu.memory_space<vmem>>, %arg10: memref<256x288xbf16, #tpu.memory_space<vmem>>) attributes {dimension_semantics = [#tpu.dimension_semantics<parallel>, #tpu.dimension_semantics<parallel>], iteration_bounds = array<i64: 2, 1>, scalar_prefetch = 0 : i64, scratch_operands = 1 : i64, tpu.core_type = #tpu.core_type<tc>, window_params = [{transform_indices = @transform_0, window_bounds = array<i64: 1, 1, 320, 32>}, {pipeline_mode = #tpu.pipeline_mode<synchronous>, transform_indices = @transform_1, window_bounds = array<i64: 288, 32>}, {pipeline_mode = #tpu.pipeline_mode<synchronous>, transform_indices = @transform_2, window_bounds = array<i64: 1, 32>}, {pipeline_mode = #tpu.pipeline_mode<synchronous>, transform_indices = @transform_3, window_bounds = array<i64: 32, 32>}, {pipeline_mode = #tpu.pipeline_mode<synchronous>, transform_indices = @transform_4, window_bounds = array<i64: 1, 32>}, {pipeline_mode = #tpu.pipeline_mode<synchronous>, transform_indices = @transform_5, window_bounds = array<i64: 32, 6>}, {pipeline_mode = #tpu.pipeline_mode<synchronous>, transform_indices = @transform_6, window_bounds = array<i64: 1, 6>}, {transform_indices = @transform_7, window_bounds = array<i64: 1, 1, 256, 6>}]} {
    %c0 = arith.constant 0 : index
    %c0_0 = arith.constant 0 : index
    %c0_1 = arith.constant 0 : index
    %c0_2 = arith.constant 0 : index
    %0 = vector.load %arg2[%c0, %c0_0, %c0_1, %c0_2] : memref<1x1x320x32xbf16, #tpu.memory_space<vmem>>, vector<1x1x320x32xbf16>
    %1 = vector.shape_cast %0 : vector<1x1x320x32xbf16> to vector<320x32xbf16>
    %2 = tpu.iota {dimensions = array<i32: 0>} : vector<256x1xi32>
    %c16_i32 = arith.constant 16 : i32
    %c0_i32 = arith.constant 0 : i32
    %3 = arith.cmpi eq, %c16_i32, %c0_i32 : i32
    %c1_i32 = arith.constant 1 : i32
    %4 = arith.select %3, %c1_i32, %c16_i32 : i32
    %5 = vector.broadcast %4 : i32 to vector<256x1xi32>
    %6 = arith.remsi %2, %5 : vector<256x1xi32>
    %c0_i32_3 = arith.constant 0 : i32
    %7 = vector.broadcast %c0_i32_3 : i32 to vector<256x1xi32>
    %8 = arith.cmpi ne, %6, %7 : vector<256x1xi32>
    %c0_i32_4 = arith.constant 0 : i32
    %9 = vector.broadcast %c0_i32_4 : i32 to vector<256x1xi32>
    %10 = arith.cmpi slt, %6, %9 : vector<256x1xi32>
    %c0_i32_5 = arith.constant 0 : i32
    %11 = arith.cmpi slt, %4, %c0_i32_5 : i32
    %12 = vector.broadcast %11 : i1 to vector<256x1xi1>
    %13 = vector.broadcast %12 : vector<256x1xi1> to vector<256x1xi1>
    %14 = arith.xori %10, %13 : vector<256x1xi1>
    %15 = arith.andi %14, %8 : vector<256x1xi1>
    %16 = vector.broadcast %4 : i32 to vector<256x1xi32>
    %17 = arith.addi %6, %16 : vector<256x1xi32>
    %18 = arith.select %15, %17, %6 : vector<256x1xi1>, vector<256x1xi32>
    %c0_i32_6 = arith.constant 0 : i32
    %19 = vector.broadcast %c0_i32_6 : i32 to vector<256x1xi32>
    %20 = arith.cmpi sgt, %18, %19 : vector<256x1xi32>
    %c15_i32 = arith.constant 15 : i32
    %21 = vector.broadcast %c15_i32 : i32 to vector<256x1xi32>
    %22 = arith.cmpi slt, %18, %21 : vector<256x1xi32>
    %23 = vector.extract_strided_slice %1 {offsets = [15, 0], sizes = [256, 32], strides = [1, 1]} : vector<320x32xbf16> to vector<256x32xbf16>
    %c0_i32_7 = arith.constant 0 : i32
    %24 = arith.sitofp %c0_i32_7 : i32 to bf16
    %25 = vector.shape_cast %20 : vector<256x1xi1> to vector<256x1xi1>
    %26 = vector.broadcast %25 : vector<256x1xi1> to vector<256x32xi1>
    %27 = vector.broadcast %24 : bf16 to vector<256x32xbf16>
    %28 = arith.select %26, %23, %27 : vector<256x32xi1>, vector<256x32xbf16>
    %c0_8 = arith.constant 0 : index
    %c0_9 = arith.constant 0 : index
    %29 = vector.load %arg10[%c0_8, %c0_9] : memref<256x288xbf16, #tpu.memory_space<vmem>>, vector<256x32xbf16>
    tpu.vector_store %arg10[%c0_8, %c0_9], %28 {strides = array<i32>} : memref<256x288xbf16, #tpu.memory_space<vmem>>, vector<256x32xbf16>,
    %30 = vector.extract_strided_slice %1 {offsets = [16, 0], sizes = [256, 32], strides = [1, 1]} : vector<320x32xbf16> to vector<256x32xbf16>
    %c0_10 = arith.constant 0 : index
    %c32 = arith.constant 32 : index
    %31 = vector.load %arg10[%c0_10, %c32] : memref<256x288xbf16, #tpu.memory_space<vmem>>, vector<256x32xbf16>
    tpu.vector_store %arg10[%c0_10, %c32], %30 {strides = array<i32>} : memref<256x288xbf16, #tpu.memory_space<vmem>>, vector<256x32xbf16>,
    %32 = vector.extract_strided_slice %1 {offsets = [17, 0], sizes = [256, 32], strides = [1, 1]} : vector<320x32xbf16> to vector<256x32xbf16>
    %c0_i32_11 = arith.constant 0 : i32
    %33 = arith.sitofp %c0_i32_11 : i32 to bf16
    %34 = vector.shape_cast %22 : vector<256x1xi1> to vector<256x1xi1>
    %35 = vector.broadcast %34 : vector<256x1xi1> to vector<256x32xi1>
    %36 = vector.broadcast %33 : bf16 to vector<256x32xbf16>
    %37 = arith.select %35, %32, %36 : vector<256x32xi1>, vector<256x32xbf16>
    %c0_12 = arith.constant 0 : index
    %c64 = arith.constant 64 : index
    %38 = vector.load %arg10[%c0_12, %c64] : memref<256x288xbf16, #tpu.memory_space<vmem>>, vector<256x32xbf16>
    tpu.vector_store %arg10[%c0_12, %c64], %37 {strides = array<i32>} : memref<256x288xbf16, #tpu.memory_space<vmem>>, vector<256x32xbf16>,
    %39 = vector.extract_strided_slice %1 {offsets = [31, 0], sizes = [256, 32], strides = [1, 1]} : vector<320x32xbf16> to vector<256x32xbf16>
    %c0_i32_13 = arith.constant 0 : i32
    %40 = arith.sitofp %c0_i32_13 : i32 to bf16
    %41 = vector.shape_cast %20 : vector<256x1xi1> to vector<256x1xi1>
    %42 = vector.broadcast %41 : vector<256x1xi1> to vector<256x32xi1>
    %43 = vector.broadcast %40 : bf16 to vector<256x32xbf16>
    %44 = arith.select %42, %39, %43 : vector<256x32xi1>, vector<256x32xbf16>
    %c0_14 = arith.constant 0 : index
    %c96 = arith.constant 96 : index
    %45 = vector.load %arg10[%c0_14, %c96] : memref<256x288xbf16, #tpu.memory_space<vmem>>, vector<256x32xbf16>
    tpu.vector_store %arg10[%c0_14, %c96], %44 {strides = array<i32>} : memref<256x288xbf16, #tpu.memory_space<vmem>>, vector<256x32xbf16>,
    %46 = vector.extract_strided_slice %1 {offsets = [32, 0], sizes = [256, 32], strides = [1, 1]} : vector<320x32xbf16> to vector<256x32xbf16>
    %c0_15 = arith.constant 0 : index
    %c128 = arith.constant 128 : index
    %47 = vector.load %arg10[%c0_15, %c128] : memref<256x288xbf16, #tpu.memory_space<vmem>>, vector<256x32xbf16>
    tpu.vector_store %arg10[%c0_15, %c128], %46 {strides = array<i32>} : memref<256x288xbf16, #tpu.memory_space<vmem>>, vector<256x32xbf16>,
    %48 = vector.extract_strided_slice %1 {offsets = [33, 0], sizes = [256, 32], strides = [1, 1]} : vector<320x32xbf16> to vector<256x32xbf16>
    %c0_i32_16 = arith.constant 0 : i32
    %49 = arith.sitofp %c0_i32_16 : i32 to bf16
    %50 = vector.shape_cast %22 : vector<256x1xi1> to vector<256x1xi1>
    %51 = vector.broadcast %50 : vector<256x1xi1> to vector<256x32xi1>
    %52 = vector.broadcast %49 : bf16 to vector<256x32xbf16>
    %53 = arith.select %51, %48, %52 : vector<256x32xi1>, vector<256x32xbf16>
    %c0_17 = arith.constant 0 : index
    %c160 = arith.constant 160 : index
    %54 = vector.load %arg10[%c0_17, %c160] : memref<256x288xbf16, #tpu.memory_space<vmem>>, vector<256x32xbf16>
    tpu.vector_store %arg10[%c0_17, %c160], %53 {strides = array<i32>} : memref<256x288xbf16, #tpu.memory_space<vmem>>, vector<256x32xbf16>,
    %55 = vector.extract_strided_slice %1 {offsets = [47, 0], sizes = [256, 32], strides = [1, 1]} : vector<320x32xbf16> to vector<256x32xbf16>
    %c0_i32_18 = arith.constant 0 : i32
    %56 = arith.sitofp %c0_i32_18 : i32 to bf16
    %57 = vector.shape_cast %20 : vector<256x1xi1> to vector<256x1xi1>
    %58 = vector.broadcast %57 : vector<256x1xi1> to vector<256x32xi1>
    %59 = vector.broadcast %56 : bf16 to vector<256x32xbf16>
    %60 = arith.select %58, %55, %59 : vector<256x32xi1>, vector<256x32xbf16>
    %c0_19 = arith.constant 0 : index
    %c192 = arith.constant 192 : index
    %61 = vector.load %arg10[%c0_19, %c192] : memref<256x288xbf16, #tpu.memory_space<vmem>>, vector<256x32xbf16>
    tpu.vector_store %arg10[%c0_19, %c192], %60 {strides = array<i32>} : memref<256x288xbf16, #tpu.memory_space<vmem>>, vector<256x32xbf16>,
    %62 = vector.extract_strided_slice %1 {offsets = [48, 0], sizes = [256, 32], strides = [1, 1]} : vector<320x32xbf16> to vector<256x32xbf16>
    %c0_20 = arith.constant 0 : index
    %c224 = arith.constant 224 : index
    %63 = vector.load %arg10[%c0_20, %c224] : memref<256x288xbf16, #tpu.memory_space<vmem>>, vector<256x32xbf16>
    tpu.vector_store %arg10[%c0_20, %c224], %62 {strides = array<i32>} : memref<256x288xbf16, #tpu.memory_space<vmem>>, vector<256x32xbf16>,
    %64 = vector.extract_strided_slice %1 {offsets = [49, 0], sizes = [256, 32], strides = [1, 1]} : vector<320x32xbf16> to vector<256x32xbf16>
    %c0_i32_21 = arith.constant 0 : i32
    %65 = arith.sitofp %c0_i32_21 : i32 to bf16
    %66 = vector.shape_cast %22 : vector<256x1xi1> to vector<256x1xi1>
    %67 = vector.broadcast %66 : vector<256x1xi1> to vector<256x32xi1>
    %68 = vector.broadcast %65 : bf16 to vector<256x32xbf16>
    %69 = arith.select %67, %64, %68 : vector<256x32xi1>, vector<256x32xbf16>
    %c0_22 = arith.constant 0 : index
    %c256 = arith.constant 256 : index
    %70 = vector.load %arg10[%c0_22, %c256] : memref<256x288xbf16, #tpu.memory_space<vmem>>, vector<256x32xbf16>
    tpu.vector_store %arg10[%c0_22, %c256], %69 {strides = array<i32>} : memref<256x288xbf16, #tpu.memory_space<vmem>>, vector<256x32xbf16>,
    %c0_23 = arith.constant 0 : index
    %c0_24 = arith.constant 0 : index
    %71 = vector.load %arg10[%c0_23, %c0_24] : memref<256x288xbf16, #tpu.memory_space<vmem>>, vector<256x288xbf16>
    %c0_25 = arith.constant 0 : index
    %c0_26 = arith.constant 0 : index
    %72 = vector.load %arg3[%c0_25, %c0_26] : memref<288x32xbf16, #tpu.memory_space<vmem>>, vector<288x32xbf16>
    %cst = arith.constant dense<0.000000e+00> : vector<256x32xf32>
    %73 = tpu.matmul %71, %72, %cst {dimension_numbers = #tpu.dot_dimension_numbers<[1], [0], [0], [1], [0, 0, 1, 1], [], []>} : vector<256x288xbf16>, vector<288x32xbf16>, vector<256x32xf32> -> vector<256x32xf32>
    %c0_27 = arith.constant 0 : index
    %c0_28 = arith.constant 0 : index
    %74 = vector.load %arg4[%c0_27, %c0_28] : memref<1x32xf32, #tpu.memory_space<vmem>>, vector<1x32xf32>
    %75 = vector.broadcast %74 : vector<1x32xf32> to vector<256x32xf32>
    %76 = arith.addf %73, %75 : vector<256x32xf32>
    %cst_29 = arith.constant 0.000000e+00 : f32
    %77 = vector.broadcast %cst_29 : f32 to vector<256x32xf32>
    %78 = arith.maximumf %76, %77 : vector<256x32xf32>
    %79 = arith.truncf %78 : vector<256x32xf32> to vector<256x32xbf16>
    %c0_30 = arith.constant 0 : index
    %c0_31 = arith.constant 0 : index
    %80 = vector.load %arg5[%c0_30, %c0_31] : memref<32x32xbf16, #tpu.memory_space<vmem>>, vector<32x32xbf16>
    %cst_32 = arith.constant dense<0.000000e+00> : vector<256x32xf32>
    %81 = tpu.matmul %79, %80, %cst_32 {dimension_numbers = #tpu.dot_dimension_numbers<[1], [0], [0], [1], [0, 0, 1, 1], [], []>} : vector<256x32xbf16>, vector<32x32xbf16>, vector<256x32xf32> -> vector<256x32xf32>
    %c0_33 = arith.constant 0 : index
    %c0_34 = arith.constant 0 : index
    %82 = vector.load %arg6[%c0_33, %c0_34] : memref<1x32xf32, #tpu.memory_space<vmem>>, vector<1x32xf32>
    %83 = vector.broadcast %82 : vector<1x32xf32> to vector<256x32xf32>
    %84 = arith.addf %81, %83 : vector<256x32xf32>
    %cst_35 = arith.constant 0.000000e+00 : f32
    %85 = vector.broadcast %cst_35 : f32 to vector<256x32xf32>
    %86 = arith.maximumf %84, %85 : vector<256x32xf32>
    %87 = arith.truncf %86 : vector<256x32xf32> to vector<256x32xbf16>
    %c0_36 = arith.constant 0 : index
    %c0_37 = arith.constant 0 : index
    %88 = vector.load %arg7[%c0_36, %c0_37] : memref<32x6xbf16, #tpu.memory_space<vmem>>, vector<32x6xbf16>
    %cst_38 = arith.constant dense<0.000000e+00> : vector<256x6xf32>
    %89 = tpu.matmul %87, %88, %cst_38 {dimension_numbers = #tpu.dot_dimension_numbers<[1], [0], [0], [1], [0, 0, 1, 1], [], []>} : vector<256x32xbf16>, vector<32x6xbf16>, vector<256x6xf32> -> vector<256x6xf32>
    %c0_39 = arith.constant 0 : index
    %c0_40 = arith.constant 0 : index
    %90 = vector.load %arg8[%c0_39, %c0_40] : memref<1x6xf32, #tpu.memory_space<vmem>>, vector<1x6xf32>
    %91 = vector.broadcast %90 : vector<1x6xf32> to vector<256x6xf32>
    %92 = arith.addf %89, %91 : vector<256x6xf32>
    %93 = arith.negf %92 : vector<256x6xf32>
    %94 = math.exp %93 : vector<256x6xf32>
    %cst_41 = arith.constant 1.000000e+00 : f32
    %95 = vector.broadcast %cst_41 : f32 to vector<256x6xf32>
    %96 = arith.addf %95, %94 : vector<256x6xf32>
    %97 = arith.divf %95, %96 : vector<256x6xf32>
    %c0_42 = arith.constant 0 : index
    %c0_43 = arith.constant 0 : index
    %c0_44 = arith.constant 0 : index
    %c0_45 = arith.constant 0 : index
    %98 = vector.load %arg9[%c0_42, %c0_43, %c0_44, %c0_45] : memref<1x1x256x6xf32, #tpu.memory_space<vmem>>, vector<1x1x256x6xf32>
    %99 = vector.shape_cast %98 : vector<1x1x256x6xf32> to vector<256x6xf32>
    %100 = vector.shape_cast %97 : vector<256x6xf32> to vector<1x1x256x6xf32>
    tpu.vector_store %arg9[%c0_42, %c0_43, %c0_44, %c0_45], %100 {strides = array<i32>} : memref<1x1x256x6xf32, #tpu.memory_space<vmem>>, vector<1x1x256x6xf32>,
    return
  }
  func.func @transform_0(%arg0: i32, %arg1: i32) -> (i32, i32, i32, i32) {
    %c0_i32 = arith.constant 0 : i32
    %c0_i32_0 = arith.constant 0 : i32
    %c0_i32_1 = arith.constant 0 : i32
    return %arg0, %arg1, %c0_i32, %c0_i32_0 : i32, i32, i32, i32
  }
  func.func @transform_1(%arg0: i32, %arg1: i32) -> (i32, i32) {
    %c0_i32 = arith.constant 0 : i32
    %c0_i32_0 = arith.constant 0 : i32
    %c0_i32_1 = arith.constant 0 : i32
    return %c0_i32, %c0_i32_0 : i32, i32
  }
  func.func @transform_2(%arg0: i32, %arg1: i32) -> (i32, i32) {
    %c0_i32 = arith.constant 0 : i32
    %c0_i32_0 = arith.constant 0 : i32
    %c0_i32_1 = arith.constant 0 : i32
    return %c0_i32, %c0_i32_0 : i32, i32
  }
  func.func @transform_3(%arg0: i32, %arg1: i32) -> (i32, i32) {
    %c0_i32 = arith.constant 0 : i32
    %c0_i32_0 = arith.constant 0 : i32
    %c0_i32_1 = arith.constant 0 : i32
    return %c0_i32, %c0_i32_0 : i32, i32
  }
  func.func @transform_4(%arg0: i32, %arg1: i32) -> (i32, i32) {
    %c0_i32 = arith.constant 0 : i32
    %c0_i32_0 = arith.constant 0 : i32
    %c0_i32_1 = arith.constant 0 : i32
    return %c0_i32, %c0_i32_0 : i32, i32
  }
  func.func @transform_5(%arg0: i32, %arg1: i32) -> (i32, i32) {
    %c0_i32 = arith.constant 0 : i32
    %c0_i32_0 = arith.constant 0 : i32
    %c0_i32_1 = arith.constant 0 : i32
    return %c0_i32, %c0_i32_0 : i32, i32
  }
  func.func @transform_6(%arg0: i32, %arg1: i32) -> (i32, i32) {
    %c0_i32 = arith.constant 0 : i32
    %c0_i32_0 = arith.constant 0 : i32
    %c0_i32_1 = arith.constant 0 : i32
    return %c0_i32, %c0_i32_0 : i32, i32
  }
  func.func @transform_7(%arg0: i32, %arg1: i32) -> (i32, i32, i32, i32) {
    %c0_i32 = arith.constant 0 : i32
    %c0_i32_0 = arith.constant 0 : i32
    %c0_i32_1 = arith.constant 0 : i32
    return %arg0, %arg1, %c0_i32, %c0_i32_0 : i32, i32, i32, i32
  }
}

</mosaic_0001>

<bundles_post_ra>
// kernel: tpu_custom_call.1
= control target key start
LH: loop header
LB: loop body
LE: loop exit
PB: predicated region body
PF: predicated region fallthrough
CT: control target
= control target key end

     0   :  { %s6134_s24 = smov 0   ;;  %s6136_s25 = smov 0   ;;  %s8713_s0 = inlined_call_operand.vmem [shape: bf16[2,1,320,32], index: 0, kind: input, shape index: {}]   ;;  %s8714_s1 = inlined_call_operand.vmem [shape: bf16[288,32], index: 1, kind: input, shape index: {}]   ;;  %s8715_s2 = inlined_call_operand.vmem [shape: f32[1,32], index: 2, kind: input, shape index: {}]   ;;  %s8716_s3 = inlined_call_operand.vmem [shape: bf16[32,32], index: 3, kind: input, shape index: {}]   ;;  %s8717_s4 = inlined_call_operand.vmem [shape: f32[1,32], index: 4, kind: input, shape index: {}]   ;;  %s8718_s5 = inlined_call_operand.vmem [shape: bf16[32,6], index: 5, kind: input, shape index: {}]   ;;  %s8719_s6 = inlined_call_operand.vmem [shape: f32[1,6], index: 6, kind: input, shape index: {}]   ;;  %s8720_s7 = inlined_call_operand.vmem [shape: f32[2,1,256,6], index: 7, kind: output, shape index: {}]  }
   0x1   :  { %s6138_s26 = smov 0  }
   0x2 LB: > { %s29_s27 = sadd.s32 1, %s6083_s25  ;;  %p5345_p0 = scmp.ge.s32.totalorder %s6087_s26, 1  ;;  %s6087_s26 = sphi %s6138_s26, %s17_s26   ;;  %s6083_s25 = sphi %s6136_s25, %s9133_s25   ;;  %s6079_s24 = sphi %s6134_s24, %s9132_s24  }
   0x3   : > { %p31_p1 = scmp.ge.s32.totalorder %s29_s27, 2  ;;  %p257_p2 = scmp.lt.s32.totalorder %s6087_s26, 3 }
   0x5   : > { %s9135_s27 = smov (%p31_p1, %s29_s27), 0  ;;  %p258_p3 = pnand %p5345_p0, %p257_p2 }
   0x7   : > { %261 = sbr.rel (%p258_p3) target bundleno = 1244 (0x4dc), region = 48 }
   0xe   : > { %p297_p4 = scmp.lt.s32.totalorder %s6079_s24, 1  ;;  %v356_v0 = vlaneseq  ;;  %vm6089_vm0 = vmmov 1   ;;  %v8730_v2 = vmov 0   ;;  %vm965_vm2 = vsmask.f32 3328  ;;  %s6091_s9 = smov 32  }
   0xf   : > { %vm902_vm1 = vmpackc.low %vm6089_vm0, %vm6089_vm0  ;;  %vm966_vm3 = vsmask.f32 7440  ;;  %vm8722_vm4 = vcmask 261120   ;;  %vm1895_vm5 = vsmask.f32 256  ;;  %s6092_s10 = smov 96  }
  0x10   : > { %s9137_s24 = smov (!%p297_p4, %s6079_s24), 1  ;;  %v6154_v1 = vshrl.u32 %v356_v0, 7  ;;  %v934_v3 = vsel %vm902_vm1, 65537, %v8730_v2  ;;  %vm1896_vm6 = vsmask.f32 4368  ;;  %vm6223_vm14 = vmor %vm965_vm2, %vm966_vm3  ;;  %s6093_s11 = smov 64  }
  0x11   : > { %v978_v4 = vshll.u32 %v934_v3, 16  ;;  %v982_v5 = vshrl.u32 %v934_v3, 16  ;;  %s5855_s28 = smul.u32 160, %s9137_s24  ;;  %vm6256_vm2 = vmor %vm1895_vm5, %vm1896_vm6  ;;  %s5576_s13 = sshll.u32 %s9137_s24, 8 }
  0x12   : > { %v358_v6 = vadd.s32 8, %v6154_v1  ;;  %v359_v7 = vadd.s32 16, %v6154_v1  ;;  %v393_v8 = vand.u32 15, %v6154_v1  ;;  %v360_v9 = vadd.s32 24, %v6154_v1  ;;  %s8619_s16 = scalar_lea.vmem %s8720_s7, %s5576_s13 }
  0x13   : > { %v6162_v10 = vrot.slane %v978_v4, 5  ;;  %v984_v11 = vrot.slane %v982_v5, 4  ;;  %v1901_v12 = vrot.slane %v982_v5, 7  ;;  %v6165_v13 = vadd.s32 40, %v6154_v1  ;;  %s6170_s8 = scalar_lea.vmem %s8713_s0, %s5855_s28 }
  0x14   : > { %v400_v14 = vand.u32 15, %v358_v6  ;;  %v407_v15 = vand.u32 15, %v359_v7  ;;  %vm773_vm7 = vcmp.gt.s32.totalorder %v393_v8, 0  ;;  %v414_v16 = vand.u32 15, %v360_v9  ;;  %v6173_v17 = vld [vmem:[%s6170_s8 + $0x8] sm:$0xf] }
  0x15   : > { %v6176_v18 = vld [vmem:[%s6170_s8 + $0xc] sm:$0xf]  ;;  %v6179_v19 = vld [vmem:[%s6170_s8 + $0x18] sm:$0xf]  ;;  %v985_v20 = vor.u32 %v984_v11, %v6162_v10  ;;  %v6182_v21 = vor.u32 %v1901_v12, %v978_v4  ;;  %v6185_v22 = vld [vmem:[%s6170_s8 + $0x1c] sm:$0xf] }
  0x16   : > { %vm775_vm8 = vcmp.gt.s32.totalorder %v407_v15, 0  ;;  %vm6187_vm9 = vcmp.lt.s32.totalorder %v400_v14, 15  ;;  %vm901_vm10 = vmpackc.low %vm773_vm7, %vm773_vm7  ;;  %v5366_v24 = vcombine.low %v6173_v17, %v6176_v18  ;;  %v6193_v25 = vrot.slane %v1901_v12, 4  ;;  %v318_v33 = vld [vmem:[%s6170_s8 + $0x4] sm:$0xf] }
  0x17   : > { %vm903_vm11 = vmpackc.low %vm775_vm8, %vm775_vm8  ;;  %v933_v26 = vsel %vm901_vm10, 65537, %v8730_v2  ;;  %v6196_v27 = vrot.slane %v985_v20, 4  ;;  %vm2185_vm12 = vcmp.ne.s16.totalorder %v6182_v21, 0  ;;  %v5368_v28 = vcombine.low %v6179_v19, %v6185_v22  ;;  %v6211_v34 = vld [vmem:[%s6170_s8 + $0x10] sm:$0xf] }
  0x18   : > { %v935_v29 = vsel %vm903_vm11, 65537, %v8730_v2  ;;  %v969_v30 = vshll.u32 %v933_v26, 16  ;;  %v972_v31 = vshrl.u32 %v933_v26, 16  ;;  %vm1832_vm13 = vmpackc.low %vm6187_vm9, %vm6187_vm9  ;;  %v2218_v32 = vsel %vm2185_vm12, %v6173_v17, 0  ;;  %1702 = vrot.lane.b32.xlu0 %v5366_v24, %s6091_s9  ;;  %v6218_v39 = vld [vmem:[%s6170_s8 + $0x14] sm:$0xf] }
  0x19   : > { %v988_v35 = vshll.u32 %v935_v29, 16  ;;  %v992_v36 = vshrl.u32 %v935_v29, 16  ;;  %v1864_v37 = vsel %vm1832_vm13, 65537, %v8730_v2  ;;  %v3615_v38 = vsel %vm2185_vm12, %v6179_v19, 0  ;;  %2887 = vst.msk [vmem:[#allocation2 + $0x20] sm:$0xff] %vm8722_vm4, %v5368_v28 }
  0x1a   : > { %v6227_v41 = vrot.slane %v969_v30, 5  ;;  %v974_v42 = vrot.slane %v972_v31, 4  ;;  %v1907_v43 = vshrl.u32 %v1864_v37, 16  ;;  %v1910_v44 = vshll.u32 %v1864_v37, 16  ;;  %v6230_v45 = vld [vmem:[%s6170_s8 + $0x20] sm:$0xf] }
  0x1b   : > { %v990_v46 = vrot.slane %v988_v35, 5  ;;  %v994_v47 = vrot.slane %v992_v36, 4  ;;  %v5367_v48 = vcombine.low %v6211_v34, %v6218_v39  ;;  %v6235_v49 = vld [vmem:[%s6170_s8 + $0x24] sm:$0xf]  ;;  %vm6237_vm15 = vcmp.lt.s32.totalorder %v414_v16, 15 }
  0x1c   : > { %v975_v51 = vor.u32 %v974_v42, %v6227_v41  ;;  %vm1287_vm0 = vcmp.ne.s16.totalorder %v6227_v41, 0  ;;  %v1909_v52 = vrot.slane %v1907_v43, 7  ;;  %3551 = vrot.lane.b32.xlu0 %v5368_v28, %s6092_s10  ;;  %v6246_v53 = vcombine.low %v6230_v45, %v6235_v49  ;;  %vm1834_vm1 = vmpackc.low %vm6237_vm15, %vm6237_vm15 }
  0x1d   : > { %v991_v54 = vsel %vm6223_vm14, %v6196_v27, %v990_v46  ;;  %v995_v55 = vor.u32 %v994_v47, %v990_v46  ;;  %v6263_v57 = vsel %vm1287_vm0, %v6176_v18, 0  ;;  %v1320_v58 = vsel %vm1287_vm0, %v318_v33, 0  ;;  %1704 = vrot.lane.b32.xlu1 %v5367_v48, %s6091_s9  ;;  %2886 = vst.msk [vmem:[#allocation2 + $0x8] sm:$0xff] %vm8722_vm4, %v5367_v48 }
  0x1e   : > { %v976_v59 = vrot.slane %v975_v51, 4  ;;  %vm6269_vm3 = vcmp.ne.s16.totalorder %v991_v54, 0  ;;  %v1912_v61 = vor.u32 %v1910_v44, %v1909_v52  ;;  %2888 = vst.msk [vmem:[#allocation2 + $0x38] sm:$0xff] %vm8722_vm4, %v6246_v53  ;;  %v1866_v62 = vsel %vm1834_vm1, 65537, %v8730_v2 }
  0x1f   : > { %v996_v63 = vrot.slane %v995_v55, 4  ;;  %v1914_v3 = vrot.slane %v1909_v52, 4  ;;  %v1925_v4 = vshrl.u32 %v1866_v62, 16  ;;  %v1928_v7 = vshll.u32 %v1866_v62, 16 }
  0x20   : > { %v981_v5 = vsel %vm6223_vm14, %v976_v59, %v6162_v10  ;;  %v1913_v6 = vsel %vm6256_vm2, %v6193_v25, %v1912_v61  ;;  %3553 = vrot.lane.b32.xlu0 %v6246_v53, %s6092_s10  ;;  %v2902_v8 = vsel %vm2185_vm12, %v6211_v34, 0  ;;  %vm8723_vm9 = vsmask.f32 7424 }
  0x21   : > { %vm6290_vm5 = vcmp.ne.s16.totalorder %v981_v5, 0  ;;  %vm6294_vm6 = vcmp.ne.s16.totalorder %v1913_v6, 0  ;;  %v1001_v12 = vsel %vm6223_vm14, %v996_v63, %v6162_v10  ;;  %1706 = vrot.lane.b32.xlu1 %v5368_v28, %s6091_s9  ;;  %v1922_v14 = vsel %vm6256_vm2, %v1914_v3, %v6182_v21 }
  0x22   : > { %v2219_v15 = vsel %vm6294_vm6, %v6176_v18, 0  ;;  %v3215_v16 = vsel %vm6290_vm5, %v6179_v19, 0  ;;  %v3616_v20 = vsel %vm6294_vm6, %v6185_v22, 0  ;;  %v1321_v23 = vsel %vm6290_vm5, %v6173_v17, 0 }
  0x23   : > { %v5382_v24 = vcombine.low %v2218_v32, %v2219_v15  ;;  %v5452_v26 = vcombine.low %v3615_v38, %v3616_v20  ;;  %v5349_v28 = vcombine.low %v1320_v58, %v1321_v23  ;;  %vm6317_vm7 = vcmp.ne.s16.totalorder %v1001_v12, 0 }
  0x24   : > { %v1927_v31 = vrot.slane %v1925_v4, 7  ;;  %vm2187_vm8 = vcmp.ne.s16.totalorder %v1922_v14, 0  ;;  %v2903_v33 = vsel %vm6294_vm6, %v6218_v39, 0  ;;  %v428_v58 = vand.u32 15, %v6165_v13 }
  0x25   : > { %v3732_v35 = vshrl.u32 %v5452_v26, 16  ;;  %v3734_v36 = vshll.u32 %v5452_v26, 16  ;;  %v1438_v17 = vshrl.u32 %v5349_v28, 16  ;;  %v1441_v32 = vshll.u32 %v5349_v28, 16 }
  0x26   : > { %v1930_v37 = vor.u32 %v1928_v7, %v1927_v31  ;;  %v2220_v38 = vsel %vm2187_vm8, %v6211_v34, 0  ;;  %v2336_v42 = vshrl.u32 %v5382_v24, 16  ;;  %v2338_v43 = vshll.u32 %v5382_v24, 16 }
  0x27   : > { %v3736_v44 = vrot.slane %v3734_v36, 1  ;;  %v6329_v46 = vrot.slane %v1438_v17, 3  ;;  %v6331_v47 = vrot.slane %v1441_v32, 4  ;;  %v3617_v48 = vsel %vm2187_vm8, %v6230_v45, 0 }
  0x28   : > { %v1931_v50 = vsel %vm6256_vm2, %v6193_v25, %v1930_v37  ;;  %v2340_v51 = vrot.slane %v2338_v43, 1  ;;  %v2904_v52 = vsel %vm2187_vm8, %v6179_v19, 0  ;;  %v5417_v54 = vcombine.low %v2902_v8, %v2903_v33 }
  0x29   : > { %v3737_v55 = vor.u32 %v3736_v44, %v3732_v35  ;;  %vm2188_vm10 = vcmp.ne.s16.totalorder %v1931_v50, 0  ;;  %v1932_v59 = vrot.slane %v1927_v31, 4  ;;  %vm810_vm11 = vcmp.lt.s32.totalorder %v428_v58, 15  ;;  %v6350_v35 = vld [vmem:[%s6170_s8 + $0x28] sm:$0xf] }
  0x2a   : > { %v2221_v61 = vsel %vm2188_vm10, %v6218_v39, 0  ;;  %v2341_v62 = vor.u32 %v2340_v51, %v2336_v42  ;;  %v3618_v63 = vsel %vm2188_vm10, %v6235_v49, 0  ;;  %v2905_v3 = vsel %vm2188_vm10, %v6185_v22, 0  ;;  %vm1836_vm12 = vmpackc.low %vm810_vm11, %vm810_vm11 }
  0x2b   : > { %v5383_v4 = vcombine.low %v2220_v38, %v2221_v61  ;;  %v5453_v5 = vcombine.low %v3617_v48, %v3618_v63  ;;  %v5418_v6 = vcombine.low %v2904_v52, %v2905_v3  ;;  %v3019_v7 = vshrl.u32 %v5417_v54, 16 }
  0x2c   : > { %v3021_v11 = vshll.u32 %v5417_v54, 16  ;;  %v1940_v8 = vsel %vm6256_vm2, %v1932_v59, %v6182_v21  ;;  %v364_v13 = vadd.s32 56, %v6154_v1  ;;  %v1868_v24 = vsel %vm1836_vm12, 65537, %v8730_v2 }
  0x2d   : > { %v2343_v12 = vshll.u32 %v5383_v4, 16  ;;  %v3739_v14 = vshll.u32 %v5453_v5, 16  ;;  %v3743_v15 = vshrl.u32 %v5453_v5, 16  ;;  %v3026_v20 = vshll.u32 %v5418_v6, 16 }
  0x2e   : > { %v3023_v23 = vrot.slane %v3021_v11, 1  ;;  %vm2189_vm13 = vcmp.ne.s16.totalorder %v1940_v8, 0  ;;  %v2347_v26 = vshrl.u32 %v5383_v4, 16  ;;  %v1943_v36 = vshrl.u32 %v1868_v24, 16  ;;  %v6387_v11 = vld [vmem:[%s6170_s8 + $0x30] sm:$0xf] }
  0x2f   : > { %v2345_v28 = vrot.slane %v2343_v12, 1  ;;  %v3741_v31 = vrot.slane %v3739_v14, 1  ;;  %v3028_v33 = vrot.slane %v3026_v20, 1  ;;  %v1946_v32 = vshll.u32 %v1868_v24, 16 }
  0x30   : > { %v3024_v17 = vor.u32 %v3023_v23, %v3019_v7  ;;  %v2222_v37 = vsel %vm2189_vm13, %v6179_v19, 0  ;;  %v3619_v38 = vsel %vm2189_vm13, %v6350_v35, 0  ;;  %v1945_v48 = vrot.slane %v1943_v36, 7 }
  0x31   : > { %v2346_v42 = vsel %vm8723_vm9, %v2341_v62, %v2345_v28  ;;  %v3742_v43 = vsel %vm8723_vm9, %v3737_v55, %v3741_v31  ;;  %v3745_v44 = vor.u32 %v3743_v15, %v3741_v31  ;;  %v2349_v51 = vor.u32 %v2347_v26, %v2345_v28  ;;  %v6368_v62 = vld [vmem:[%s6170_s8 + $0x2c] sm:$0xf] }
  0x32   : > { %3879 = vst.msk [vmem:[#allocation2 + $0x10] sm:$0xff] %vm8722_vm4, %v3742_v43  ;;  %2467 = vrot.lane.b32.xlu1 %v2346_v42, %s6093_s11  ;;  %v3029_v50 = vsel %vm8723_vm9, %v3024_v17, %v3028_v33  ;;  %v2906_v52 = vsel %vm2189_vm13, %v6230_v45, 0  ;;  %v3030_v54 = vshrl.u32 %v5418_v6, 16  ;;  %v1948_v58 = vor.u32 %v1946_v32, %v1945_v48 }
  0x33   : > { %3150 = vrot.lane.b32.xlu0 %v3029_v50, %s6091_s9  ;;  %v442_v59 = vand.u32 15, %v364_v13  ;;  %v1950_v55 = vrot.slane %v1945_v48, 4  ;;  %v3214_v61 = vsel %vm1287_vm0, %v6218_v39, 0  ;;  %v3216_v3 = vsel %vm6269_vm3, %v6185_v22, 0 }
  0x34   : > { %v3032_v63 = vor.u32 %v3030_v54, %v3028_v33  ;;  %v3217_v4 = vsel %vm6317_vm7, %v6230_v45, 0  ;;  %v5434_v5 = vcombine.low %v3214_v61, %v3215_v16  ;;  %v1949_v41 = vsel %vm6256_vm2, %v6193_v25, %v1948_v58 }
  0x35   : > { %vm812_vm15 = vcmp.lt.s32.totalorder %v442_v59, 15  ;;  %v1958_v6 = vsel %vm6256_vm2, %v1950_v55, %v6182_v21  ;;  %v5435_v7 = vcombine.low %v3216_v3, %v3217_v4  ;;  %vm2190_vm0 = vcmp.ne.s16.totalorder %v1949_v41, 0 }
  0x36   : > { %vm1838_vm1 = vmpackc.low %vm812_vm15, %vm812_vm15  ;;  %vm2191_vm6 = vcmp.ne.s16.totalorder %v1958_v6, 0  ;;  %v3331_v8 = vshrl.u32 %v5434_v5, 16  ;;  %v3334_v13 = vshll.u32 %v5434_v5, 16  ;;  %v2223_v12 = vsel %vm2190_vm0, %v6185_v22, 0 }
  0x37   : > { %v3620_v16 = vsel %vm2190_vm0, %v6368_v62, 0  ;;  %v2907_v14 = vsel %vm2190_vm0, %v6235_v49, 0  ;;  %v1870_v15 = vsel %vm1838_vm1, 65537, %v8730_v2  ;;  %v5384_v20 = vcombine.low %v2222_v37, %v2223_v12 }
  0x38   : > { %v5454_v23 = vcombine.low %v3619_v38, %v3620_v16  ;;  %v5419_v24 = vcombine.low %v2906_v52, %v2907_v14  ;;  %v1961_v26 = vshrl.u32 %v1870_v15, 16  ;;  %v1964_v28 = vshll.u32 %v1870_v15, 16  ;;  %v6404_v16 = vld [vmem:[%s6170_s8 + $0x34] sm:$0xf] }
  0x39   : > { %v2224_v31 = vsel %vm2191_vm6, %v6230_v45, 0  ;;  %v3621_v33 = vsel %vm2191_vm6, %v6387_v11, 0  ;;  %v2908_v36 = vsel %vm2191_vm6, %v6350_v35, 0  ;;  %v2351_v17 = vshll.u32 %v5384_v20, 16 }
  0x3a   : > { %v3747_v32 = vshll.u32 %v5454_v23, 16  ;;  %v3751_v42 = vshrl.u32 %v5454_v23, 16  ;;  %v3034_v43 = vshll.u32 %v5419_v24, 16  ;;  %vm8721_vm8 = vsmask.f32 4352 }
  0x3b   : > { %v6396_v48 = vrot.slane %v1961_v26, 7  ;;  %v2355_v50 = vshrl.u32 %v5384_v20, 16  ;;  %v3038_v37 = vshrl.u32 %v5419_v24, 16  ;;  %v3333_v38 = vrot.slane %v3331_v8, 3 }
  0x3c   : > { %v2353_v52 = vrot.slane %v2351_v17, 1  ;;  %v3749_v54 = vrot.slane %v3747_v32, 1  ;;  %v3036_v58 = vrot.slane %v3034_v43, 1  ;;  %v3336_v59 = vrot.slane %v3334_v13, 4 }
  0x3d   : > { %v1966_v55 = vor.u32 %v1964_v28, %v6396_v48  ;;  %v3339_v61 = vshrl.u32 %v5435_v7, 16  ;;  %v3342_v3 = vshll.u32 %v5435_v7, 16  ;;  %v361_v4 = vadd.s32 32, %v6154_v1 }
  0x3e   : > { %v2354_v5 = vsel %vm8723_vm9, %v2349_v51, %v2353_v52  ;;  %v3750_v41 = vsel %vm8723_vm9, %v3745_v44, %v3749_v54  ;;  %v3753_v6 = vor.u32 %v3751_v42, %v3749_v54  ;;  %v3037_v12 = vsel %vm8723_vm9, %v3032_v63, %v3036_v58 }
  0x3f   : > { %3880 = vst.msk [vmem:[#allocation2 + $0x28] sm:$0xff] %vm8722_vm4, %v3750_v41  ;;  %2469 = vrot.lane.b32.xlu1 %v2354_v5, %s6093_s11  ;;  %3152 = vrot.lane.b32.xlu0 %v3037_v12, %s6091_s9  ;;  %v1967_v7 = vsel %vm6256_vm2, %v6193_v25, %v1966_v55  ;;  %v2357_v8 = vor.u32 %v2355_v50, %v2353_v52  ;;  %v3341_v51 = vrot.slane %v3339_v61, 3  ;;  %v3344_v14 = vrot.slane %v3342_v3, 4 }
  0x40   : > { %v3040_v13 = vor.u32 %v3038_v37, %v3036_v58  ;;  %vm2192_vm10 = vcmp.ne.s16.totalorder %v1967_v7, 0  ;;  %v3337_v44 = vor.u32 %v3336_v59, %v3333_v38  ;;  %v421_v15 = vand.u32 15, %v361_v4 }
  0x41   : > { %v2225_v63 = vsel %vm2192_vm10, %v6235_v49, 0  ;;  %v3622_v20 = vsel %vm2192_vm10, %v6404_v16, 0  ;;  %v2909_v23 = vsel %vm2192_vm10, %v6368_v62, 0  ;;  %v2533_v24 = vsel %vm6290_vm5, %v6211_v34, 0 }
  0x42   : > { %v6418_v26 = vcombine.low %v2224_v31, %v2225_v63  ;;  %v5455_v28 = vcombine.low %v3621_v33, %v3622_v20  ;;  %v6420_v17 = vcombine.low %v2908_v36, %v2909_v23  ;;  %v6422_v32 = vor.u32 %v3344_v14, %v3341_v51 }
  0x43   : > { %vm777_vm11 = vcmp.gt.s32.totalorder %v421_v15, 0  ;;  %v2534_v42 = vsel %vm6269_vm3, %v6218_v39, 0  ;;  %v2535_v43 = vsel %vm6317_vm7, %v6179_v19, 0  ;;  %v5399_v50 = vcombine.low %v6263_v57, %v2533_v24 }
  0x44   : > { %v2359_v9 = vshll.u32 %v6418_v26, 16  ;;  %v3755_v31 = vshll.u32 %v5455_v28, 16  ;;  %v3759_v37 = vshrl.u32 %v5455_v28, 16  ;;  %v3042_v33 = vshll.u32 %v6420_v17, 16  ;;  %vm905_vm5 = vmpackc.low %vm777_vm11, %vm777_vm11 }
  0x45   : > { %v3346_v36 = vsel %vm8721_vm8, %v3337_v44, %v6422_v32  ;;  %v937_v38 = vsel %vm905_vm5, 65537, %v8730_v2  ;;  %v5400_v52 = vcombine.low %v2534_v42, %v2535_v43  ;;  %v2649_v39 = vshrl.u32 %v5399_v50, 16 }
  0x46   : > { %v6436_v54 = vrot.slane %v2359_v9, 1  ;;  %v3757_v58 = vrot.slane %v3755_v31, 1  ;;  %v3044_v19 = vrot.slane %v3042_v33, 1  ;;  %v1008_v59 = vshll.u32 %v937_v38, 16 }
  0x47   : > { %v1012_v57 = vshrl.u32 %v937_v38, 16  ;;  %v2651_v55 = vrot.slane %v2649_v39, 3  ;;  %v2652_v61 = vshll.u32 %v5399_v50, 16  ;;  %v2657_v3 = vshrl.u32 %v5400_v52, 16  ;;  %v6474_v38 = vld [vmem:[%s6170_s8 + $0x38] sm:$0xf] }
  0x48   : > { %v2362_v4 = vsel %vm8723_vm9, %v2357_v8, %v6436_v54  ;;  %v3758_v5 = vsel %vm8723_vm9, %v3753_v6, %v3757_v58  ;;  %v6441_v41 = vor.u32 %v3759_v37, %v3757_v58  ;;  %v3045_v12 = vsel %vm8723_vm9, %v3040_v13, %v3044_v19 }
  0x49   : > { %3881 = vst.msk [vmem:[#allocation2 + $0x40] sm:$0xff] %vm8722_vm4, %v3758_v5  ;;  %2471 = vrot.lane.b32.xlu1 %v2362_v4, %s6093_s11  ;;  %3154 = vrot.lane.b32.xlu0 %v3045_v12, %s6091_s9  ;;  %v1010_v7 = vrot.slane %v1008_v59, 5  ;;  %v1014_v51 = vrot.slane %v1012_v57, 4  ;;  %v2654_v44 = vrot.slane %v2652_v61, 4  ;;  %v2659_v14 = vrot.slane %v2657_v3, 3 }
  0x4a   : > { %v2660_v15 = vshll.u32 %v5400_v52, 16  ;;  %v363_v63 = vadd.s32 48, %v6154_v1  ;;  %v6450_v6 = vcombine.low %v6350_v35, %v6368_v62  ;;  %v366_v8 = vadd.s32 72, %v6154_v1 }
  0x4b   : > { %v1011_v13 = vsel %vm6223_vm14, %v6196_v27, %v1010_v7  ;;  %v1015_v20 = vor.u32 %v1014_v51, %v1010_v7  ;;  %v2655_v23 = vor.u32 %v2654_v44, %v2651_v55  ;;  %v1968_v24 = vrot.slane %v6396_v48, 4 }
  0x4c   : > { %vm6457_vm12 = vcmp.ne.s16.totalorder %v1011_v13, 0  ;;  %v2662_v42 = vrot.slane %v2660_v15, 4  ;;  %v435_v43 = vand.u32 15, %v363_v63  ;;  %2889 = vst.msk [vmem:[#allocation2 + $0x50] sm:$0xff] %vm8722_vm4, %v6450_v6  ;;  %v456_v50 = vand.u32 15, %v366_v8 }
  0x4d   : > { %3482 = vrot.lane.b32.xlu1 %v3346_v36, %s6093_s11  ;;  %v1016_v9 = vrot.slane %v1015_v20, 4  ;;  %v3218_v31 = vsel %vm6457_vm12, %v6235_v49, 0  ;;  %v2536_v48 = vsel %vm6457_vm12, %v6185_v22, 0  ;;  %v1976_v37 = vsel %vm6256_vm2, %v1968_v24, %v6182_v21 }
  0x4e   : > { %v2663_v33 = vor.u32 %v2662_v42, %v2659_v14  ;;  %vm779_vm13 = vcmp.gt.s32.totalorder %v435_v43, 0  ;;  %vm6476_vm15 = vcmp.lt.s32.totalorder %v456_v50, 15  ;;  %vm2193_vm0 = vcmp.ne.s16.totalorder %v1976_v37, 0 }
  0x4f   : > { %v1021_v36 = vsel %vm6223_vm14, %v1016_v9, %v6162_v10  ;;  %vm907_vm1 = vmpackc.low %vm779_vm13, %vm779_vm13  ;;  %v2910_v22 = vsel %vm2193_vm0, %v6387_v11, 0  ;;  %v3046_v39 = vshrl.u32 %v6420_v17, 16  ;;  %v3623_v58 = vsel %vm2193_vm0, %v6474_v38, 0 }
  0x50   : > { %vm6488_vm6 = vcmp.ne.s16.totalorder %v1021_v36, 0  ;;  %v2664_v57 = vsel %vm8721_vm8, %v2655_v23, %v2663_v33  ;;  %v939_v55 = vsel %vm907_vm1, 65537, %v8730_v2  ;;  %vm1840_vm10 = vmpackc.low %vm6476_vm15, %vm6476_vm15  ;;  %v365_v61 = vadd.s32 64, %v6154_v1 }
  0x51   : > { %v3219_v17 = vsel %vm6488_vm6, %v6350_v35, 0  ;;  %2800 = vrot.lane.b32.xlu1 %v2664_v57, %s6092_s10  ;;  %v1028_v3 = vshll.u32 %v939_v55, 16  ;;  %v1032_v4 = vshrl.u32 %v939_v55, 16  ;;  %v2537_v5 = vsel %vm6488_vm6, %v6230_v45, 0 }
  0x52   : > { %v5436_v12 = vcombine.low %v3218_v31, %v3219_v17  ;;  %v5401_v7 = vcombine.low %v2536_v48, %v2537_v5  ;;  %v1872_v51 = vsel %vm1840_vm10, 65537, %v8730_v2  ;;  %v6506_v44 = vor.u32 %v3046_v39, %v3044_v19 }
  0x53   : > { %v1030_v14 = vrot.slane %v1028_v3, 5  ;;  %v1034_v15 = vrot.slane %v1032_v4, 4  ;;  %v1979_v63 = vshrl.u32 %v1872_v51, 16  ;;  %v1982_v8 = vshll.u32 %v1872_v51, 16 }
  0x54   : > { %v3348_v13 = vshrl.u32 %v5436_v12, 16  ;;  %v3351_v20 = vshll.u32 %v5436_v12, 16  ;;  %v2666_v23 = vshrl.u32 %v5401_v7, 16  ;;  %v2669_v24 = vshll.u32 %v5401_v7, 16 }
  0x55   : > { %v1031_v42 = vsel %vm6223_vm14, %v6196_v27, %v1030_v14  ;;  %v1035_v43 = vor.u32 %v1034_v15, %v1030_v14  ;;  %v6511_v45 = vrot.slane %v1979_v63, 7  ;;  %v449_v50 = vand.u32 15, %v365_v61  ;;  %v6553_v15 = vld [vmem:[%s6170_s8 + $0x3c] sm:$0xf] }
  0x56   : > { %v3350_v9 = vrot.slane %v3348_v13, 3  ;;  %v3353_v31 = vrot.slane %v3351_v20, 4  ;;  %vm6513_vm11 = vcmp.ne.s16.totalorder %v1031_v42, 0  ;;  %v2668_v48 = vrot.slane %v2666_v23, 3 }
  0x57   : > { %v1036_v52 = vrot.slane %v1035_v43, 4  ;;  %v3220_v36 = vsel %vm6513_vm11, %v6368_v62, 0  ;;  %v2671_v39 = vrot.slane %v2669_v24, 4  ;;  %v2538_v57 = vsel %vm6513_vm11, %v6235_v49, 0 }
  0x58   : > { %v3354_v55 = vor.u32 %v3353_v31, %v3350_v9  ;;  %v1984_v61 = vor.u32 %v1982_v8, %v6511_v45  ;;  %vm781_vm5 = vcmp.gt.s32.totalorder %v449_v50, 0  ;;  %v2226_v17 = vsel %vm2193_vm0, %v6350_v35, 0 }
  0x59   : > { %v1041_v3 = vsel %vm6223_vm14, %v1036_v52, %v6162_v10  ;;  %v2672_v4 = vor.u32 %v2671_v39, %v2668_v48  ;;  %vm909_vm13 = vmpackc.low %vm781_vm5, %vm781_vm5  ;;  %v2363_v5 = vshrl.u32 %v6418_v26, 16  ;;  %v6532_v12 = vcombine.low %v6387_v11, %v6404_v16 }
  0x5a   : > { %v3355_v49 = vsel %vm8721_vm8, %v6422_v32, %v3354_v55  ;;  %vm6536_vm15 = vcmp.ne.s16.totalorder %v1041_v3, 0  ;;  %v1985_v37 = vsel %vm6256_vm2, %v6193_v25, %v1984_v61  ;;  %v941_v51 = vsel %vm909_vm13, 65537, %v8730_v2 }
  0x5b   : > { %3484 = vrot.lane.b32.xlu0 %v3355_v49, %s6093_s11  ;;  %v3221_v26 = vsel %vm6536_vm15, %v6387_v11, 0  ;;  %v2673_v14 = vsel %vm8721_vm8, %v2663_v33, %v2672_v4  ;;  %v2539_v32 = vsel %vm6536_vm15, %v6350_v35, 0  ;;  %vm6555_vm0 = vcmp.ne.s16.totalorder %v1985_v37, 0  ;;  %2890 = vst.msk [vmem:[#allocation2 + $0x68] sm:$0xff] %vm8722_vm4, %v6532_v12 }
  0x5c   : > { %v5437_v8 = vcombine.low %v3220_v36, %v3221_v26  ;;  %2802 = vrot.lane.b32.xlu1 %v2673_v14, %s6092_s10  ;;  %v5402_v13 = vcombine.low %v2538_v57, %v2539_v32  ;;  %v2911_v33 = vsel %vm6555_vm0, %v6404_v16, 0  ;;  %v3624_v35 = vsel %vm6555_vm0, %v6553_v15, 0 }
  0x5d   : > { %v5421_v20 = vcombine.low %v2910_v22, %v2911_v33  ;;  %v5456_v23 = vcombine.low %v3623_v58, %v3624_v35  ;;  %v1048_v24 = vshll.u32 %v941_v51, 16  ;;  %v1052_v42 = vshrl.u32 %v941_v51, 16 }
  0x5e   : > { %v3357_v43 = vshrl.u32 %v5437_v8, 16  ;;  %v3360_v50 = vshll.u32 %v5437_v8, 16  ;;  %v2675_v9 = vshrl.u32 %v5402_v13, 16  ;;  %v2678_v31 = vshll.u32 %v5402_v13, 16 }
  0x5f   : > { %v3050_v48 = vshll.u32 %v5421_v20, 16  ;;  %v3763_v52 = vshll.u32 %v5456_v23, 16  ;;  %v3767_v36 = vshrl.u32 %v5456_v23, 16  ;;  %v1050_v39 = vrot.slane %v1048_v24, 5 }
  0x60   : > { %v3359_v57 = vrot.slane %v3357_v43, 3  ;;  %v3362_v61 = vrot.slane %v3360_v50, 4  ;;  %v2677_v3 = vrot.slane %v2675_v9, 3  ;;  %v2680_v49 = vrot.slane %v2678_v31, 4 }
  0x61   : > { %v3052_v37 = vrot.slane %v3050_v48, 1  ;;  %v3765_v26 = vrot.slane %v3763_v52, 1  ;;  %v1051_v22 = vsel %vm6223_vm14, %v6196_v27, %v1050_v39  ;;  %v1054_v58 = vrot.slane %v1052_v42, 4 }
  0x62   : > { %v6571_v51 = vor.u32 %v3362_v61, %v3359_v57  ;;  %v6573_v14 = vor.u32 %v2680_v49, %v2677_v3  ;;  %vm6575_vm1 = vcmp.ne.s16.totalorder %v1051_v22, 0  ;;  %v2227_v8 = vsel %vm6555_vm0, %v6368_v62, 0  ;;  %v5890_v61 = vld [vmem:[%s8714_s1 + $0x48] sm:$0xff]  }
  0x63   : > { %v3053_v13 = vsel %vm8723_vm9, %v6506_v44, %v3052_v37  ;;  %v3766_v33 = vsel %vm8723_vm9, %v6441_v41, %v3765_v26  ;;  %v6586_v35 = vor.u32 %v3767_v36, %v3765_v26  ;;  %v1055_v23 = vor.u32 %v1054_v58, %v1050_v39  ;;  %v5888_v41 = vld [vmem:[%s8714_s1 + $0x40] sm:$0xff]  }
  0x64   : > { %v3364_v24 = vsel %vm8721_vm8, %v3354_v55, %v6571_v51  ;;  %v2682_v42 = vsel %vm8721_vm8, %v2672_v4, %v6573_v14  ;;  %3882 = vst.msk [vmem:[#allocation2 + $0x58] sm:$0xff] %vm8722_vm4, %v3766_v33  ;;  %v3222_v63 = vsel %vm6575_vm1, %v6404_v16, 0  ;;  %v5386_v43 = vcombine.low %v2226_v17, %v2227_v8  ;;  %5577 = vmatprep.subr.bf16.mxu0 %v5888_v41  ;;  %v6644_v58 = vld [vmem:[%s6170_s8 + $0x40] sm:$0xf] }
  0x65   : > { %3486 = vrot.lane.b32.xlu0 %v3364_v24, %s6093_s11  ;;  %2804 = vrot.lane.b32.xlu1 %v2682_v42, %s6092_s10  ;;  %v1056_v44 = vrot.slane %v1055_v23, 4  ;;  %v2365_v55 = vor.u32 %v2363_v5, %v6436_v54  ;;  %v2540_v4 = vsel %vm6575_vm1, %v6368_v62, 0  ;;  %v368_v50 = vadd.s32 88, %v6154_v1  ;;  %v5889_v62 = vld [vmem:[%s8714_s1] sm:$0xff]   ;;  %v5891_v42 = vld [vmem:[%s8714_s1 + $0x8] sm:$0xff]  }
  0x66   : > { %v2367_v9 = vshll.u32 %v5386_v43, 16  ;;  %v1986_v17 = vrot.slane %v6511_v45, 4  ;;  %v3054_v31 = vshrl.u32 %v5421_v20, 16  ;;  %v367_v48 = vadd.s32 80, %v6154_v1  ;;  %5578 = vmatpush3.bf16.msra.mxu0 %v5889_v62 }
  0x67   : > { %v1061_v52 = vsel %vm6223_vm14, %v1056_v44, %v6162_v10  ;;  %v470_v36 = vand.u32 15, %v368_v50  ;;  %v2371_v39 = vshrl.u32 %v5386_v43, 16  ;;  %v6613_v54 = vcombine.low %v6474_v38, %v6553_v15  ;;  %5579 = vmatprep.subr.bf16.mxu0 %v5890_v61 }
  0x68   : > { %vm6618_vm10 = vcmp.ne.s16.totalorder %v1061_v52, 0  ;;  %v2369_v5 = vrot.slane %v2367_v9, 1  ;;  %v1994_v20 = vsel %vm6256_vm2, %v1986_v17, %v6182_v21  ;;  %v6625_v57 = vor.u32 %v3054_v31, %v3052_v37 }
  0x69   : > { %3555 = vrot.lane.b32.xlu0 %v6450_v6, %s6092_s10  ;;  %1708 = vrot.lane.b32.xlu1 %v6246_v53, %s6091_s9  ;;  %v3223_v3 = vsel %vm6618_vm10, %v6474_v38, 0  ;;  %v2541_v49 = vsel %vm6618_vm10, %v6387_v11, 0  ;;  %vm816_vm5 = vcmp.lt.s32.totalorder %v470_v36, 15  ;;  %vm2195_vm13 = vcmp.ne.s16.totalorder %v1994_v20, 0  ;;  %2891 = vst.msk [vmem:[#allocation2 + $0x80] sm:$0xff] %vm8722_vm4, %v6613_v54 }
  0x6a   : > { %v5438_v37 = vcombine.low %v3222_v63, %v3223_v3  ;;  %v2370_v26 = vsel %vm8723_vm9, %v2365_v55, %v2369_v5  ;;  %v5403_v22 = vcombine.low %v2540_v4, %v2541_v49  ;;  %vm1842_vm0 = vmpackc.low %vm816_vm5, %vm816_vm5  ;;  %v2912_v53 = vsel %vm2195_vm13, %v6474_v38, 0  ;;  %v5892_v55 = vld [vmem:[%s8714_s1 + $0x50] sm:$0xff]   ;;  %5580 = vmatpush3.bf16.msra.mxu0 %v5891_v42 }
  0x6b   : > { %v1874_v8 = vsel %vm1842_vm0, 65537, %v8730_v2  ;;  %v3625_v33 = vsel %vm2195_vm13, %v6644_v58, 0  ;;  %v463_v23 = vand.u32 15, %v367_v48  ;;  %v2228_v24 = vsel %vm2195_vm13, %v6387_v11, 0  ;;  %5581 = vmatprep.subr.bf16.mxu0 %v5892_v55 }
  0x6c   : > { %v3366_v63 = vshrl.u32 %v5438_v37, 16  ;;  %v3369_v43 = vshll.u32 %v5438_v37, 16  ;;  %v2684_v41 = vshrl.u32 %v5403_v22, 16  ;;  %v2687_v44 = vshll.u32 %v5403_v22, 16 }
  0x6d   : > { %3156 = vrot.lane.b32.xlu0 %v3053_v13, %s6091_s9  ;;  %2473 = vrot.lane.b32.xlu1 %v2370_v26, %s6093_s11  ;;  %v1997_v4 = vshrl.u32 %v1874_v8, 16  ;;  %v2000_v50 = vshll.u32 %v1874_v8, 16  ;;  %vm783_vm5 = vcmp.gt.s32.totalorder %v463_v23, 0  ;;  %v6658_v11 = vor.u32 %v2371_v39, %v2369_v5 }
  0x6e   : > { %v3368_v9 = vrot.slane %v3366_v63, 3  ;;  %v3371_v17 = vrot.slane %v3369_v43, 4  ;;  %v2686_v31 = vrot.slane %v2684_v41, 3  ;;  %v2689_v48 = vrot.slane %v2687_v44, 4  ;;  %vm911_vm13 = vmpackc.low %vm783_vm5, %vm783_vm5  ;;  %v6692_v41 = vld [vmem:[%s6170_s8 + $0x44] sm:$0xf] }
  0x6f   : > { %v1999_v52 = vrot.slane %v1997_v4, 7  ;;  %v943_v36 = vsel %vm911_vm13, 65537, %v8730_v2  ;;  %v370_v62 = vadd.s32 104, %v6154_v1  ;;  %v369_v13 = vadd.s32 96, %v6154_v1  ;;  %v5895_v44 = vld [vmem:[%s8714_s1 + $0x18] sm:$0xff]  }
  0x70   : > { %v6663_v20 = vor.u32 %v3371_v17, %v3368_v9  ;;  %v6665_v61 = vor.u32 %v2689_v48, %v2686_v31  ;;  %v1068_v39 = vshll.u32 %v943_v36, 16  ;;  %v1072_v5 = vshrl.u32 %v943_v36, 16 }
  0x71   : > { %v2002_v3 = vor.u32 %v2000_v50, %v1999_v52  ;;  %v484_v49 = vand.u32 15, %v370_v62  ;;  %v2004_v37 = vrot.slane %v1999_v52, 4  ;;  %v477_v26 = vand.u32 15, %v369_v13  ;;  %v5893_v13 = vld [vmem:[%s8714_s1 + $0x10] sm:$0xff]  }
  0x72   : > { %v3373_v22 = vsel %vm8721_vm8, %v6571_v51, %v6663_v20  ;;  %v2691_v8 = vsel %vm8721_vm8, %v6573_v14, %v6665_v61  ;;  %v1070_v23 = vrot.slane %v1068_v39, 5  ;;  %v1074_v42 = vrot.slane %v1072_v5, 4  ;;  %5582 = vmatpush3.bf16.msra.mxu0 %v5893_v13 }
  0x73   : > { %3488 = vrot.lane.b32.xlu0 %v3373_v22, %s6093_s11  ;;  %2806 = vrot.lane.b32.xlu1 %v2691_v8, %s6092_s10  ;;  %v2003_v63 = vsel %vm6256_vm2, %v6193_v25, %v2002_v3  ;;  %vm6678_vm0 = vcmp.lt.s32.totalorder %v484_v49, 15  ;;  %v6685_v51 = vsel %vm6256_vm2, %v2004_v37, %v6182_v21  ;;  %vm6687_vm5 = vcmp.gt.s32.totalorder %v477_v26, 0  ;;  %v5894_v3 = vld [vmem:[%s8714_s1 + $0x58] sm:$0xff]  }
  0x74   : > { %vm6694_vm13 = vcmp.ne.s16.totalorder %v2003_v63, 0  ;;  %v1071_v55 = vsel %vm6223_vm14, %v6196_v27, %v1070_v23  ;;  %v1075_v4 = vor.u32 %v1074_v42, %v1070_v23  ;;  %vm1844_vm8 = vmpackc.low %vm6678_vm0, %vm6678_vm0  ;;  %vm8724_vm4 = vcmp.ne.s16.totalorder %v6685_v51, 0  ;;  %5583 = vmatprep.subr.bf16.mxu0 %v5894_v3 }
  0x75   : > { %v2913_v50 = vsel %vm6694_vm13, %v6553_v15, 0  ;;  %v3626_v9 = vsel %vm6694_vm13, %v6692_v41, 0  ;;  %vm6711_vm9 = vcmp.ne.s16.totalorder %v1071_v55, 0  ;;  %v8793_v17 = vmov 0 }
  0x76   : > { %v8794_v17 = vsel %vm6711_vm9, 4294967295, %v8793_v17  ;;  %v2229_v31 = vsel %vm6694_vm13, %v6404_v16, 0  ;;  %v5422_v48 = vcombine.low %v2912_v53, %v2913_v50  ;;  %v5457_v52 = vcombine.low %v3625_v33, %v3626_v9  ;;  %5584 = vmatpush3.bf16.msra.mxu0 %v5895_v44 }
  0x77   : > { %v1076_v36 = vrot.slane %v1075_v4, 4  ;;  %v3224_v62 = vsel %vm6711_vm9, %v6553_v15, 0  ;;  %3557 = vrot.lane.b32.xlu0 %v6532_v12, %s6092_s10  ;;  %1710 = vrot.lane.b32.xlu1 %v6450_v6, %s6091_s9  ;;  %v6728_v39 = vcombine.low %v2228_v24, %v2229_v31  ;;  %v2542_v53 = vsel %vm6711_vm9, %v6404_v16, 0  ;;  %v5896_v31 = vld [vmem:[%s8714_s1 + $0x60] sm:$0xff]  }
  0x78   : > { %v1876_v33 = vsel %vm1844_vm8, 65537, %v8730_v2  ;;  %v6737_v5 = vsel %vm8724_vm4, %v6644_v58, 0  ;;  %v3058_v49 = vshll.u32 %v5422_v48, 16  ;;  %v3771_v37 = vshll.u32 %v5457_v52, 16  ;;  %vm913_vm4 = vmpackc.low %vm6687_vm5, %vm6687_vm5  ;;  %5585 = vmatprep.subr.bf16.mxu0 %v5896_v31 }
  0x79   : > { %v3775_v6 = vshrl.u32 %v5457_v52, 16  ;;  %v1081_v24 = vsel %vm6223_vm14, %v1076_v36, %v6162_v10  ;;  %v8795_v16 = vmov 0  ;;  %v2375_v26 = vshll.u32 %v6728_v39, 16 }
  0x7a   : > { %vm6745_vm0 = vcmp.ne.s16.totalorder %v1081_v24, 0  ;;  %v2015_v22 = vshrl.u32 %v1876_v33, 16  ;;  %v2018_v8 = vshll.u32 %v1876_v33, 16  ;;  %v3060_v23 = vrot.slane %v3058_v49, 1  ;;  %v6778_v49 = vld [vmem:[%s6170_s8 + $0x48] sm:$0xf] }
  0x7b   : > { %v8796_v16 = vsel %vm6745_vm0, 4294967295, %v8795_v16  ;;  %v3773_v42 = vrot.slane %v3771_v37, 1  ;;  %v3225_v63 = vsel %vm6745_vm0, %v6644_v58, 0  ;;  %v2543_v43 = vsel %vm6745_vm0, %v6474_v38, 0  ;;  %v5897_v24 = vld [vmem:[%s8714_s1 + $0x20] sm:$0xff]  }
  0x7c   : > { %8797 = vst [vmem:[#allocation3_spill] sm:$0xff] %v8796_v16  ;;  %v5439_v55 = vcombine.low %v3224_v62, %v3225_v63  ;;  %v2377_v4 = vrot.slane %v2375_v26, 1  ;;  %v5404_v50 = vcombine.low %v2542_v53, %v2543_v43  ;;  %v6759_v9 = vrot.slane %v2015_v22, 7  ;;  %5586 = vmatpush3.bf16.msra.mxu0 %v5897_v24 }
  0x7d   : > { %vm8798_vm8 = vsmask.f32 7424  ;;  %v6768_v13 = vor.u32 %v3775_v6, %v3773_v42  ;;  %v3062_v33 = vshrl.u32 %v5422_v48, 16  ;;  %vm8800_vm0 = vcmask 261120  }
  0x7e   : > { %v3061_v52 = vsel %vm8798_vm8, %v6625_v57, %v3060_v23  ;;  %vm8799_vm13 = vmmov %vm8798_vm8  ;;  %v3375_v62 = vshrl.u32 %v5439_v55, 16  ;;  %v3378_v53 = vshll.u32 %v5439_v55, 16  ;;  %v2693_v3 = vshrl.u32 %v5404_v50, 16 }
  0x7f   : > { %v3774_v36 = vsel %vm8799_vm13, %v6586_v35, %v3773_v42  ;;  %3158 = vrot.lane.b32.xlu0 %v3061_v52, %s6091_s9  ;;  %vm8801_vm9 = vmmov %vm8798_vm8  ;;  %v2696_v35 = vshll.u32 %v5404_v50, 16  ;;  %v2020_v48 = vor.u32 %v2018_v8, %v6759_v9  ;;  %v3064_v37 = vor.u32 %v3062_v33, %v3060_v23  ;;  %v5898_v8 = vld [vmem:[%s8714_s1 + $0x68] sm:$0xff]  }
  0x80   : > { %3883 = vst.msk [vmem:[#allocation2 + $0x70] sm:$0xff] %vm8800_vm0, %v3774_v36  ;;  %v2378_v57 = vsel %vm8801_vm9, %v6658_v11, %v2377_v4  ;;  %vm8802_vm0 = vcmp.ne.s16.totalorder %v6685_v51, 0  ;;  %v3377_v11 = vrot.slane %v3375_v62, 3  ;;  %v3380_v26 = vrot.slane %v3378_v53, 4  ;;  %v6803_v50 = vld [vmem:[%s6170_s8 + $0x4c] sm:$0xf]  ;;  %5587 = vmatprep.subr.bf16.mxu0 %v5898_v8 }
  0x81   : > { %2475 = vrot.lane.b32.xlu1 %v2378_v57, %s6093_s11  ;;  %v3627_v6 = vsel %vm8802_vm0, %v6778_v49, 0  ;;  %v2695_v22 = vrot.slane %v2693_v3, 3  ;;  %v945_v42 = vsel %vm913_vm4, 65537, %v8730_v2  ;;  %v2698_v23 = vrot.slane %v2696_v35, 4  ;;  %vm8805_vm4 = vmmov %vm8802_vm0 }
  0x82   : > { %v2021_v63 = vsel %vm6256_vm2, %v6193_v25, %v2020_v48  ;;  %v1088_v43 = vshll.u32 %v945_v42, 16  ;;  %v1092_v44 = vshrl.u32 %v945_v42, 16  ;;  %v6800_v55 = vor.u32 %v3380_v26, %v3377_v11 }
  0x83   : > { %vm6805_vm9 = vcmp.ne.s16.totalorder %v2021_v63, 0  ;;  %v2230_v31 = vsel %vm8805_vm4, %v6474_v38, 0  ;;  %v2379_v52 = vshrl.u32 %v6728_v39, 16  ;;  %v6813_v36 = vor.u32 %v2698_v23, %v2695_v22 }
  0x84   : > { %v2915_v33 = vsel %vm6805_vm9, %v6692_v41, 0  ;;  %v3628_v62 = vsel %vm6805_vm9, %v6803_v50, 0  ;;  %v1090_v53 = vrot.slane %v1088_v43, 5  ;;  %vm8806_vm5 = vsmask.f32 4352  ;;  %v5899_v43 = vld [vmem:[%s8714_s1 + $0x28] sm:$0xff]  }
  0x85   : > { %v3382_v57 = vsel %vm8806_vm5, %v6663_v20, %v6800_v55  ;;  %v5423_v38 = vcombine.low %v6737_v5, %v2915_v33  ;;  %v5458_v51 = vcombine.low %v3627_v6, %v3628_v62  ;;  %v1094_v39 = vrot.slane %v1092_v44, 4  ;;  %vm8807_vm8 = vmmov %vm8806_vm5  ;;  %v5900_v33 = vld [vmem:[%s8714_s1 + $0x70] sm:$0xff]   ;;  %5588 = vmatpush3.bf16.msra.mxu0 %v5899_v43 }
  0x86   : > { %3490 = vrot.lane.b32.xlu0 %v3382_v57, %s6093_s11  ;;  %v2700_v3 = vsel %vm8807_vm8, %v6665_v61, %v6813_v36  ;;  %v1091_v35 = vsel %vm6223_vm14, %v6196_v27, %v1090_v53  ;;  %v2231_v48 = vsel %vm6805_vm9, %v6553_v15, 0  ;;  %v2381_v24 = vor.u32 %v2379_v52, %v2377_v4  ;;  %5589 = vmatprep.subr.bf16.mxu0 %v5900_v33 }
  0x87   : > { %2808 = vrot.lane.b32.xlu1 %v2700_v3, %s6092_s10  ;;  %v3066_v20 = vshll.u32 %v5423_v38, 16  ;;  %v3779_v5 = vshll.u32 %v5458_v51, 16  ;;  %v3783_v6 = vshrl.u32 %v5458_v51, 16  ;;  %v1095_v11 = vor.u32 %v1094_v39, %v1090_v53  ;;  %v5901_v3 = vld [vmem:[%s8714_s1 + $0x30] sm:$0xff]  }
  0x88   : > { %vm6836_vm13 = vcmp.ne.s16.totalorder %v1091_v35, 0  ;;  %v8808_v26 = vmov 0  ;;  %v6840_v61 = vcombine.low %v2230_v31, %v2231_v48  ;;  %v6844_v22 = vcombine.low %v6644_v58, %v6692_v41 }
  0x89   : > { %v8809_v26 = vsel %vm6836_vm13, 4294967295, %v8808_v26  ;;  %v372_v42 = vadd.s32 120, %v6154_v1  ;;  %v3068_v8 = vrot.slane %v3066_v20, 1  ;;  %v3781_v4 = vrot.slane %v3779_v5, 1  ;;  %5590 = vmatpush3.bf16.msra.mxu0 %v5901_v3 }
  0x8a   : > { %8810 = vst [vmem:[#allocation4_spill] sm:$0xff] %v8809_v26  ;;  %v1096_v23 = vrot.slane %v1095_v11, 4  ;;  %v3226_v63 = vsel %vm6836_vm13, %v6692_v41, 0  ;;  %3559 = vrot.lane.b32.xlu0 %v6613_v54, %s6092_s10  ;;  %v2383_v44 = vshll.u32 %v6840_v61, 16  ;;  %vm8811_vm0 = vcmask 261120  }
  0x8b   : > { %2892 = vst.msk [vmem:[#allocation2 + $0x98] sm:$0xff] %vm8811_vm0, %v6844_v22  ;;  %v2544_v14 = vsel %vm6836_vm13, %v6553_v15, 0  ;;  %v498_v31 = vand.u32 15, %v372_v42  ;;  %v2022_v52 = vrot.slane %v6759_v9, 4  ;;  %vm8812_vm9 = vsmask.f32 7424  ;;  %1712 = vrot.lane.b32.xlu1 %v6532_v12, %s6091_s9  ;;  %vm8814_vm5 = vmmov %vm8811_vm0 }
  0x8c   : > { %v3069_v62 = vsel %vm8812_vm9, %v3064_v37, %v3068_v8  ;;  %vm8813_vm4 = vmmov %vm8812_vm9  ;;  %v6868_v57 = vor.u32 %v3783_v6, %v3781_v4  ;;  %v1101_v15 = vsel %vm6223_vm14, %v1096_v23, %v6162_v10  ;;  %v8815_v9 = vmov 0  ;;  %v5902_v6 = vld [vmem:[%s8714_s1 + $0x78] sm:$0xff]  }
  0x8d   : > { %v3782_v53 = vsel %vm8813_vm4, %v6768_v13, %v3781_v4  ;;  %vm6876_vm8 = vcmp.ne.s16.totalorder %v1101_v15, 0  ;;  %v2385_v51 = vrot.slane %v2383_v44, 1  ;;  %vm820_vm0 = vcmp.lt.s32.totalorder %v498_v31, 15  ;;  %v6904_v44 = vld [vmem:[%s6170_s8 + $0x50] sm:$0xf]  ;;  %5591 = vmatprep.subr.bf16.mxu0 %v5902_v6 }
  0x8e   : > { %3884 = vst.msk [vmem:[#allocation2 + $0x88] sm:$0xff] %vm8814_vm5, %v3782_v53  ;;  %v8816_v9 = vsel %vm6876_vm8, 4294967295, %v8815_v9  ;;  %v2030_v13 = vsel %vm6256_vm2, %v2022_v52, %v6182_v21  ;;  %v3227_v12 = vsel %vm6876_vm8, %v6778_v49, 0  ;;  %v2545_v37 = vsel %vm6876_vm8, %v6644_v58, 0  ;;  %vm1846_vm9 = vmpackc.low %vm820_vm0, %vm820_vm0  ;;  %3160 = vrot.lane.b32.xlu0 %v3069_v62, %s6091_s9 }
  0x8f   : > { %8817 = vst [vmem:[#allocation5_spill] sm:$0xff] %v8816_v9  ;;  %vm2199_vm4 = vcmp.ne.s16.totalorder %v2030_v13, 0  ;;  %v3070_v39 = vshrl.u32 %v5423_v38, 16  ;;  %v5440_v35 = vcombine.low %v3226_v63, %v3227_v12  ;;  %vm8818_vm5 = vsmask.f32 7424 }
  0x90   : > { %v2386_v48 = vsel %vm8818_vm5, %v2381_v24, %v2385_v51  ;;  %v5405_v20 = vcombine.low %v2544_v14, %v2545_v37  ;;  %v1878_v5 = vsel %vm1846_vm9, 65537, %v8730_v2  ;;  %v2916_v42 = vsel %vm2199_vm4, %v6778_v49, 0 }
  0x91   : > { %2477 = vrot.lane.b32.xlu1 %v2386_v48, %s6093_s11  ;;  %v2033_v38 = vshrl.u32 %v1878_v5, 16  ;;  %v2036_v11 = vshll.u32 %v1878_v5, 16  ;;  %v6901_v4 = vor.u32 %v3070_v39, %v3068_v8  ;;  %v3384_v23 = vshrl.u32 %v5440_v35, 16  ;;  %v5903_v8 = vld [vmem:[%s8714_s1 + $0x38] sm:$0xff]  }
  0x92   : > { %v3387_v63 = vshll.u32 %v5440_v35, 16  ;;  %v2702_v43 = vshrl.u32 %v5405_v20, 16  ;;  %v2705_v24 = vshll.u32 %v5405_v20, 16  ;;  %v3629_v31 = vsel %vm2199_vm4, %v6904_v44, 0  ;;  %5592 = vmatpush3.bf16.msra.mxu0 %v5903_v8 }
  0x93   : > { %v2035_v14 = vrot.slane %v2033_v38, 7  ;;  %v371_v52 = vadd.s32 112, %v6154_v1  ;;  %v2232_v33 = vsel %vm2199_vm4, %v6644_v58, 0  ;;  %v3386_v62 = vrot.slane %v3384_v23, 3  ;;  %v6937_v23 = vld [vmem:[%s6170_s8 + $0x54] sm:$0xf] }
  0x94   : > { %v3389_v53 = vrot.slane %v3387_v63, 4  ;;  %v2704_v15 = vrot.slane %v2702_v43, 3  ;;  %v2707_v12 = vrot.slane %v2705_v24, 4  ;;  %v2387_v3 = vshrl.u32 %v6840_v61, 16 }
  0x95   : > { %v2038_v37 = vor.u32 %v2036_v11, %v2035_v14  ;;  %v491_v39 = vand.u32 15, %v371_v52  ;;  %v6917_v35 = vcombine.low %v6778_v49, %v6803_v50  ;;  %v374_v48 = vadd.s32 136, %v6154_v1 }
  0x96   : > { %v6919_v13 = vor.u32 %v3389_v53, %v3386_v62  ;;  %v6921_v58 = vor.u32 %v2707_v12, %v2704_v15  ;;  %v2040_v20 = vrot.slane %v2035_v14, 4  ;;  %v2389_v6 = vor.u32 %v2387_v3, %v2385_v51 }
  0x97   : > { %v2039_v5 = vsel %vm6256_vm2, %v6193_v25, %v2038_v37  ;;  %vm787_vm0 = vcmp.gt.s32.totalorder %v491_v39, 0  ;;  %vm8819_vm9 = vcmask 261120   ;;  %v373_v61 = vadd.s32 128, %v6154_v1 }
  0x98   : > { %2893 = vst.msk [vmem:[#allocation2 + $0xb0] sm:$0xff] %vm8819_vm9, %v6917_v35  ;;  %vm8820_vm4 = vsmask.f32 4352  ;;  %vm2200_vm8 = vcmp.ne.s16.totalorder %v2039_v5, 0  ;;  %vm915_vm13 = vmpackc.low %vm787_vm0, %vm787_vm0  ;;  %v512_v63 = vand.u32 15, %v374_v48  ;;  %v2048_v53 = vsel %vm6256_vm2, %v2040_v20, %v6182_v21 }
  0x99   : > { %v3391_v38 = vsel %vm8820_vm4, %v6800_v55, %v6919_v13  ;;  %vm8821_vm5 = vmmov %vm8820_vm4  ;;  %v2917_v51 = vsel %vm2200_vm8, %v6803_v50, 0  ;;  %v3630_v43 = vsel %vm2200_vm8, %v6937_v23, 0  ;;  %v947_v24 = vsel %vm915_vm13, 65537, %v8730_v2 }
  0x9a   : > { %v2709_v11 = vsel %vm8821_vm5, %v6813_v36, %v6921_v58  ;;  %3492 = vrot.lane.b32.xlu0 %v3391_v38, %s6093_s11  ;;  %v2233_v55 = vsel %vm2200_vm8, %v6692_v41, 0  ;;  %v5424_v14 = vcombine.low %v2916_v42, %v2917_v51  ;;  %v5459_v52 = vcombine.low %v3629_v31, %v3630_v43 }
  0x9b   : > { %2810 = vrot.lane.b32.xlu1 %v2709_v11, %s6092_s10  ;;  %v1108_v36 = vshll.u32 %v947_v24, 16  ;;  %v1112_v8 = vshrl.u32 %v947_v24, 16  ;;  %v6945_v62 = vcombine.low %v2232_v33, %v2233_v55  ;;  %vm822_vm0 = vcmp.lt.s32.totalorder %v512_v63, 15 }
  0x9c   : > { %v505_v15 = vand.u32 15, %v373_v61  ;;  %v3074_v12 = vshll.u32 %v5424_v14, 16  ;;  %v3787_v37 = vshll.u32 %v5459_v52, 16  ;;  %v3791_v39 = vshrl.u32 %v5459_v52, 16  ;;  %vm1848_vm9 = vmpackc.low %vm822_vm0, %vm822_vm0 }
  0x9d   : > { %v1110_v3 = vrot.slane %v1108_v36, 5  ;;  %v1114_v42 = vrot.slane %v1112_v8, 4  ;;  %v2391_v31 = vshll.u32 %v6945_v62, 16  ;;  %v1880_v33 = vsel %vm1848_vm9, 65537, %v8730_v2  ;;  %v6982_v8 = vld [vmem:[%s6170_s8 + $0x58] sm:$0xf] }
  0x9e   : > { %3561 = vrot.lane.b32.xlu0 %v6844_v22, %s6092_s10  ;;  %vm2201_vm13 = vcmp.ne.s16.totalorder %v2048_v53, 0  ;;  %v3076_v48 = vrot.slane %v3074_v12, 1  ;;  %v3789_v20 = vrot.slane %v3787_v37, 1  ;;  %v2051_v61 = vshrl.u32 %v1880_v33, 16  ;;  %v6986_v12 = vpop.permute.xlu0 %1702 }
  0x9f   : > { %1714 = vrot.lane.b32.xlu1 %v6613_v54, %s6091_s9  ;;  %v1111_v5 = vsel %vm6223_vm14, %v6196_v27, %v1110_v3  ;;  %v1115_v38 = vor.u32 %v1114_v42, %v1110_v3  ;;  %v8822_v11 = vmov 0  ;;  %v6963_v54 = vrot.slane %v2391_v31, 1 }
  0xa0   : > { %vm6959_vm8 = vcmp.ne.s16.totalorder %v1111_v5, 0  ;;  %v2054_v63 = vshll.u32 %v1880_v33, 16  ;;  %vm8825_vm4 = vsmask.f32 7424  ;;  %v6969_v24 = vor.u32 %v3791_v39, %v3789_v20 }
  0xa1   : > { %v8823_v11 = vsel %vm6959_vm8, 4294967295, %v8822_v11  ;;  %v3077_v51 = vsel %vm8825_vm4, %v6901_v4, %v3076_v48  ;;  %vm8826_vm5 = vmmov %vm8825_vm4  ;;  %v3228_v55 = vsel %vm6959_vm8, %v6803_v50, 0  ;;  %vm8827_vm0 = vcmask 261120  }
  0xa2   : > { %8824 = vst [vmem:[#allocation6_spill] sm:$0xff] %v8823_v11  ;;  %v3790_v43 = vsel %vm8826_vm5, %v6868_v57, %v3789_v20  ;;  %3162 = vrot.lane.b32.xlu0 %v3077_v51, %s6091_s9  ;;  %v1116_v52 = vrot.slane %v1115_v38, 4  ;;  %vm8828_vm9 = vmmov %vm8825_vm4  ;;  %v2546_v4 = vsel %vm6959_vm8, %v6692_v41, 0  ;;  %v6984_v57 = vrot.slane %v2051_v61, 7 }
  0xa3   : > { %3885 = vst.msk [vmem:[#allocation2 + $0xa0] sm:$0xff] %vm8827_vm0, %v3790_v43  ;;  %v2394_v36 = vsel %vm8828_vm9, %v2389_v6, %v6963_v54  ;;  %v2918_v37 = vsel %vm2201_vm13, %v6904_v44, 0  ;;  %v3078_v39 = vshrl.u32 %v5424_v14, 16  ;;  %v3631_v3 = vsel %vm2201_vm13, %v6982_v8, 0 }
  0xa4   : > { %2479 = vrot.lane.b32.xlu1 %v2394_v36, %s6093_s11  ;;  %vm789_vm4 = vcmp.gt.s32.totalorder %v505_v15, 0  ;;  %v1121_v41 = vsel %vm6223_vm14, %v1116_v52, %v6162_v10  ;;  %v2056_v6 = vor.u32 %v2054_v63, %v6984_v57  ;;  %v2234_v42 = vsel %vm2201_vm13, %v6778_v49, 0  ;;  %v7019_v63 = vld [vmem:[%s6170_s8 + $0x5c] sm:$0xf] }
  0xa5   : > { %vm917_vm5 = vmpackc.low %vm789_vm4, %vm789_vm4  ;;  %v2395_v31 = vshrl.u32 %v6945_v62, 16  ;;  %vm7000_vm0 = vcmp.ne.s16.totalorder %v1121_v41, 0  ;;  %v8829_v33 = vmov 0  ;;  %v3080_v14 = vor.u32 %v3078_v39, %v3076_v48 }
  0xa6   : > { %v8830_v33 = vsel %vm7000_vm0, 4294967295, %v8829_v33  ;;  %v949_v15 = vsel %vm917_vm5, 65537, %v8730_v2  ;;  %v7007_v20 = vcombine.low %v6904_v44, %v6937_v23  ;;  %v3229_v5 = vsel %vm7000_vm0, %v6904_v44, 0 }
  0xa7   : > { %8831 = vst [vmem:[#allocation7_spill] sm:$0xff] %v8830_v33  ;;  %v2547_v53 = vsel %vm7000_vm0, %v6778_v49, 0  ;;  %v2057_v62 = vsel %vm6256_vm2, %v6193_v25, %v2056_v6  ;;  %v1128_v61 = vshll.u32 %v949_v15, 16  ;;  %v5441_v48 = vcombine.low %v3228_v55, %v3229_v5 }
  0xa8   : > { %v5406_v38 = vcombine.low %v2546_v4, %v2547_v53  ;;  %vm7021_vm13 = vcmp.ne.s16.totalorder %v2057_v62, 0  ;;  %v1132_v43 = vshrl.u32 %v949_v15, 16  ;;  %vm8834_vm9 = vcmask 261120   ;;  %v7036_v4 = vpop.permute.xlu0 %3551 }
  0xa9   : > { %2894 = vst.msk [vmem:[#allocation2 + $0xc8] sm:$0xff] %vm8834_vm9, %v7007_v20  ;;  %v2919_v49 = vsel %vm7021_vm13, %v6937_v23, 0  ;;  %v3632_v52 = vsel %vm7021_vm13, %v7019_v63, 0  ;;  %v1130_v55 = vrot.slane %v1128_v61, 5  ;;  %v2235_v36 = vsel %vm7021_vm13, %v6803_v50, 0 }
  0xaa   : > { %v3393_v39 = vshrl.u32 %v5441_v48, 16  ;;  %v3396_v41 = vshll.u32 %v5441_v48, 16  ;;  %v2711_v6 = vshrl.u32 %v5406_v38, 16  ;;  %v2714_v15 = vshll.u32 %v5406_v38, 16  ;;  %v7049_v38 = vpop.permute.xlu1 %1704 }
  0xab   : > { %v5425_v5 = vcombine.low %v2918_v37, %v2919_v49  ;;  %v5460_v53 = vcombine.low %v3631_v3, %v3632_v52  ;;  %v1131_v62 = vsel %vm6223_vm14, %v6196_v27, %v1130_v55  ;;  %v1134_v0 = vrot.slane %v1132_v43, 4 }
  0xac   : > { %v3395_v30 = vrot.slane %v3393_v39, 3  ;;  %v3398_v2 = vrot.slane %v3396_v41, 4  ;;  %v2713_v61 = vrot.slane %v2711_v6, 3  ;;  %v2716_v33 = vrot.slane %v2714_v15, 4  ;;  %v7054_v41 = vpop.permute.xlu0 %3553 }
  0xad   : > { %v3082_v11 = vshll.u32 %v5425_v5, 16  ;;  %v3795_v51 = vshll.u32 %v5460_v53, 16  ;;  %v3799_v9 = vshrl.u32 %v5460_v53, 16  ;;  %v1135_v26 = vor.u32 %v1134_v0, %v1130_v55 }
  0xae   : > { %v7041_v16 = vor.u32 %v3398_v2, %v3395_v30  ;;  %v7043_v48 = vor.u32 %v2716_v33, %v2713_v61  ;;  %vm7045_vm4 = vcmp.ne.s16.totalorder %v1131_v62, 0  ;;  %v8835_v37 = vmov 0 }
  0xaf   : > { %v8836_v37 = vsel %vm7045_vm4, 4294967295, %v8835_v37  ;;  %v5390_v3 = vcombine.low %v2234_v42, %v2235_v36  ;;  %v3084_v43 = vrot.slane %v3082_v11, 1  ;;  %v3797_v49 = vrot.slane %v3795_v51, 1 }
  0xb0   : > { %v1136_v52 = vrot.slane %v1135_v26, 4  ;;  %v3230_v39 = vsel %vm7045_vm4, %v6937_v23, 0  ;;  %vm8837_vm5 = vsmask.f32 4352  ;;  %v2397_v30 = vor.u32 %v2395_v31, %v6963_v54 }
  0xb1   : > { %v3400_v2 = vsel %vm8837_vm5, %v6919_v13, %v7041_v16  ;;  %vm8838_vm13 = vmmov %vm8837_vm5  ;;  %v2399_v42 = vshll.u32 %v5390_v3, 16  ;;  %vm8839_vm9 = vsmask.f32 7424  ;;  %v7068_v33 = vor.u32 %v3799_v9, %v3797_v49 }
  0xb2   : > { %v2718_v0 = vsel %vm8838_vm13, %v6921_v58, %v7043_v48  ;;  %3494 = vrot.lane.b32.xlu0 %v3400_v2, %s6093_s11  ;;  %v3085_v26 = vsel %vm8839_vm9, %v3080_v14, %v3084_v43  ;;  %vm8840_vm0 = vmmov %vm8839_vm9  ;;  %v2548_v13 = vsel %vm7045_vm4, %v6803_v50, 0  ;;  %vm8841_vm5 = vcmask 261120  }
  0xb3   : > { %2812 = vrot.lane.b32.xlu1 %v2718_v0, %s6092_s10  ;;  %v3798_v11 = vsel %vm8840_vm0, %v6969_v24, %v3797_v49  ;;  %v1141_v58 = vsel %vm6223_vm14, %v1136_v52, %v6162_v10  ;;  %v2401_v54 = vrot.slane %v2399_v42, 1  ;;  %v376_v31 = vadd.s32 152, %v6154_v1 }
  0xb4   : > { %3886 = vst.msk [vmem:[#allocation2 + $0xb8] sm:$0xff] %vm8841_vm5, %v3798_v11  ;;  %v2058_v14 = vrot.slane %v6984_v57, 4  ;;  %vm7079_vm13 = vcmp.ne.s16.totalorder %v1141_v58, 0  ;;  %v8842_v55 = vmov 0  ;;  %v3086_v9 = vshrl.u32 %v5425_v5, 16  ;;  %v7091_v57 = vpop.permute.xlu1 %1706 }
  0xb5   : > { %v8843_v55 = vsel %vm7079_vm13, 4294967295, %v8842_v55  ;;  %v375_v24 = vadd.s32 144, %v6154_v1  ;;  %v2403_v36 = vshrl.u32 %v5390_v3, 16  ;;  %v3231_v50 = vsel %vm7079_vm13, %v6982_v8, 0  ;;  %v3151_v3 = vpop.permute.xlu0 %3150  ;;  %v7105_v11 = vld [vmem:[%s6170_s8 + $0x60] sm:$0xf] }
  0xb6   : > { %v2402_v6 = vsel %vm8840_vm0, %v2397_v30, %v2401_v54  ;;  %v2549_v15 = vsel %vm7079_vm13, %v6904_v44, 0  ;;  %v526_v53 = vand.u32 15, %v376_v31  ;;  %3563 = vrot.lane.b32.xlu0 %v6917_v35, %s6092_s10  ;;  %v5442_v5 = vcombine.low %v3230_v39, %v3231_v50 }
  0xb7   : > { %1716 = vrot.lane.b32.xlu1 %v6844_v22, %s6091_s9  ;;  %v5407_v62 = vcombine.low %v2548_v13, %v2549_v15  ;;  %v2066_v61 = vsel %vm6256_vm2, %v2058_v14, %v6182_v21  ;;  %v519_v51 = vand.u32 15, %v375_v24  ;;  %v7100_v49 = vor.u32 %v3086_v9, %v3084_v43 }
  0xb8   : > { %vm824_vm9 = vcmp.lt.s32.totalorder %v526_v53, 15  ;;  %vm2203_vm5 = vcmp.ne.s16.totalorder %v2066_v61, 0  ;;  %v7102_v52 = vor.u32 %v2403_v36, %v2401_v54  ;;  %v3402_v2 = vshrl.u32 %v5442_v5, 16  ;;  %v7117_v15 = vpop.permute.xlu1 %2467 }
  0xb9   : > { %v3405_v0 = vshll.u32 %v5442_v5, 16  ;;  %v2720_v30 = vshrl.u32 %v5407_v62, 16  ;;  %v2723_v42 = vshll.u32 %v5407_v62, 16  ;;  %vm1850_vm0 = vmpackc.low %vm824_vm9, %vm824_vm9  ;;  %v8844_v22 = vmov 0  }
  0xba   : > { %v1882_v39 = vsel %vm1850_vm0, 65537, %v8844_v22  ;;  %v2920_v13 = vsel %vm2203_vm5, %v6982_v8, 0  ;;  %v3633_v58 = vsel %vm2203_vm5, %v7105_v11, 0  ;;  %vm791_vm13 = vcmp.gt.s32.totalorder %v519_v51, 0  ;;  %3164 = vrot.lane.b32.xlu0 %v3085_v26, %s6091_s9  ;;  %v3153_v51 = vpop.permute.xlu0 %3152 }
  0xbb   : > { %v3404_v43 = vrot.slane %v3402_v2, 3  ;;  %v3407_v54 = vrot.slane %v3405_v0, 4  ;;  %2481 = vrot.lane.b32.xlu1 %v2402_v6, %s6093_s11  ;;  %v2722_v31 = vrot.slane %v2720_v30, 3  ;;  %v2725_v14 = vrot.slane %v2723_v42, 4  ;;  %vm919_vm4 = vmpackc.low %vm791_vm13, %vm791_vm13 }
  0xbc   : > { %v2069_v9 = vshrl.u32 %v1882_v39, 16  ;;  %v2072_v24 = vshll.u32 %v1882_v39, 16  ;;  %v951_v36 = vsel %vm919_vm4, 65537, %v8844_v22  ;;  %v2236_v50 = vsel %vm2203_vm5, %v6904_v44, 0 }
  0xbd   : > { %v7119_v53 = vor.u32 %v3407_v54, %v3404_v43  ;;  %v7121_v5 = vor.u32 %v2725_v14, %v2722_v31  ;;  %v1148_v26 = vshll.u32 %v951_v36, 16  ;;  %v1152_v62 = vshrl.u32 %v951_v36, 16 }
  0xbe   : > { %v2071_v6 = vrot.slane %v2069_v9, 7  ;;  %v7125_v2 = vcombine.low %v6982_v8, %v7019_v63  ;;  %v378_v0 = vadd.s32 168, %v6154_v1  ;;  %v8845_v44 = vsel %vm6317_vm7, %v6211_v34, 0 }
  0xbf   : > { %v8846_v61 = vsel %vm6269_vm3, %v6176_v18, 0  ;;  %vm8847_vm4 = vsmask.f32 4352  ;;  %v1150_v43 = vrot.slane %v1148_v26, 5  ;;  %v1154_v54 = vrot.slane %v1152_v62, 4  ;;  %v7170_v26 = vpop.permute.xlu1 %2469 }
  0xc0   : > { %v7136_v30 = vcombine.low %v8846_v61, %v8845_v44  ;;  %v3409_v42 = vsel %vm8847_vm4, %v7041_v16, %v7119_v53  ;;  %vm8848_vm13 = vmmov %vm8847_vm4  ;;  %v2074_v34 = vor.u32 %v2072_v24, %v2071_v6  ;;  %vm8849_vm7 = vcmask 261120   ;;  %v7174_v62 = vld [vmem:[%s6170_s8 + $0x64] sm:$0xf] }
  0xc1   : > { %v2727_v39 = vsel %vm8848_vm13, %v7043_v48, %v7121_v5  ;;  %3496 = vrot.lane.b32.xlu0 %v3409_v42, %s6093_s11  ;;  %2895 = vst.msk [vmem:[#allocation2 + $0xe0] sm:$0xff] %vm8849_vm7, %v7125_v2  ;;  %v540_v18 = vand.u32 15, %v378_v0  ;;  %v2076_v60 = vrot.slane %v2071_v6, 4  ;;  %v1151_v16 = vsel %vm6223_vm14, %v6196_v27, %v1150_v43 }
  0xc2   : > { %2814 = vrot.lane.b32.xlu1 %v2727_v39, %s6092_s10  ;;  %v1446_v29 = vshrl.u32 %v7136_v30, 16  ;;  %v1155_v48 = vor.u32 %v1154_v54, %v1150_v43  ;;  %vm8744_vm3 = vcmask 523520   ;;  %v2075_v14 = vsel %vm6256_vm2, %v6193_v25, %v2074_v34 }
  0xc3   : > { %vm7156_vm9 = vcmp.ne.s16.totalorder %v1151_v16, 0  ;;  %v8850_v9 = vmov 0  ;;  %vm7160_vm5 = vcmp.lt.s32.totalorder %v540_v18, 15  ;;  %v7167_v36 = vsel %vm6256_vm2, %v2076_v60, %v6182_v21  ;;  %3198 = vst.msk [vmem:[#allocation2 + $0x8] sm:$0xff] %vm8744_vm3, %v3151_v3  ;;  %3199 = vst.msk [vmem:[#allocation2 + $0x20] sm:$0xff] %vm8744_vm3, %v3153_v51  ;;  %v3155_v3 = vpop.permute.xlu0 %3154 }
  0xc4   : > { %v8851_v9 = vsel %vm7156_vm9, 4294967295, %v8850_v9  ;;  %vm7176_vm0 = vcmp.ne.s16.totalorder %v2075_v14, 0  ;;  %v1156_v0 = vrot.slane %v1155_v48, 4  ;;  %v3232_v44 = vsel %vm7156_vm9, %v7019_v63, 0  ;;  %vm1852_vm4 = vmpackc.low %vm7160_vm5, %vm7160_vm5  ;;  %3200 = vst.msk [vmem:[#allocation2 + $0x38] sm:$0xff] %vm8744_vm3, %v3155_v3  ;;  %v7223_v3 = vpop.permute.xlu1 %2471 }
  0xc5   : > { %8852 = vst [vmem:[#allocation8_spill] sm:$0xff] %v8851_v9  ;;  %v2550_v61 = vsel %vm7156_vm9, %v6937_v23, 0  ;;  %3565 = vrot.lane.b32.xlu0 %v7007_v20, %s6092_s10  ;;  %v2921_v51 = vsel %vm7176_vm0, %v7019_v63, 0  ;;  %v3634_v42 = vsel %vm7176_vm0, %v7174_v62, 0  ;;  %v2237_v39 = vsel %vm7176_vm0, %v6937_v23, 0 }
  0xc6   : > { %1718 = vrot.lane.b32.xlu1 %v6917_v35, %s6091_s9  ;;  %v1884_v43 = vsel %vm1852_vm4, 65537, %v8844_v22  ;;  %v5426_v54 = vcombine.low %v2920_v13, %v2921_v51  ;;  %v5461_v34 = vcombine.low %v3633_v58, %v3634_v42  ;;  %v1161_v18 = vsel %vm6223_vm14, %v1156_v0, %v6162_v10 }
  0xc7   : > { %v7207_v60 = vcombine.low %v2236_v50, %v2237_v39  ;;  %vm7209_vm13 = vcmp.ne.s16.totalorder %v1161_v18, 0  ;;  %v8857_v16 = vmov 0  ;;  %v2087_v35 = vshrl.u32 %v1884_v43, 16 }
  0xc8   : > { %v8858_v16 = vsel %vm7209_vm13, 4294967295, %v8857_v16  ;;  %v2090_v48 = vshll.u32 %v1884_v43, 16  ;;  %vm2205_vm7 = vcmp.ne.s16.totalorder %v7167_v36, 0  ;;  %v3090_v23 = vshll.u32 %v5426_v54, 16 }
  0xc9   : > { %8859 = vst [vmem:[#allocation9_spill] sm:$0xff] %v8858_v16  ;;  %v3803_v14 = vshll.u32 %v5461_v34, 16  ;;  %v3807_v24 = vshrl.u32 %v5461_v34, 16  ;;  %v3233_v13 = vsel %vm7209_vm13, %v7105_v11, 0  ;;  %v2407_v6 = vshll.u32 %v7207_v60, 16 }
  0xca   : > { %v5443_v58 = vcombine.low %v3232_v44, %v3233_v13  ;;  %v2551_v50 = vsel %vm7209_vm13, %v6982_v8, 0  ;;  %v7221_v0 = vrot.slane %v2087_v35, 7  ;;  %v3092_v51 = vrot.slane %v3090_v23, 1  ;;  %v7231_v44 = vld [vmem:[%s8714_s1 + $0x80] sm:$0xff]  }
  0xcb   : > { %v3805_v42 = vrot.slane %v3803_v14, 1  ;;  %v5408_v39 = vcombine.low %v2550_v61, %v2551_v50  ;;  %v2922_v43 = vsel %vm2205_vm7, %v7105_v11, 0  ;;  %v7233_v13 = vrot.slane %v2407_v6, 1  ;;  %5851 = vmatprep.subr.bf16.mxu1 %v7231_v44  ;;  %5743 = vmatprep.subr.bf16.mxu0 %v7231_v44 }
  0xcc   : > { %v3411_v34 = vshrl.u32 %v5443_v58, 16  ;;  %v3414_v18 = vshll.u32 %v5443_v58, 16  ;;  %v2092_v35 = vor.u32 %v2090_v48, %v7221_v0  ;;  %vm8860_vm5 = vsmask.f32 7424  ;;  %5853 = vmatpush3.bf16.msra.mxu1 %v7231_v44 }
  0xcd   : > { %v3093_v23 = vsel %vm8860_vm5, %v7100_v49, %v3092_v51  ;;  %vm8861_vm0 = vmmov %vm8860_vm5  ;;  %v7240_v14 = vor.u32 %v3807_v24, %v3805_v42  ;;  %v2729_v50 = vshrl.u32 %v5408_v39, 16  ;;  %vm8862_vm4 = vcmask 261120  }
  0xce   : > { %v3806_v61 = vsel %vm8861_vm0, %v7068_v33, %v3805_v42  ;;  %3166 = vrot.lane.b32.xlu0 %v3093_v23, %s6091_s9  ;;  %v3413_v58 = vrot.slane %v3411_v34, 3  ;;  %v3416_v48 = vrot.slane %v3414_v18, 4  ;;  %vm8863_vm5 = vmmov %vm8861_vm0  ;;  %v2732_v6 = vshll.u32 %v5408_v39, 16  ;;  %v7250_v33 = vld [vmem:[%s6170_s8 + $0x68] sm:$0xf] }
  0xcf   : > { %3887 = vst.msk [vmem:[#allocation2 + $0xd0] sm:$0xff] %vm8862_vm4, %v3806_v61  ;;  %v2410_v49 = vsel %vm8863_vm5, %v7102_v52, %v7233_v13  ;;  %v2731_v24 = vrot.slane %v2729_v50, 3  ;;  %v2093_v42 = vsel %vm6256_vm2, %v6193_v25, %v2092_v35  ;;  %v3094_v61 = vshrl.u32 %v5426_v54, 16  ;;  %v7263_v52 = vld [vmem:[%s8714_s1 + $0x88] sm:$0xff]   ;;  %v7276_v35 = vpop.permute.xlu1 %3482  ;;  %v6039_v50 = vld [vmem:[%s6170_s8 + $0x18] sm:$0xf] }
  0xd0   : > { %2483 = vrot.lane.b32.xlu1 %v2410_v49, %s6093_s11  ;;  %v3635_v34 = vsel %vm2205_vm7, %v7250_v33, 0  ;;  %v7265_v39 = vor.u32 %v3416_v48, %v3413_v58  ;;  %v2734_v18 = vrot.slane %v2732_v6, 4  ;;  %v7268_v23 = vld [vmem:[%s6170_s8 + $0x6c] sm:$0xf]  ;;  %vm7270_vm0 = vcmp.ne.s16.totalorder %v2093_v42, 0  ;;  %5852 = vmatprep.subr.bf16.mxu1 %v7263_v52 }
  0xd1   : > { %v1448_v54 = vrot.slane %v1446_v29, 3  ;;  %v2923_v49 = vsel %vm7270_vm0, %v7174_v62, 0  ;;  %v3096_v31 = vor.u32 %v3094_v61, %v3092_v51  ;;  %v3636_v58 = vsel %vm7270_vm0, %v7268_v23, 0  ;;  %5854 = vmatpush3.bf16.msra.mxu1 %v7263_v52 }
  0xd2   : > { %v8866_v48 = vshll.u32 %v7136_v30, 16  ;;  %vm8867_vm4 = vsmask.f32 4352  ;;  %v7290_v42 = vor.u32 %v2734_v18, %v2731_v24  ;;  %v7292_v16 = vcombine.low %v2922_v43, %v2923_v49  ;;  %v3909_v24 = vld [vmem:[#allocation2 + $0x70] sm:$0xff]  ;;  %v3912_v18 = vld [vmem:[#allocation2 + $0x88] sm:$0xff] }
  0xd3   : > { %v3418_v29 = vsel %vm8867_vm4, %v7119_v53, %v7265_v39  ;;  %v5462_v9 = vcombine.low %v3635_v34, %v3636_v58  ;;  %v1444_v30 = vor.u32 %v6331_v47, %v6329_v46  ;;  %v377_v61 = vadd.s32 160, %v6154_v1  ;;  %vm8868_vm5 = vmmov %vm8867_vm4 }
  0xd4   : > { %v1451_v6 = vrot.slane %v8866_v48, 4  ;;  %3498 = vrot.lane.b32.xlu0 %v3418_v29, %s6093_s11  ;;  %v2238_v53 = vsel %vm2205_vm7, %v6982_v8, 0  ;;  %v2736_v43 = vsel %vm8868_vm5, %v7121_v5, %v7290_v42  ;;  %v3098_v34 = vshll.u32 %v7292_v16, 16  ;;  %vm8870_vm3 = vmmov %vm8868_vm5  ;;  %v6038_v48 = vld [vmem:[%s6170_s8 + $0x14] sm:$0xf]  ;;  %v7325_v29 = vpop.permute.xlu1 %2800 }
  0xd5   : > { %v3815_v49 = vshrl.u32 %v5462_v9, 16  ;;  %vm8869_vm4 = vcmask 261120   ;;  %2816 = vrot.lane.b32.xlu1 %v2736_v43, %s6092_s10  ;;  %v533_v47 = vand.u32 15, %v377_v61  ;;  %v2239_v8 = vsel %vm7270_vm0, %v7019_v63, 0 }
  0xd6   : > { %v7296_v51 = vor.u32 %v1451_v6, %v1448_v54  ;;  %v3811_v54 = vshll.u32 %v5462_v9, 16  ;;  %5755 = vmatprep.mubr.msk.bf16.mxu1 %vm8869_vm4, %v3909_v24  ;;  %v2411_v36 = vshrl.u32 %v7207_v60, 16  ;;  %vm8871_vm7 = vmmov %vm8869_vm4  ;;  %v7317_v5 = vrot.slane %v3098_v34, 1 }
  0xd7   : > { %5756 = vmatmul.mubr.msk.bf16.vlgmr.msra.gmra.mrb[0].mxu1 %vm8871_vm7, %v3912_v18  ;;  %vm8872_vm5 = vmmov %vm8869_vm4  ;;  %v7320_v58 = vcombine.low %v2238_v53, %v2239_v8  ;;  %v1324_v6 = vsel %vm6457_vm12, %v6038_v48, 0  ;;  %vm793_vm0 = vcmp.gt.s32.totalorder %v533_v47, 0  ;;  %v7337_v28 = vcombine.low %v7105_v11, %v7174_v62  ;;  %v6041_v18 = vld [vmem:[%s6170_s8 + $0x20] sm:$0xf] }
  0xd8   : > { %v1453_v46 = vsel %vm8870_vm3, %v1444_v30, %v7296_v51  ;;  %v3813_v9 = vrot.slane %v3811_v54, 1  ;;  %3567 = vrot.lane.b32.xlu0 %v7125_v2, %s6092_s10  ;;  %vm8873_vm3 = vcmask 523520   ;;  %v2413_v60 = vor.u32 %v2411_v36, %v7233_v13  ;;  %vm921_vm7 = vmpackc.low %vm793_vm0, %vm793_vm0 }
  0xd9   : > { %1606 = vst.msk [vmem:[#allocation2] sm:$0xff] %vm8872_vm5, %v1453_v46  ;;  %v1325_v30 = vsel %vm6488_vm6, %v6039_v50, 0  ;;  %vm8874_vm12 = vsmask.f32 7424  ;;  %v2415_v13 = vshll.u32 %v7320_v58, 16  ;;  %1720 = vrot.lane.b32.xlu1 %v7007_v20, %s6091_s9  ;;  %v953_v59 = vsel %vm921_vm7, 65537, %v8844_v22  ;;  %vm8876_vm6 = vmmov %vm8872_vm5 }
  0xda   : > { %1751 = vst.msk [vmem:[#allocation2] sm:$0xff] %vm8873_vm3, %v6986_v12  ;;  %v3101_v61 = vsel %vm8874_vm12, %v3096_v31, %v7317_v5  ;;  %vm8875_vm4 = vmmov %vm8874_vm12  ;;  %v7343_v12 = vor.u32 %v3815_v49, %v3813_v9  ;;  %v5351_v24 = vcombine.low %v1324_v6, %v1325_v30  ;;  %v6040_v31 = vld [vmem:[%s6170_s8 + $0x1c] sm:$0xf]  ;;  %v1327_v43 = vsel %vm6536_vm15, %v6041_v18, 0  ;;  %v7365_v6 = vpop.permute.xlu1 %2802 }
  0xdb   : > { %v3814_v53 = vsel %vm8875_vm4, %v7240_v14, %v3813_v9  ;;  %2896 = vst.msk [vmem:[#allocation2 + $0xf8] sm:$0xff] %vm8876_vm6, %v7337_v28  ;;  %v1326_v14 = vsel %vm6513_vm11, %v6040_v31, 0  ;;  %v1168_v34 = vshll.u32 %v953_v59, 16  ;;  %v1172_v54 = vshrl.u32 %v953_v59, 16  ;;  %vm8877_vm11 = vmmov %vm8875_vm4  ;;  %v3915_v59 = vld [vmem:[#allocation2 + $0xa0] sm:$0xff] }
  0xdc   : > { %3888 = vst.msk [vmem:[#allocation2 + $0xe8] sm:$0xff] %vm8872_vm5, %v3814_v53  ;;  %v7358_v49 = vrot.slane %v2415_v13, 1  ;;  %v5352_v46 = vcombine.low %v1326_v14, %v1327_v43  ;;  %3168 = vrot.lane.b32.xlu0 %v3101_v61, %s6091_s9  ;;  %v1455_v20 = vshrl.u32 %v5351_v24, 16  ;;  %v1458_v47 = vshll.u32 %v5351_v24, 16  ;;  %v3485_v13 = vpop.permute.xlu0 %3484  ;;  %v3918_v24 = vld [vmem:[#allocation2 + $0xb8] sm:$0xff]  ;;  %vm8878_vm15 = vmmov %vm8872_vm5 }
  0xdd   : > { %v380_v8 = vadd.s32 184, %v6154_v1  ;;  %v2094_v36 = vrot.slane %v7221_v0, 4  ;;  %v1170_v9 = vrot.slane %v1168_v34, 5  ;;  %v1174_v19 = vrot.slane %v1172_v54, 4  ;;  %5759 = vmatprep.mubr.msk.bf16.mxu1 %vm8878_vm15, %v3915_v59  ;;  %vm8881_vm12 = vmmov %vm8872_vm5 }
  0xde   : > { %v2418_v48 = vsel %vm8877_vm11, %v2413_v60, %v7358_v49  ;;  %v1464_v7 = vshrl.u32 %v5352_v46, 16  ;;  %v1457_v50 = vrot.slane %v1455_v20, 3  ;;  %v1460_v30 = vrot.slane %v1458_v47, 4 }
  0xdf   : > { %2485 = vrot.lane.b32.xlu1 %v2418_v48, %s6093_s11  ;;  %v1467_v53 = vshll.u32 %v5352_v46, 16  ;;  %v554_v61 = vand.u32 15, %v380_v8  ;;  %v1171_v0 = vsel %vm6223_vm14, %v6196_v27, %v1170_v9  ;;  %v1175_v31 = vor.u32 %v1174_v19, %v1170_v9  ;;  %5760 = vmatmul.mubr.msk.bf16.gmra.mrb[4].mxu1 %vm8881_vm12, %v3918_v24 }
  0xe0   : > { %v1466_v14 = vrot.slane %v1464_v7, 3  ;;  %v2102_v60 = vsel %vm6256_vm2, %v2094_v36, %v6182_v21  ;;  %vm7375_vm3 = vcmp.ne.s16.totalorder %v1171_v0, 0  ;;  %v1461_v43 = vor.u32 %v1460_v30, %v1457_v50  ;;  %v3487_v19 = vpop.permute.xlu0 %3486  ;;  %v7401_v30 = vpop.permute.xlu1 %2804 }
  0xe1   : > { %v1469_v34 = vrot.slane %v1467_v53, 4  ;;  %vm828_vm0 = vcmp.lt.s32.totalorder %v554_v61, 15  ;;  %v1176_v54 = vrot.slane %v1175_v31, 4  ;;  %v3234_v46 = vsel %vm7375_vm3, %v7174_v62, 0 }
  0xe2   : > { %v2552_v20 = vsel %vm7375_vm3, %v7019_v63, 0  ;;  %vm1854_vm4 = vmpackc.low %vm828_vm0, %vm828_vm0  ;;  %vm2207_vm7 = vcmp.ne.s16.totalorder %v2102_v60, 0  ;;  %vm8882_vm5 = vsmask.f32 4352  ;;  %v7398_v63 = vld [vmem:[%s6170_s8 + $0x70] sm:$0xf] }
  0xe3   : > { %v1462_v47 = vsel %vm8882_vm5, %v7296_v51, %v1461_v43  ;;  %v7388_v8 = vor.u32 %v1469_v34, %v1466_v14  ;;  %v1886_v36 = vsel %vm1854_vm4, 65537, %v8844_v22  ;;  %v2924_v9 = vsel %vm2207_vm7, %v7250_v33, 0  ;;  %vm8886_vm0 = vmmov %vm8882_vm5 }
  0xe4   : > { %v1181_v48 = vsel %vm6223_vm14, %v1176_v54, %v6162_v10  ;;  %1607 = vst.msk [vmem:[#allocation2 + $0x18] sm:$0xff] %vm8876_vm6, %v1462_v47  ;;  %v2105_v7 = vshrl.u32 %v1886_v36, 16  ;;  %v2108_v50 = vshll.u32 %v1886_v36, 16  ;;  %v3102_v51 = vshrl.u32 %v7292_v16, 16  ;;  %vm8887_vm4 = vmmov %vm8876_vm6 }
  0xe5   : > { %vm7403_vm11 = vcmp.ne.s16.totalorder %v1181_v48, 0  ;;  %vm8885_vm15 = vcmask 523520   ;;  %v1471_v61 = vsel %vm8886_vm0, %v1461_v43, %v7388_v8  ;;  %v3637_v59 = vsel %vm2207_vm7, %v7398_v63, 0  ;;  %v7438_v43 = vpop.permute.xlu0 %3555 }
  0xe6   : > { %1752 = vst.msk [vmem:[#allocation2 + $0x18] sm:$0xff] %vm8885_vm15, %v7049_v38  ;;  %vm8745_vm12 = vcmask 785920   ;;  %v3235_v16 = vsel %vm7403_vm11, %v7250_v33, 0  ;;  %v2553_v24 = vsel %vm7403_vm11, %v7105_v11, 0  ;;  %v7420_v0 = vrot.slane %v2105_v7, 7  ;;  %vm8888_vm5 = vmmov %vm8885_vm15 }
  0xe7   : > { %1608 = vst.msk [vmem:[#allocation2 + $0x30] sm:$0xff] %vm8887_vm4, %v1471_v61  ;;  %v7423_v38 = vor.u32 %v3102_v51, %v7317_v5  ;;  %v5444_v31 = vcombine.low %v3234_v46, %v3235_v16  ;;  %v5409_v14 = vcombine.low %v2552_v20, %v2553_v24  ;;  %v379_v5 = vadd.s32 176, %v6154_v1  ;;  %v7460_v51 = vld [vmem:[%s6170_s8 + $0x74] sm:$0xf] }
  0xe8   : > { %2516 = vst.msk [vmem:[#allocation2] sm:$0xff] %vm8745_vm12, %v7117_v15  ;;  %2517 = vst.msk [vmem:[#allocation2 + $0x18] sm:$0xff] %vm8745_vm12, %v7170_v26  ;;  %v2240_v15 = vsel %vm2207_vm7, %v7105_v11, 0  ;;  %v2110_v26 = vor.u32 %v2108_v50, %v7420_v0  ;;  %v2112_v16 = vrot.slane %v7420_v0, 4 }
  0xe9   : > { %3530 = vst.msk [vmem:[#allocation2 + $0x8] sm:$0xff] %vm8745_vm12, %v7276_v35  ;;  %3531 = vst.msk [vmem:[#allocation2 + $0x20] sm:$0xff] %vm8745_vm12, %v3485_v13  ;;  %v2419_v35 = vshrl.u32 %v7320_v58, 16  ;;  %v7444_v13 = vcombine.low %v7250_v33, %v7268_v23  ;;  %v3420_v34 = vshrl.u32 %v5444_v31, 16  ;;  %v3423_v54 = vshll.u32 %v5444_v31, 16  ;;  %v3157_v50 = vpop.permute.xlu0 %3156 }
  0xea   : > { %3532 = vst.msk [vmem:[#allocation2 + $0x38] sm:$0xff] %vm8745_vm12, %v3487_v19  ;;  %v2738_v60 = vshrl.u32 %v5409_v14, 16  ;;  %v2741_v11 = vshll.u32 %v5409_v14, 16  ;;  %v2111_v46 = vsel %vm6256_vm2, %v6193_v25, %v2110_v26  ;;  %v547_v20 = vand.u32 15, %v379_v5  ;;  %vm8889_vm7 = vmmov %vm8887_vm4 }
  0xeb   : > { %1753 = vst.msk [vmem:[#allocation2 + $0x30] sm:$0xff] %vm8888_vm5, %v7091_v57  ;;  %v382_v57 = vadd.s32 200, %v6154_v1  ;;  %v7453_v58 = vor.u32 %v2419_v35, %v7358_v49  ;;  %v3422_v36 = vrot.slane %v3420_v34, 3  ;;  %v3425_v19 = vrot.slane %v3423_v54, 4  ;;  %vm8894_vm4 = vmmov %vm8888_vm5 }
  0xec   : > { %2518 = vst.msk [vmem:[#allocation2 + $0x30] sm:$0xff] %vm8745_vm12, %v7223_v3  ;;  %v7457_v3 = vpop.permute.xlu1 %1708  ;;  %v2740_v48 = vrot.slane %v2738_v60, 3  ;;  %v2743_v7 = vrot.slane %v2741_v11, 4  ;;  %vm7462_vm6 = vcmp.ne.s16.totalorder %v2111_v46, 0  ;;  %vm795_vm15 = vcmp.gt.s32.totalorder %v547_v20, 0  ;;  %v3921_v60 = vld [vmem:[#allocation2 + $0xd0] sm:$0xff] }
  0xed   : > { %2897 = vst.msk [vmem:[#allocation2 + $0x110] sm:$0xff] %vm8889_vm7, %v7444_v13  ;;  %v568_v47 = vand.u32 15, %v382_v57  ;;  %v7472_v24 = vor.u32 %v3425_v19, %v3422_v36  ;;  %v2925_v14 = vsel %vm7462_vm6, %v7268_v23, 0  ;;  %v3638_v5 = vsel %vm7462_vm6, %v7460_v51, 0  ;;  %vm923_vm5 = vmpackc.low %vm795_vm15, %vm795_vm15  ;;  %v3924_v11 = vld [vmem:[#allocation2 + $0xe8] sm:$0xff] }
  0xee   : > { %3201 = vst.msk [vmem:[#allocation2 + $0x50] sm:$0xff] %vm8894_vm4, %v3157_v50  ;;  %v7474_v31 = vor.u32 %v2743_v7, %v2740_v48  ;;  %v5428_v26 = vcombine.low %v2924_v9, %v2925_v14  ;;  %v5463_v35 = vcombine.low %v3637_v59, %v3638_v5  ;;  %v955_v57 = vsel %vm923_vm5, 65537, %v8844_v22  ;;  %v3489_v50 = vpop.permute.xlu0 %3488 }
  0xef   : > { %vm7466_vm0 = vcmp.lt.s32.totalorder %v568_v47, 15  ;;  %v2241_v0 = vsel %vm7462_vm6, %v7174_v62, 0  ;;  %vm8895_vm4 = vsmask.f32 4352  ;;  %v1188_v9 = vshll.u32 %v955_v57, 16 }
  0xf0   : > { %vm1856_vm7 = vmpackc.low %vm7466_vm0, %vm7466_vm0  ;;  %v3427_v34 = vsel %vm8895_vm4, %v7265_v39, %v7472_v24  ;;  %v1192_v59 = vshrl.u32 %v955_v57, 16  ;;  %v3106_v46 = vshll.u32 %v5428_v26, 16  ;;  %v3819_v20 = vshll.u32 %v5463_v35, 16  ;;  %v7499_v19 = vpop.permute.xlu1 %2473 }
  0xf1   : > { %vm8896_vm12 = vmmov %vm8895_vm4  ;;  %3500 = vrot.lane.b32.xlu0 %v3427_v34, %s6093_s11  ;;  %v3823_v47 = vshrl.u32 %v5463_v35, 16  ;;  %v7497_v36 = vcombine.low %v2240_v15, %v2241_v0  ;;  %v1190_v39 = vrot.slane %v1188_v9, 5  ;;  %v2120_v7 = vsel %vm6256_vm2, %v2112_v16, %v6182_v21 }
  0xf2   : > { %v2745_v54 = vsel %vm8896_vm12, %v7290_v42, %v7474_v31  ;;  %v1194_v48 = vrot.slane %v1192_v59, 4  ;;  %v1888_v42 = vsel %vm1856_vm7, 65537, %v8844_v22  ;;  %vm8897_vm12 = vcmask 261120  }
  0xf3   : > { %2818 = vrot.lane.b32.xlu1 %v2745_v54, %s6092_s10  ;;  %5763 = vmatprep.mubr.msk.bf16.mxu1 %vm8897_vm12, %v3921_v60  ;;  %v3108_v15 = vrot.slane %v3106_v46, 1  ;;  %v3821_v61 = vrot.slane %v3819_v20, 1  ;;  %v2423_v14 = vshll.u32 %v7497_v36, 16  ;;  %v2123_v5 = vshrl.u32 %v1888_v42, 16  ;;  %vm8899_vm15 = vmmov %vm8897_vm12  ;;  %v7539_v60 = vld [vmem:[%s6170_s8 + $0x78] sm:$0xf] }
  0xf4   : > { %vm8898_vm6 = vcmask 785920   ;;  %5764 = vmatmul.mubr.msk.bf16.gmra.mrb[8].mxu1 %vm8899_vm15, %v3924_v11  ;;  %v1191_v49 = vsel %vm6223_vm14, %v6196_v27, %v1190_v39  ;;  %v1195_v35 = vor.u32 %v1194_v48, %v1190_v39  ;;  %v2126_v57 = vshll.u32 %v1888_v42, 16  ;;  %v3558_v11 = vpop.permute.xlu0 %3557  ;;  %v7547_v39 = vpop.permute.xlu1 %2806 }
  0xf5   : > { %3533 = vst.msk [vmem:[#allocation2 + $0x50] sm:$0xff] %vm8898_vm6, %v3489_v50  ;;  %vm2209_vm0 = vcmp.ne.s16.totalorder %v2120_v7, 0  ;;  %3569 = vrot.lane.b32.xlu0 %v7337_v28, %s6092_s10  ;;  %vm8900_vm5 = vsmask.f32 7424  ;;  %v7523_v34 = vor.u32 %v3823_v47, %v3821_v61  ;;  %vm7527_vm4 = vcmp.ne.s16.totalorder %v1191_v49, 0 }
  0xf6   : > { %v3109_v16 = vsel %vm8900_vm5, %v7423_v38, %v3108_v15  ;;  %vm8901_vm7 = vmmov %vm8900_vm5  ;;  %v1196_v9 = vrot.slane %v1195_v35, 4  ;;  %v3236_v59 = vsel %vm7527_vm4, %v7268_v23, 0  ;;  %v2425_v38 = vrot.slane %v2423_v14, 1 }
  0xf7   : > { %v3822_v0 = vsel %vm8901_vm7, %v7343_v12, %v3821_v61  ;;  %1722 = vrot.lane.b32.xlu1 %v7125_v2, %s6091_s9  ;;  %v2554_v12 = vsel %vm7527_vm4, %v7174_v62, 0  ;;  %v7541_v2 = vrot.slane %v2123_v5, 7  ;;  %v2926_v46 = vsel %vm2209_vm0, %v7398_v63, 0  ;;  %vm8904_vm6 = vmmov %vm8900_vm5 }
  0xf8   : > { %3889 = vst.msk [vmem:[#allocation2 + $0x100] sm:$0xff] %vm8897_vm12, %v3822_v0  ;;  %v3110_v20 = vshrl.u32 %v5428_v26, 16  ;;  %v3639_v47 = vsel %vm2209_vm0, %v7539_v60, 0  ;;  %v1201_v48 = vsel %vm6223_vm14, %v1196_v9, %v6162_v10  ;;  %v2426_v62 = vsel %vm8904_vm6, %v7453_v58, %v2425_v38  ;;  %v3159_v49 = vpop.permute.xlu0 %3158  ;;  %v7605_v9 = vld [vmem:[%s6170_s8 + $0x7c] sm:$0xf] }
  0xf9   : > { %vm8746_vm15 = vcmask 1048320   ;;  %v381_v42 = vadd.s32 192, %v6154_v1  ;;  %3170 = vrot.lane.b32.xlu0 %v3109_v16, %s6091_s9  ;;  %vm7556_vm5 = vcmp.ne.s16.totalorder %v1201_v48, 0  ;;  %v8905_v50 = vmov 0 }
  0xfa   : > { %v8906_v50 = vsel %vm7556_vm5, 4294967295, %v8905_v50  ;;  %v2128_v26 = vor.u32 %v2126_v57, %v7541_v2  ;;  %v7562_v61 = vor.u32 %v3110_v20, %v3108_v15  ;;  %3599 = vst.msk [vmem:[#allocation2 + $0x8] sm:$0xff] %vm8746_vm15, %v7036_v4  ;;  %3600 = vst.msk [vmem:[#allocation2 + $0x20] sm:$0xff] %vm8746_vm15, %v7054_v41  ;;  %v2242_v58 = vsel %vm2209_vm0, %v7250_v33, 0 }
  0xfb   : > { %8907 = vst [vmem:[#allocation10_spill] sm:$0xff] %v8906_v50  ;;  %2487 = vrot.lane.b32.xlu1 %v2426_v62, %s6093_s11  ;;  %2849 = vst.msk [vmem:[#allocation2] sm:$0xff] %vm8746_vm15, %v7325_v29  ;;  %v3237_v4 = vsel %vm7556_vm5, %v7398_v63, 0  ;;  %v2555_v41 = vsel %vm7556_vm5, %v7250_v33, 0  ;;  %v561_v29 = vand.u32 15, %v381_v42  ;;  %vm8912_vm6 = vcmask 261120  }
  0xfc   : > { %2850 = vst.msk [vmem:[#allocation2 + $0x18] sm:$0xff] %vm8746_vm15, %v7365_v6  ;;  %3601 = vst.msk [vmem:[#allocation2 + $0x38] sm:$0xff] %vm8746_vm15, %v7438_v43  ;;  %v2427_v6 = vshrl.u32 %v7497_v36, 16  ;;  %v5445_v7 = vcombine.low %v3236_v59, %v3237_v4  ;;  %v5410_v15 = vcombine.low %v2554_v12, %v2555_v41  ;;  %v7591_v43 = vcombine.low %v7398_v63, %v7460_v51  ;;  %v7613_v59 = vpop.permute.xlu1 %1710 }
  0xfd   : > { %2851 = vst.msk [vmem:[#allocation2 + $0x30] sm:$0xff] %vm8746_vm15, %v7401_v30  ;;  %3602 = vst.msk [vmem:[#allocation2 + $0x50] sm:$0xff] %vm8746_vm15, %v3558_v11  ;;  %v2129_v30 = vsel %vm6256_vm2, %v6193_v25, %v2128_v26  ;;  %vm7597_vm7 = vcmp.gt.s32.totalorder %v561_v29, 0  ;;  %v384_v36 = vadd.s32 216, %v6154_v1  ;;  %vm8913_vm15 = vcmask 523520  }
  0xfe   : > { %vm7593_vm0 = vcmp.ne.s16.totalorder %v2129_v30, 0  ;;  %v7601_v5 = vor.u32 %v2427_v6, %v2425_v38  ;;  %v3429_v35 = vshrl.u32 %v5445_v7, 16  ;;  %v3432_v57 = vshll.u32 %v5445_v7, 16  ;;  %vm925_vm12 = vmpackc.low %vm7597_vm7, %vm7597_vm7  ;;  %2898 = vst.msk [vmem:[#allocation2 + $0x128] sm:$0xff] %vm8912_vm6, %v7591_v43 }
  0xff   : > { %v2747_v16 = vshrl.u32 %v5410_v15, 16  ;;  %v2750_v0 = vshll.u32 %v5410_v15, 16  ;;  %3202 = vst.msk [vmem:[#allocation2 + $0x68] sm:$0xff] %vm8913_vm15, %v3159_v49  ;;  %v2927_v38 = vsel %vm7593_vm0, %v7460_v51, 0  ;;  %v3640_v12 = vsel %vm7593_vm0, %v7605_v9, 0 }
 0x100   : > { %v957_v11 = vsel %vm925_vm12, 65537, %v8844_v22  ;;  %v2243_v20 = vsel %vm7593_vm0, %v7268_v23, 0  ;;  %v3431_v48 = vrot.slane %v3429_v35, 3  ;;  %v3434_v62 = vrot.slane %v3432_v57, 4 }
 0x101   : > { %v2749_v42 = vrot.slane %v2747_v16, 3  ;;  %v2752_v26 = vrot.slane %v2750_v0, 4  ;;  %v7625_v4 = vcombine.low %v2926_v46, %v2927_v38  ;;  %v5464_v41 = vcombine.low %v3639_v47, %v3640_v12  ;;  %v3896_v7 = vld [vmem:[#allocation2 + $0x8] sm:$0xff]  ;;  %v3899_v46 = vld [vmem:[#allocation2 + $0x20] sm:$0xff]  ;;  %v7641_v12 = vpop.permute.xlu1 %2475 }
 0x102   : > { %v1208_v29 = vshll.u32 %v957_v11, 16  ;;  %v1212_v6 = vshrl.u32 %v957_v11, 16  ;;  %v3895_v15 = vld [vmem:[#allocation2] sm:$0xff]  ;;  %v7627_v30 = vor.u32 %v3434_v62, %v3431_v48  ;;  %v7631_v49 = vcombine.low %v2242_v58, %v2243_v20  ;;  %4174 = vmatprep.mubr.bf16.mxu0 %v3896_v7 }
 0x103   : > { %v7629_v33 = vor.u32 %v2752_v26, %v2749_v42  ;;  %v582_v50 = vand.u32 15, %v384_v36  ;;  %v3114_v14 = vshll.u32 %v7625_v4, 16  ;;  %v3827_v35 = vshll.u32 %v5464_v41, 16  ;;  %4175 = vmatmul.mubr.bf16.vlgmr.msra.gmra.mrb[0].mxu0 %v3895_v15  ;;  %v3491_v36 = vpop.permute.xlu0 %3490 }
 0x104   : > { %v3831_v57 = vshrl.u32 %v5464_v41, 16  ;;  %v1210_v16 = vrot.slane %v1208_v29, 5  ;;  %vm8914_vm15 = vsmask.f32 4352  ;;  %v1214_v38 = vrot.slane %v1212_v6, 4  ;;  %4182 = vmatprep.mubr.bf16.mxu0 %v3899_v46  ;;  %5744 = vmatpush3.bf16.msra.mxu0 %v7231_v44 }
 0x105   : > { %v3436_v47 = vsel %vm8914_vm15, %v7472_v24, %v7627_v30  ;;  %vm8915_vm0 = vmmov %vm8914_vm15  ;;  %v2431_v58 = vshll.u32 %v7631_v49, 16  ;;  %v3116_v11 = vrot.slane %v3114_v14, 1  ;;  %v3829_v20 = vrot.slane %v3827_v35, 1  ;;  %5745 = vmatprep.subr.bf16.mxu0 %v7263_v52 }
 0x106   : > { %v2754_v0 = vsel %vm8915_vm0, %v7474_v31, %v7629_v33  ;;  %3502 = vrot.lane.b32.xlu0 %v3436_v47, %s6093_s11  ;;  %v1211_v24 = vsel %vm6223_vm14, %v6196_v27, %v1210_v16  ;;  %vm7649_vm7 = vcmp.lt.s32.totalorder %v582_v50, 15  ;;  %vm8918_vm12 = vcmask 785920   ;;  %v7701_v47 = vld [vmem:[%s6170_s8 + $0x80] sm:$0xf] }
 0x107   : > { %2820 = vrot.lane.b32.xlu1 %v2754_v0, %s6092_s10  ;;  %3534 = vst.msk [vmem:[#allocation2 + $0x68] sm:$0xff] %vm8918_vm12, %v3491_v36  ;;  %v1215_v48 = vor.u32 %v1214_v38, %v1210_v16  ;;  %vm7654_vm6 = vcmp.ne.s16.totalorder %v1211_v24, 0  ;;  %v8919_v62 = vmov 0  ;;  %v2433_v44 = vrot.slane %v2431_v58, 1  ;;  %vm1858_vm15 = vmpackc.low %vm7649_vm7, %vm7649_vm7  ;;  %v3560_v15 = vpop.permute.xlu0 %3559  ;;  %v7694_v16 = vpop.permute.xlu1 %2808  ;;  %v3902_v58 = vld [vmem:[#allocation2 + $0x38] sm:$0xff] }
 0x108   : > { %v8920_v62 = vsel %vm7654_vm6, 4294967295, %v8919_v62  ;;  %v2130_v42 = vrot.slane %v7541_v2, 4  ;;  %vm8921_vm0 = vsmask.f32 7424  ;;  %v7667_v41 = vor.u32 %v3831_v57, %v3829_v20  ;;  %5746 = vmatpush3.bf16.msra.mxu0 %v7263_v52 }
 0x109   : > { %v3117_v50 = vsel %vm8921_vm0, %v7562_v61, %v3116_v11  ;;  %vm8922_vm5 = vmmov %vm8921_vm0  ;;  %v3238_v29 = vsel %vm7654_vm6, %v7460_v51, 0  ;;  %vm8923_vm12 = vcmask 261120   ;;  %v1216_v6 = vrot.slane %v1215_v48, 4 }
 0x10a   : > { %v3830_v26 = vsel %vm8922_vm5, %v7523_v34, %v3829_v20  ;;  %vm8924_vm7 = vmmov %vm8921_vm0  ;;  %v2556_v7 = vsel %vm7654_vm6, %v7268_v23, 0  ;;  %v1890_v61 = vsel %vm1858_vm15, 65537, %v8844_v22  ;;  %3571 = vrot.lane.b32.xlu0 %v7444_v13, %s6092_s10  ;;  %v2138_v34 = vsel %vm6256_vm2, %v2130_v42, %v6182_v21 }
 0x10b   : > { %3890 = vst.msk [vmem:[#allocation2 + $0x118] sm:$0xff] %vm8923_vm12, %v3830_v26  ;;  %v2434_v2 = vsel %vm8924_vm7, %v7601_v5, %v2433_v44  ;;  %1724 = vrot.lane.b32.xlu1 %v7337_v28, %s6091_s9  ;;  %v2141_v5 = vshrl.u32 %v1890_v61, 16  ;;  %v2144_v14 = vshll.u32 %v1890_v61, 16  ;;  %v3118_v23 = vshrl.u32 %v7625_v4, 16  ;;  %v3898_v28 = vld [vmem:[#allocation2 + $0x18] sm:$0xff]  ;;  %v3161_v31 = vpop.permute.xlu0 %3160 }
 0x10c   : > { %vm8925_vm5 = vcmask 1048320   ;;  %v1221_v52 = vsel %vm6223_vm14, %v1216_v6, %v6162_v10  ;;  %vm2211_vm15 = vcmp.ne.s16.totalorder %v2138_v34, 0  ;;  %v383_v35 = vadd.s32 208, %v6154_v1  ;;  %4183 = vmatmul.mubr.bf16.gmra.mrb[4].mxu0 %v3898_v28  ;;  %v3927_v6 = vld [vmem:[#allocation2 + $0x100] sm:$0xff] }
 0x10d   : > { %3603 = vst.msk [vmem:[#allocation2 + $0x68] sm:$0xff] %vm8925_vm5, %v3560_v15  ;;  %v2435_v57 = vshrl.u32 %v7631_v49, 16  ;;  %vm7696_vm0 = vcmp.ne.s16.totalorder %v1221_v52, 0  ;;  %v8926_v46 = vmov 0  ;;  %v7703_v4 = vrot.slane %v2141_v5, 7  ;;  %4190 = vmatprep.mubr.bf16.mxu0 %v3902_v58 }
 0x10e   : > { %v8927_v46 = vsel %vm7696_vm0, 4294967295, %v8926_v46  ;;  %v2928_v0 = vsel %vm2211_vm15, %v7539_v60, 0  ;;  %v7707_v38 = vor.u32 %v3118_v23, %v3116_v11  ;;  %v3239_v49 = vsel %vm7696_vm0, %v7539_v60, 0  ;;  %3172 = vrot.lane.b32.xlu0 %v3117_v50, %s6091_s9  ;;  %v6042_v50 = vld [vmem:[%s6170_s8 + $0x24] sm:$0xf] }
 0x10f   : > { %v2557_v36 = vsel %vm7696_vm0, %v7398_v63, 0  ;;  %v3641_v20 = vsel %vm2211_vm15, %v7701_v47, 0  ;;  %v575_v24 = vand.u32 15, %v383_v35  ;;  %v5446_v11 = vcombine.low %v3238_v29, %v3239_v49  ;;  %2489 = vrot.lane.b32.xlu1 %v2434_v2, %s6093_s11  ;;  %v6043_v2 = vld [vmem:[%s6170_s8 + $0x28] sm:$0xf] }
 0x110   : > { %v5411_v48 = vcombine.low %v2556_v7, %v2557_v36  ;;  %v2146_v42 = vor.u32 %v2144_v14, %v7703_v4  ;;  %v2244_v26 = vsel %vm2211_vm15, %v7398_v63, 0  ;;  %vm8928_vm12 = vcmask 523520   ;;  %v7740_v23 = vld [vmem:[%s6170_s8 + $0x84] sm:$0xf] }
 0x111   : > { %3203 = vst.msk [vmem:[#allocation2 + $0x80] sm:$0xff] %vm8928_vm12, %v3161_v31  ;;  %vm7723_vm7 = vcmp.gt.s32.totalorder %v575_v24, 0  ;;  %v7727_v15 = vor.u32 %v2435_v57, %v2433_v44  ;;  %v1328_v29 = vsel %vm6575_vm1, %v6042_v50, 0  ;;  %v1329_v7 = vsel %vm6618_vm10, %v6043_v2, 0  ;;  %v7750_v57 = vpop.permute.xlu1 %1712  ;;  %v3905_v24 = vld [vmem:[#allocation2 + $0x50] sm:$0xff] }
 0x112   : > { %vm8931_vm5 = vcmask 261120   ;;  %v3438_v63 = vshrl.u32 %v5446_v11, 16  ;;  %v3441_v34 = vshll.u32 %v5446_v11, 16  ;;  %v2756_v5 = vshrl.u32 %v5411_v48, 16  ;;  %vm927_vm15 = vmpackc.low %vm7723_vm7, %vm7723_vm7  ;;  %v3930_v44 = vld [vmem:[#allocation2 + $0x118] sm:$0xff] }
 0x113   : > { %5767 = vmatprep.mubr.msk.bf16.mxu1 %vm8931_vm5, %v3927_v6  ;;  %v2759_v14 = vshll.u32 %v5411_v48, 16  ;;  %v2147_v32 = vsel %vm6256_vm2, %v6193_v25, %v2146_v42  ;;  %v959_v45 = vsel %vm927_vm15, 65537, %v8844_v22  ;;  %v5353_v52 = vcombine.low %v1328_v29, %v1329_v7  ;;  %vm8932_vm1 = vmmov %vm8931_vm5  ;;  %v3901_v6 = vld [vmem:[#allocation2 + $0x30] sm:$0xff] }
 0x114   : > { %v7748_v35 = vcombine.low %v7539_v60, %v7605_v9  ;;  %5768 = vmatmul.mubr.msk.bf16.gmra.mrb[12].mxu1 %vm8932_vm1, %v3930_v44  ;;  %v3440_v28 = vrot.slane %v3438_v63, 3  ;;  %v3443_v58 = vrot.slane %v3441_v34, 4  ;;  %v2758_v49 = vrot.slane %v2756_v5, 3  ;;  %vm8935_vm12 = vmmov %vm8932_vm1  ;;  %4191 = vmatmul.mubr.bf16.gmra.mrb[8].mxu0 %v3901_v6 }
 0x115   : > { %v2761_v36 = vrot.slane %v2759_v14, 4  ;;  %vm7753_vm10 = vcmp.ne.s16.totalorder %v2147_v32, 0  ;;  %v1228_v11 = vshll.u32 %v959_v45, 16  ;;  %v1232_v48 = vshrl.u32 %v959_v45, 16  ;;  %4198 = vmatprep.mubr.bf16.mxu0 %v3905_v24 }
 0x116   : > { %v1473_v42 = vshrl.u32 %v5353_v52, 16  ;;  %2899 = vst.msk [vmem:[#allocation2 + $0x140] sm:$0xff] %vm8935_vm12, %v7748_v35  ;;  %v7759_v61 = vor.u32 %v3443_v58, %v3440_v28  ;;  %v2929_v29 = vsel %vm7753_vm10, %v7605_v9, 0  ;;  %v3642_v2 = vsel %vm7753_vm10, %v7740_v23, 0  ;;  %v3493_v28 = vpop.permute.xlu0 %3492 }
 0x117   : > { %v7761_v50 = vor.u32 %v2761_v36, %v2758_v49  ;;  %v7769_v7 = vcombine.low %v2928_v0, %v2929_v29  ;;  %v5465_v63 = vcombine.low %v3641_v20, %v3642_v2  ;;  %v1230_v34 = vrot.slane %v1228_v11, 5 }
 0x118   : > { %v1234_v5 = vrot.slane %v1232_v48, 4  ;;  %vm8936_vm7 = vsmask.f32 4352  ;;  %v2245_v32 = vsel %vm7753_vm10, %v7460_v51, 0  ;;  %v1475_v45 = vrot.slane %v1473_v42, 3 }
 0x119   : > { %v3445_v14 = vsel %vm8936_vm7, %v7627_v30, %v7759_v61  ;;  %vm8937_vm5 = vmmov %vm8936_vm7  ;;  %v3122_v0 = vshll.u32 %v7769_v7, 16  ;;  %v3835_v20 = vshll.u32 %v5465_v63, 16  ;;  %v3839_v58 = vshrl.u32 %v5465_v63, 16 }
 0x11a   : > { %v2763_v44 = vsel %vm8937_vm5, %v7629_v33, %v7761_v50  ;;  %3504 = vrot.lane.b32.xlu0 %v3445_v14, %s6093_s11  ;;  %v1231_v30 = vsel %vm6223_vm14, %v6196_v27, %v1230_v34  ;;  %vm8938_vm15 = vcmask 785920   ;;  %v7787_v33 = vpop.permute.xlu1 %2477  ;;  %v1235_v49 = vor.u32 %v1234_v5, %v1230_v34  ;;  %v3562_v5 = vpop.permute.xlu0 %3561 }
 0x11b   : > { %2822 = vrot.lane.b32.xlu1 %v2763_v44, %s6092_s10  ;;  %3535 = vst.msk [vmem:[#allocation2 + $0x80] sm:$0xff] %vm8938_vm15, %v3493_v28  ;;  %vm7789_vm1 = vcmp.ne.s16.totalorder %v1231_v30, 0  ;;  %v8939_v36 = vmov 0  ;;  %v7793_v24 = vcombine.low %v2244_v26, %v2245_v32  ;;  %v1476_v31 = vshll.u32 %v5353_v52, 16 }
 0x11c   : > { %v8940_v36 = vsel %vm7789_vm1, 4294967295, %v8939_v36  ;;  %v3124_v11 = vrot.slane %v3122_v0, 1  ;;  %v3837_v48 = vrot.slane %v3835_v20, 1  ;;  %v3240_v42 = vsel %vm7789_vm1, %v7605_v9, 0 }
 0x11d   : > { %v2558_v6 = vsel %vm7789_vm1, %v7460_v51, 0  ;;  %v1236_v29 = vrot.slane %v1235_v49, 4  ;;  %v2439_v2 = vshll.u32 %v7793_v24, 16  ;;  %v1478_v63 = vrot.slane %v1476_v31, 4 }
 0x11e   : > { %v386_v34 = vadd.s32 232, %v6154_v1  ;;  %3573 = vrot.lane.b32.xlu0 %v7591_v43, %s6092_s10  ;;  %vm8941_vm10 = vsmask.f32 7424  ;;  %v7809_v14 = vor.u32 %v3839_v58, %v3837_v48  ;;  %v2148_v51 = vrot.slane %v7703_v4, 4  ;;  %v7830_v20 = vpop.permute.xlu1 %2810 }
 0x11f   : > { %v3125_v26 = vsel %vm8941_vm10, %v7707_v38, %v3124_v11  ;;  %vm8942_vm12 = vmmov %vm8941_vm10  ;;  %1726 = vrot.lane.b32.xlu1 %v7444_v13, %s6091_s9  ;;  %vm8943_vm7 = vcmask 1048320   ;;  %vm8944_vm5 = vcmask 261120   ;;  %v1241_v44 = vsel %vm6223_vm14, %v1236_v29, %v6162_v10  ;;  %v7847_v29 = vld [vmem:[%s6170_s8 + $0x88] sm:$0xf] }
 0x120   : > { %v3838_v52 = vsel %vm8942_vm12, %v7667_v41, %v3837_v48  ;;  %3604 = vst.msk [vmem:[#allocation2 + $0x80] sm:$0xff] %vm8943_vm7, %v3562_v5  ;;  %v2441_v32 = vrot.slane %v2439_v2, 1  ;;  %v7819_v38 = vor.u32 %v1478_v63, %v1475_v45  ;;  %v596_v28 = vand.u32 15, %v386_v34  ;;  %vm8948_vm7 = vmmov %vm8944_vm5 }
 0x121   : > { %3891 = vst.msk [vmem:[#allocation2 + $0x130] sm:$0xff] %vm8944_vm5, %v3838_v52  ;;  %vm7821_vm15 = vcmp.ne.s16.totalorder %v1241_v44, 0  ;;  %v8945_v41 = vmov 0  ;;  %v2156_v13 = vsel %vm6256_vm2, %v2148_v51, %v6182_v21  ;;  %v3126_v4 = vshrl.u32 %v7769_v7, 16  ;;  %v3163_v7 = vpop.permute.xlu0 %3162 }
 0x122   : > { %v8946_v41 = vsel %vm7821_vm15, 4294967295, %v8945_v41  ;;  %v385_v0 = vadd.s32 224, %v6154_v1  ;;  %v3241_v45 = vsel %vm7821_vm15, %v7701_v47, 0  ;;  %v2442_v58 = vsel %vm8941_vm10, %v7727_v15, %v2441_v32  ;;  %3174 = vrot.lane.b32.xlu0 %v3125_v26, %s6091_s9 }
 0x123   : > { %vm8947_vm12 = vsmask.f32 4352  ;;  %v2559_v49 = vsel %vm7821_vm15, %v7539_v60, 0  ;;  %v5447_v31 = vcombine.low %v3240_v42, %v3241_v45  ;;  %2491 = vrot.lane.b32.xlu1 %v2442_v58, %s6093_s11  ;;  %vm834_vm5 = vcmp.lt.s32.totalorder %v596_v28, 15 }
 0x124   : > { %v1480_v30 = vsel %vm8947_vm12, %v7388_v8, %v7819_v38  ;;  %v5412_v48 = vcombine.low %v2558_v6, %v2559_v49  ;;  %vm2213_vm10 = vcmp.ne.s16.totalorder %v2156_v13, 0  ;;  %vm8949_vm1 = vcmask 523520   ;;  %vm1860_vm0 = vmpackc.low %vm834_vm5, %vm834_vm5  ;;  %v6044_v49 = vld [vmem:[%s6170_s8 + $0x2c] sm:$0xf] }
 0x125   : > { %1609 = vst.msk [vmem:[#allocation2 + $0x48] sm:$0xff] %vm8948_vm7, %v1480_v30  ;;  %vm8950_vm12 = vmmov %vm8949_vm1  ;;  %v7854_v8 = vsel %vm2213_vm10, %v7701_v47, 0  ;;  %v7856_v15 = vor.u32 %v3126_v4, %v3124_v11  ;;  %v7860_v42 = vsel %vm2213_vm10, %v7847_v29, 0  ;;  %v589_v6 = vand.u32 15, %v385_v0 }
 0x126   : > { %3204 = vst.msk [vmem:[#allocation2 + $0x98] sm:$0xff] %vm8949_vm1, %v3163_v7  ;;  %v3447_v2 = vshrl.u32 %v5447_v31, 16  ;;  %v3450_v63 = vshll.u32 %v5447_v31, 16  ;;  %v2765_v34 = vshrl.u32 %v5412_v48, 16  ;;  %v2768_v5 = vshll.u32 %v5412_v48, 16  ;;  %v8954_v48 = vld [vmem:[#allocation3_spill] sm:$0xff] }
 0x127   : > { %1754 = vst.msk [vmem:[#allocation2 + $0x48] sm:$0xff] %vm8950_vm12, %v7457_v3  ;;  %vm8951_vm1 = vcmask 785920   ;;  %v1892_v3 = vsel %vm1860_vm0, 65537, %v8844_v22  ;;  %vm8952_vm7 = vcmask 1048320   ;;  %vm801_vm5 = vcmp.gt.s32.totalorder %v589_v6, 0 }
 0x128   : > { %2519 = vst.msk [vmem:[#allocation2 + $0x48] sm:$0xff] %vm8951_vm1, %v7499_v19  ;;  %v7869_v11 = vsel %vm2213_vm10, %v7539_v60, 0  ;;  %v2443_v26 = vshrl.u32 %v7793_v24, 16  ;;  %v3449_v52 = vrot.slane %v3447_v2, 3  ;;  %v3452_v51 = vrot.slane %v3450_v63, 4  ;;  %vm929_vm12 = vmpackc.low %vm801_vm5, %vm801_vm5  ;;  %v7872_v19 = vpop.permute.xlu1 %1714 }
 0x129   : > { %2852 = vst.msk [vmem:[#allocation2 + $0x48] sm:$0xff] %vm8952_vm7, %v7547_v39  ;;  %v2767_v44 = vrot.slane %v2765_v34, 3  ;;  %v2770_v28 = vrot.slane %v2768_v5, 4  ;;  %v2159_v4 = vshrl.u32 %v1892_v3, 16  ;;  %v2162_v0 = vshll.u32 %v1892_v3, 16 }
 0x12a   : > { %v961_v39 = vsel %vm929_vm12, 65537, %v8844_v22  ;;  %v7875_v45 = vor.u32 %v2443_v26, %v2441_v32  ;;  %v7877_v13 = vor.u32 %v3452_v51, %v3449_v52  ;;  %vm8953_vm0 = vnez %v8794_v17  ;;  %v6045_v31 = vld [vmem:[%s6170_s8 + $0x30] sm:$0xf]  ;;  %v3908_v52 = vld [vmem:[#allocation2 + $0x68] sm:$0xff] }
 0x12b   : > { %v7879_v60 = vor.u32 %v2770_v28, %v2767_v44  ;;  %v1248_v24 = vshll.u32 %v961_v39, 16  ;;  %v1252_v58 = vshrl.u32 %v961_v39, 16  ;;  %v2161_v30 = vrot.slane %v2159_v4, 7  ;;  %v7909_v4 = vld [vmem:[%s6170_s8 + $0x34] sm:$0xf] }
 0x12c   : > { %v1330_v7 = vsel %vm8953_vm0, %v6044_v49, 0  ;;  %vm8955_vm10 = vnez %v8954_v48  ;;  %v7889_v2 = vcombine.low %v7701_v47, %v7740_v23  ;;  %vm8956_vm1 = vsmask.f32 4352 }
 0x12d   : > { %v1331_v6 = vsel %vm8955_vm10, %v6045_v31, 0  ;;  %v3454_v32 = vsel %vm8956_vm1, %v7759_v61, %v7877_v13  ;;  %vm8957_vm7 = vmmov %vm8956_vm1  ;;  %v1250_v34 = vrot.slane %v1248_v24, 5  ;;  %v1254_v17 = vrot.slane %v1252_v58, 4  ;;  %v7914_v24 = vpop.permute.xlu1 %2479 }
 0x12e   : > { %v2772_v63 = vsel %vm8957_vm7, %v7761_v50, %v7879_v60  ;;  %3506 = vrot.lane.b32.xlu0 %v3454_v32, %s6093_s11  ;;  %v2164_v5 = vor.u32 %v2162_v0, %v2161_v30  ;;  %v5354_v3 = vcombine.low %v1330_v7, %v1331_v6  ;;  %vm8958_vm5 = vcmask 261120   ;;  %v8959_v0 = vld [vmem:[#allocation4_spill] sm:$0xff] }
 0x12f   : > { %2824 = vrot.lane.b32.xlu1 %v2772_v63, %s6092_s10  ;;  %2900 = vst.msk [vmem:[#allocation2 + $0x158] sm:$0xff] %vm8958_vm5, %v7889_v2  ;;  %v388_v26 = vadd.s32 248, %v6154_v1  ;;  %v2166_v61 = vrot.slane %v2161_v30, 4  ;;  %v1251_v50 = vsel %vm6223_vm14, %v6196_v27, %v1250_v34  ;;  %v1255_v51 = vor.u32 %v1254_v17, %v1250_v34  ;;  %v7924_v7 = vld [vmem:[%s6170_s8 + $0x8c] sm:$0xf] }
 0x130   : > { %v7906_v44 = vadd.s32 240, %v6154_v1  ;;  %v3904_v28 = vld [vmem:[#allocation2 + $0x48] sm:$0xff]  ;;  %vm8960_vm12 = vnez %v8959_v0  ;;  %v2165_v58 = vsel %vm6256_vm2, %v6193_v25, %v2164_v5  ;;  %vm7919_vm0 = vcmp.ne.s16.totalorder %v1251_v50, 0  ;;  %v3495_v5 = vpop.permute.xlu0 %3494 }
 0x131   : > { %v1332_v39 = vsel %vm8960_vm12, %v7909_v4, 0  ;;  %v8961_v30 = vmov 0  ;;  %v1482_v49 = vshrl.u32 %v5354_v3, 16  ;;  %v1485_v1 = vshll.u32 %v5354_v3, 16  ;;  %4199 = vmatmul.mubr.bf16.gmra.mrb[12].mxu0 %v3904_v28 }
 0x132   : > { %v8962_v30 = vsel %vm7919_vm0, 4294967295, %v8961_v30  ;;  %vm2214_vm10 = vcmp.ne.s16.totalorder %v2165_v58, 0  ;;  %v1256_v31 = vrot.slane %v1255_v51, 4  ;;  %v3242_v48 = vsel %vm7919_vm0, %v7740_v23, 0  ;;  %4206 = vmatprep.mubr.bf16.mxu0 %v3908_v52  ;;  %3575 = vrot.lane.b32.xlu0 %v7748_v35, %s6092_s10 }
 0x133   : > { %v2560_v6 = vsel %vm7919_vm0, %v7605_v9, 0  ;;  %v2931_v32 = vsel %vm2214_vm10, %v7740_v23, 0  ;;  %v3644_v63 = vsel %vm2214_vm10, %v7924_v7, 0  ;;  %1728 = vrot.lane.b32.xlu1 %v7591_v43, %s6091_s9  ;;  %v2247_v34 = vsel %vm2214_vm10, %v7605_v9, 0 }
 0x134   : > { %v1484_v17 = vrot.slane %v1482_v49, 3  ;;  %v5431_v3 = vcombine.low %v7854_v8, %v2931_v32  ;;  %v5466_v50 = vcombine.low %v7860_v42, %v3644_v63  ;;  %v1261_v52 = vsel %vm6223_vm14, %v1256_v31, %v6162_v10  ;;  %v7958_v31 = vpop.permute.xlu1 %2812 }
 0x135   : > { %v7945_v51 = vcombine.low %v7869_v11, %v2247_v34  ;;  %vm8963_vm1 = vcmask 785920   ;;  %vm7948_vm7 = vcmp.ne.s16.totalorder %v1261_v52, 0  ;;  %v8964_v28 = vmov 0 }
 0x136   : > { %3536 = vst.msk [vmem:[#allocation2 + $0x98] sm:$0xff] %vm8963_vm1, %v3495_v5  ;;  %v8965_v28 = vsel %vm7948_vm7, 4294967295, %v8964_v28  ;;  %v1487_v43 = vrot.slane %v1485_v1, 4  ;;  %v610_v9 = vand.u32 15, %v388_v26  ;;  %v2174_v8 = vsel %vm6256_vm2, %v2166_v61, %v6182_v21  ;;  %v3564_v1 = vpop.permute.xlu0 %3563  ;;  %v3933_v21 = vld [vmem:[#allocation2 + $0x130] sm:$0xff] }
 0x137   : > { %v3130_v42 = vshll.u32 %v5431_v3, 16  ;;  %v3843_v58 = vshll.u32 %v5466_v50, 16  ;;  %v3847_v49 = vshrl.u32 %v5466_v50, 16  ;;  %v3243_v11 = vsel %vm7948_vm7, %v7847_v29, 0 }
 0x138   : > { %v5448_v32 = vcombine.low %v3242_v48, %v3243_v11  ;;  %v2447_v63 = vshll.u32 %v7945_v51, 16  ;;  %v7961_v34 = vor.u32 %v1487_v43, %v1484_v17  ;;  %v2561_v26 = vsel %vm7948_vm7, %v7701_v47, 0 }
 0x139   : > { %v3132_v61 = vrot.slane %v3130_v42, 1  ;;  %v3845_v5 = vrot.slane %v3843_v58, 1  ;;  %v5413_v50 = vcombine.low %v2560_v6, %v2561_v26  ;;  %vm7966_vm5 = vcmp.lt.s32.totalorder %v610_v9, 15 }
 0x13a   : > { %vm8968_vm10 = vcmask 1048320   ;;  %vm8969_vm1 = vcmask 261120   ;;  %v3456_v48 = vshrl.u32 %v5448_v32, 16  ;;  %v3459_v17 = vshll.u32 %v5448_v32, 16  ;;  %vm1862_vm7 = vmpackc.low %vm7966_vm5, %vm7966_vm5 }
 0x13b   : > { %3605 = vst.msk [vmem:[#allocation2 + $0x98] sm:$0xff] %vm8968_vm10, %v3564_v1  ;;  %5771 = vmatprep.mubr.msk.bf16.mxu1 %vm8969_vm1, %v3933_v21  ;;  %v2449_v43 = vrot.slane %v2447_v63, 1  ;;  %vm8970_vm0 = vsmask.f32 4352  ;;  %vm8971_vm15 = vsmask.f32 7424  ;;  %v7982_v42 = vor.u32 %v3847_v49, %v3845_v5  ;;  %vm8973_vm10 = vmmov %vm8969_vm1 }
 0x13c   : > { %v1489_v11 = vsel %vm8970_vm0, %v7819_v38, %v7961_v34  ;;  %v3133_v6 = vsel %vm8971_vm15, %v7856_v15, %v3132_v61  ;;  %vm8972_vm6 = vmmov %vm8971_vm15  ;;  %v2774_v58 = vshrl.u32 %v5413_v50, 16  ;;  %v3458_v38 = vrot.slane %v3456_v48, 3 }
 0x13d   : > { %v3846_v9 = vsel %vm8972_vm6, %v7809_v14, %v3845_v5  ;;  %1610 = vst.msk [vmem:[#allocation2 + $0x60] sm:$0xff] %vm8973_vm10, %v1489_v11  ;;  %3176 = vrot.lane.b32.xlu0 %v3133_v6, %s6091_s9  ;;  %v3461_v32 = vrot.slane %v3459_v17, 4  ;;  %vm8974_vm0 = vmmov %vm8972_vm6  ;;  %vm8975_vm15 = vcmask 523520   ;;  %v2777_v15 = vshll.u32 %v5413_v50, 16  ;;  %v3165_v14 = vpop.permute.xlu0 %3164  ;;  %v8006_v5 = vld [vmem:[%s6170_s8 + $0x90] sm:$0xf] }
 0x13e   : > { %3892 = vst.msk [vmem:[#allocation2 + $0x148] sm:$0xff] %vm8969_vm1, %v3846_v9  ;;  %v2450_v63 = vsel %vm8974_vm0, %v7875_v45, %v2449_v43  ;;  %v2776_v49 = vrot.slane %v2774_v58, 3  ;;  %vm8976_vm6 = vcmask 785920   ;;  %v1894_v26 = vsel %vm1862_vm7, 65537, %v8844_v22  ;;  %vm8977_vm1 = vmmov %vm8975_vm15  ;;  %v6047_v58 = vld [vmem:[%s6170_s8 + $0x38] sm:$0xf] }
 0x13f   : > { %1755 = vst.msk [vmem:[#allocation2 + $0x60] sm:$0xff] %vm8975_vm15, %v7613_v59  ;;  %2493 = vrot.lane.b32.xlu1 %v2450_v63, %s6093_s11  ;;  %vm2215_vm10 = vcmp.ne.s16.totalorder %v2174_v8, 0  ;;  %v3134_v45 = vshrl.u32 %v5431_v3, 16  ;;  %v8001_v59 = vpop.permute.xlu1 %1716  ;;  %v8003_v1 = vor.u32 %v3461_v32, %v3458_v38  ;;  %v2779_v21 = vrot.slane %v2777_v15, 4  ;;  %v8980_v38 = vld [vmem:[#allocation5_spill] sm:$0xff] }
 0x140   : > { %2520 = vst.msk [vmem:[#allocation2 + $0x60] sm:$0xff] %vm8976_vm6, %v7641_v12  ;;  %v2177_v12 = vshrl.u32 %v1894_v26, 16  ;;  %v2180_v50 = vshll.u32 %v1894_v26, 16  ;;  %vm8978_vm0 = vcmask 1048320   ;;  %v2932_v52 = vsel %vm2215_vm10, %v7847_v29, 0 }
 0x141   : > { %3205 = vst.msk [vmem:[#allocation2 + $0xb0] sm:$0xff] %vm8977_vm1, %v3165_v14  ;;  %v8012_v48 = vor.u32 %v3134_v45, %v3132_v61  ;;  %v8016_v3 = vsel %vm2215_vm10, %v8006_v5, 0  ;;  %v603_v17 = vand.u32 15, %v7906_v44  ;;  %vm8979_vm7 = vsmask.f32 4352  ;;  %v3497_v32 = vpop.permute.xlu0 %3496 }
 0x142   : > { %2853 = vst.msk [vmem:[#allocation2 + $0x60] sm:$0xff] %vm8978_vm0, %v7694_v16  ;;  %v3463_v11 = vsel %vm8979_vm7, %v7877_v13, %v8003_v1  ;;  %v8022_v6 = vor.u32 %v2779_v21, %v2776_v49  ;;  %v2179_v9 = vrot.slane %v2177_v12, 7  ;;  %v2248_v16 = vsel %vm2215_vm10, %v7701_v47, 0  ;;  %vm8982_vm6 = vmmov %vm8979_vm7  ;;  %v8043_v14 = vld [vmem:[%s6170_s8 + $0x94] sm:$0xf] }
 0x143   : > { %3508 = vrot.lane.b32.xlu0 %v3463_v11, %s6093_s11  ;;  %vm803_vm5 = vcmp.gt.s32.totalorder %v603_v17, 0  ;;  %v2451_v61 = vshrl.u32 %v7945_v51, 16  ;;  %vm8981_vm15 = vnez %v8980_v38  ;;  %v8033_v13 = vcombine.low %v7847_v29, %v7924_v7  ;;  %v3911_v17 = vld [vmem:[#allocation2 + $0x80] sm:$0xff] }
 0x144   : > { %v1333_v44 = vsel %vm8981_vm15, %v6047_v58, 0  ;;  %v2781_v8 = vsel %vm8982_vm6, %v7879_v60, %v8022_v6  ;;  %v2182_v63 = vor.u32 %v2180_v50, %v2179_v9  ;;  %vm931_vm10 = vmpackc.low %vm803_vm5, %vm803_vm5  ;;  %v2184_v15 = vrot.slane %v2179_v9, 4  ;;  %v8052_v60 = vld [vmem:[%s6170_s8 + $0x3c] sm:$0xf]  ;;  %v355_v50 = vld [vmem:[%s6170_s8 + $0x98] sm:$0xf] }
 0x145   : > { %v5355_v51 = vcombine.low %v1332_v39, %v1333_v44  ;;  %vm8983_vm1 = vcmask 785920   ;;  %2826 = vrot.lane.b32.xlu1 %v2781_v8, %s6092_s10  ;;  %v963_v49 = vsel %vm931_vm10, 65537, %v8844_v22  ;;  %v2453_v26 = vor.u32 %v2451_v61, %v2449_v43  ;;  %v8057_v39 = vpop.permute.xlu1 %2481  ;;  %v3936_v45 = vld [vmem:[#allocation2 + $0x148] sm:$0xff]  ;;  %v3566_v58 = vpop.permute.xlu0 %3565 }
 0x146   : > { %3537 = vst.msk [vmem:[#allocation2 + $0xb0] sm:$0xff] %vm8983_vm1, %v3497_v32  ;;  %vm8984_vm0 = vcmask 261120   ;;  %vm1319_vm7 = vcmp.ne.s16.totalorder %v6196_v27, 0  ;;  %v2183_v21 = vsel %vm6256_vm2, %v6193_v25, %v2182_v63  ;;  %v1268_v22 = vshll.u32 %v963_v49, 16 }
 0x147   : > { %2901 = vst.msk [vmem:[#allocation2 + $0x170] sm:$0xff] %vm8984_vm0, %v8033_v13  ;;  %v1272_v43 = vshrl.u32 %v963_v49, 16  ;;  %v1491_v12 = vshrl.u32 %v5355_v51, 16  ;;  %vm8986_vm12 = vmmov %vm8984_vm0  ;;  %3577 = vrot.lane.b32.xlu0 %v7889_v2, %s6092_s10  ;;  %vm8066_vm5 = vcmp.ne.s16.totalorder %v2183_v21, 0  ;;  %v1494_v9 = vshll.u32 %v5355_v51, 16 }
 0x148   : > { %5772 = vmatmul.mubr.msk.bf16.gmra.mrb[16].mxu1 %vm8986_vm12, %v3936_v45  ;;  %vm8070_vm15 = vcmp.ne.s16.totalorder %v2184_v15, 0  ;;  %v3246_v56 = vsel %vm1319_vm7, %v8043_v14, 0  ;;  %v2933_v38 = vsel %vm8066_vm5, %v7924_v7, 0  ;;  %v1270_v44 = vrot.slane %v1268_v22, 5  ;;  %vm8995_vm1 = vmmov %vm8984_vm0 }
 0x149   : > { %v3907_v25 = vld [vmem:[#allocation2 + $0x60] sm:$0xff]  ;;  %v1274_v32 = vrot.slane %v1272_v43, 4  ;;  %v2249_v8 = vsel %vm8066_vm5, %v7740_v23, 0  ;;  %vm8991_vm2 = vcmask 1048320   ;;  %v5432_v63 = vcombine.low %v2932_v52, %v2933_v38  ;;  %1730 = vrot.lane.b32.xlu1 %v7748_v35, %s6091_s9  ;;  %v3167_v40 = vpop.permute.xlu0 %3166 }
 0x14a   : > { %4207 = vmatmul.mubr.bf16.gmra.mrb[16].mxu0 %v3907_v25  ;;  %3606 = vst.msk [vmem:[#allocation2 + $0xb0] sm:$0xff] %vm8991_vm2, %v3566_v58  ;;  %v8086_v51 = vcombine.low %v2248_v16, %v2249_v8  ;;  %v1493_v15 = vrot.slane %v1491_v12, 3  ;;  %v1496_v49 = vrot.slane %v1494_v9, 4  ;;  %v1271_v45 = vsel %vm6223_vm14, %v6196_v27, %v1270_v44 }
 0x14b   : > { %4214 = vmatprep.mubr.bf16.mxu0 %v3911_v17  ;;  %v1275_v21 = vor.u32 %v1274_v32, %v1270_v44  ;;  %v2934_v22 = vsel %vm8070_vm15, %v8006_v5, 0  ;;  %v3647_v52 = vsel %vm8070_vm15, %v355_v50, 0  ;;  %v3138_v43 = vshll.u32 %v5432_v63, 16  ;;  %v8103_v17 = vpop.permute.xlu1 %2814 }
 0x14c   : > { %vm8096_vm6 = vcmp.ne.s16.totalorder %v1271_v45, 0  ;;  %v2455_v16 = vshll.u32 %v8086_v51, 16  ;;  %v8101_v12 = vor.u32 %v1496_v49, %v1493_v15  ;;  %v5433_v58 = vcombine.low %v2934_v22, %v2934_v22 }
 0x14d   : > { %v1276_v9 = vrot.slane %v1275_v21, 4  ;;  %v3244_v25 = vsel %vm8096_vm6, %v7924_v7, 0  ;;  %v2562_v50 = vsel %vm8096_vm6, %v7740_v23, 0  ;;  %v3140_v38 = vrot.slane %v3138_v43, 1 }
 0x14e   : > { %v2457_v44 = vrot.slane %v2455_v16, 1  ;;  %vm8994_vm10 = vsmask.f32 4352  ;;  %v3142_v8 = vshrl.u32 %v5432_v63, 16  ;;  %v3146_v49 = vshll.u32 %v5433_v58, 16 }
 0x14f   : > { %v1498_v32 = vsel %vm8994_vm10, %v7961_v34, %v8101_v12  ;;  %v1281_v15 = vsel %vm6223_vm14, %v1276_v9, %v6162_v10  ;;  %v5468_v45 = vcombine.low %v3647_v52, %v3647_v52  ;;  %v5450_v21 = vcombine.low %v3246_v56, %v3246_v56  ;;  %v8142_v16 = vpop.permute.xlu1 %1718 }
 0x150   : > { %1611 = vst.msk [vmem:[#allocation2 + $0x78] sm:$0xff] %vm8995_vm1, %v1498_v32  ;;  %vm8996_vm0 = vsmask.f32 7424  ;;  %vm8120_vm12 = vcmp.ne.s16.totalorder %v1281_v15, 0  ;;  %vm9000_vm10 = vcmask 523520   ;;  %v3144_v34 = vor.u32 %v3142_v8, %v3140_v38 }
 0x151   : > { %v3141_v0 = vsel %vm8996_vm0, %v8012_v48, %v3140_v38  ;;  %vm8999_vm2 = vmmov %vm8996_vm0  ;;  %1756 = vst.msk [vmem:[#allocation2 + $0x78] sm:$0xff] %vm9000_vm10, %v7750_v57  ;;  %v3245_v10 = vsel %vm8120_vm12, %v8006_v5, 0  ;;  %v2563_v48 = vsel %vm8120_vm12, %v7847_v29, 0  ;;  %vm9001_vm14 = vcmask 785920  }
 0x152   : > { %v2458_v43 = vsel %vm8999_vm2, %v2453_v26, %v2457_v44  ;;  %3178 = vrot.lane.b32.xlu0 %v3141_v0, %s6091_s9  ;;  %2521 = vst.msk [vmem:[#allocation2 + $0x78] sm:$0xff] %vm9001_vm14, %v7787_v33  ;;  %v3148_v26 = vrot.slane %v3146_v49, 1  ;;  %v8137_v56 = vshll.u32 %v5468_v45, 16  ;;  %vm9002_vm1 = vmmov %vm9000_vm10  ;;  %v5449_v57 = vcombine.low %v3244_v25, %v3245_v10 }
 0x153   : > { %2495 = vrot.lane.b32.xlu1 %v2458_v43, %s6093_s11  ;;  %3206 = vst.msk [vmem:[#allocation2 + $0xc8] sm:$0xff] %vm9002_vm1, %v3167_v40  ;;  %v5414_v0 = vcombine.low %v2562_v50, %v2563_v48  ;;  %vm9003_vm0 = vcmask 1048320   ;;  %v3474_v63 = vshrl.u32 %v5450_v21, 16  ;;  %v3477_v52 = vshll.u32 %v5450_v21, 16  ;;  %v3499_v21 = vpop.permute.xlu0 %3498 }
 0x154   : > { %2854 = vst.msk [vmem:[#allocation2 + $0x78] sm:$0xff] %vm9003_vm0, %v7830_v20  ;;  %v8145_v9 = vsel %vm8999_vm2, %v3144_v34, %v3148_v26  ;;  %v3861_v58 = vrot.slane %v8137_v56, 1  ;;  %v3646_v33 = vsel %vm8066_vm5, %v8043_v14, 0  ;;  %v2250_v25 = vsel %vm8070_vm15, %v7847_v29, 0  ;;  %vm9004_vm5 = vmmov %vm9001_vm14 }
 0x155   : > { %v3465_v50 = vshrl.u32 %v5449_v57, 16  ;;  %v3468_v38 = vshll.u32 %v5449_v57, 16  ;;  %v2783_v20 = vshrl.u32 %v5414_v0, 16  ;;  %v2786_v32 = vshll.u32 %v5414_v0, 16  ;;  %3538 = vst.msk [vmem:[#allocation2 + $0xc8] sm:$0xff] %vm9004_vm5, %v3499_v21 }
 0x156   : > { %v3476_v8 = vrot.slane %v3474_v63, 3  ;;  %v3479_v15 = vrot.slane %v3477_v52, 4  ;;  %v5467_v49 = vcombine.low %v8016_v3, %v3646_v33  ;;  %v5398_v45 = vcombine.low %v2250_v25, %v2250_v25  ;;  %v6049_v0 = vld [vmem:[%s6170_s8 + $0x40] sm:$0xf]  ;;  %v8162_v52 = vpop.permute.xlu1 %2483 }
 0x157   : > { %v3467_v43 = vrot.slane %v3465_v50, 3  ;;  %v3470_v34 = vrot.slane %v3468_v38, 4  ;;  %v2785_v40 = vrot.slane %v2783_v20, 3  ;;  %v2788_v11 = vrot.slane %v2786_v32, 4  ;;  %v9005_v63 = vld [vmem:[#allocation7_spill] sm:$0xff]  ;;  %v3914_v32 = vld [vmem:[#allocation2 + $0x98] sm:$0xff] }
 0x158   : > { %v3480_v10 = vor.u32 %v3479_v15, %v3476_v8  ;;  %v3851_v61 = vshll.u32 %v5467_v49, 16  ;;  %v3855_v29 = vshrl.u32 %v5467_v49, 16  ;;  %v2459_v48 = vshrl.u32 %v8086_v51, 16  ;;  %v3568_v8 = vpop.permute.xlu0 %3567 }
 0x159   : > { %v3471_v26 = vor.u32 %v3470_v34, %v3467_v43  ;;  %v8157_v56 = vor.u32 %v2788_v11, %v2785_v40  ;;  %v2463_v57 = vshll.u32 %v5398_v45, 16  ;;  %vm9006_vm15 = vnez %v9005_v63  ;;  %v6050_v34 = vld [vmem:[%s6170_s8 + $0x44] sm:$0xf]  ;;  %v6051_v11 = vld [vmem:[%s6170_s8 + $0x48] sm:$0xf] }
 0x15a   : > { %v1335_v3 = vsel %vm9006_vm15, %v6049_v0, 0  ;;  %v3853_v33 = vrot.slane %v3851_v61, 1  ;;  %v2461_v25 = vor.u32 %v2459_v48, %v2457_v44  ;;  %v9007_v50 = vsel %vm6959_vm8, %v8052_v60, 0  ;;  %vm9011_vm8 = vmmov %vm9003_vm0  ;;  %v6053_v63 = vld [vmem:[%s6170_s8 + $0x50] sm:$0xf] }
 0x15b   : > { %v5356_v38 = vcombine.low %v9007_v50, %v1335_v3  ;;  %v5451_v51 = vcombine.low %v8006_v5, %v8043_v14  ;;  %v3910_v20 = vld [vmem:[#allocation2 + $0x78] sm:$0xff]  ;;  %vm9008_vm10 = vsmask.f32 4352  ;;  %v2465_v60 = vrot.slane %v2463_v57, 1  ;;  %3607 = vst.msk [vmem:[#allocation2 + $0xc8] sm:$0xff] %vm9011_vm8, %v3568_v8  ;;  %vm9012_vm0 = vmmov %vm8999_vm2 }
 0x15c   : > { %v3472_v15 = vsel %vm9008_vm10, %v8003_v1, %v3471_v26  ;;  %vm9009_vm14 = vmmov %vm9008_vm10  ;;  %4215 = vmatmul.mubr.bf16.gmra.mrb[20].mxu0 %v3910_v20  ;;  %v3854_v44 = vsel %vm9012_vm0, %v7982_v42, %v3853_v33  ;;  %v3857_v1 = vor.u32 %v3855_v29, %v3853_v33  ;;  %vm9013_vm2 = vcmask 261120   ;;  %v8202_v33 = vpop.permute.xlu1 %2816  ;;  %v6064_v5 = vld [vmem:[%s6170_s8 + $0x7c] sm:$0xf] }
 0x15d   : > { %v2790_v49 = vsel %vm9009_vm14, %v8022_v6, %v8157_v56  ;;  %vm9010_vm1 = vmmov %vm9008_vm10  ;;  %3510 = vrot.lane.b32.xlu0 %v3472_v15, %s6093_s11  ;;  %v1500_v45 = vshrl.u32 %v5356_v38, 16  ;;  %v1503_v21 = vshll.u32 %v5356_v38, 16  ;;  %3893 = vst.msk [vmem:[#allocation2 + $0x160] sm:$0xff] %vm9013_vm2, %v3854_v44  ;;  %v2564_v43 = vsel %vm1319_vm7, %v7924_v7, 0  ;;  %4222 = vmatprep.mubr.bf16.mxu0 %v3914_v32  ;;  %v6052_v7 = vld [vmem:[%s6170_s8 + $0x4c] sm:$0xf] }
 0x15e   : > { %v8176_v4 = vsel %vm9010_vm1, %v3471_v26, %v3480_v10  ;;  %2828 = vrot.lane.b32.xlu1 %v2790_v49, %s6092_s10  ;;  %vm9014_vm5 = vmmov %vm9012_vm0  ;;  %vm9015_vm15 = vnez %v8836_v37  ;;  %vm9016_vm10 = vnez %v8843_v55  ;;  %v5415_v48 = vcombine.low %v2564_v43, %v2564_v43  ;;  %v3169_v26 = vpop.permute.xlu0 %3168  ;;  %v6055_v49 = vld [vmem:[%s6170_s8 + $0x58] sm:$0xf]  ;;  %v6056_v44 = vld [vmem:[%s6170_s8 + $0x5c] sm:$0xf] }
 0x15f   : > { %v2466_v6 = vsel %vm9014_vm5, %v2461_v25, %v2465_v60  ;;  %v1336_v40 = vsel %vm9015_vm15, %v6050_v34, 0  ;;  %v1337_v42 = vsel %vm9016_vm10, %v6051_v11, 0  ;;  %vm9017_vm14 = vmmov %vm9012_vm0  ;;  %v1502_v61 = vrot.slane %v1500_v45, 3  ;;  %v9025_v11 = vld [vmem:[#allocation10_spill] sm:$0xff] }
 0x160   : > { %v3862_v10 = vsel %vm9017_vm14, %v3857_v1, %v3861_v58  ;;  %v1505_v29 = vrot.slane %v1503_v21, 4  ;;  %vm9018_vm1 = vmmov %vm9013_vm2  ;;  %v5357_v57 = vcombine.low %v1336_v40, %v1337_v42  ;;  %v1338_v37 = vsel %vm7156_vm9, %v6052_v7, 0  ;;  %v6054_v58 = vld [vmem:[%s6170_s8 + $0x54] sm:$0xf] }
 0x161   : > { %3894 = vst.msk [vmem:[#allocation2 + $0x178] sm:$0xff] %vm9018_vm1, %v3862_v10  ;;  %v1339_v55 = vsel %vm7209_vm13, %v6053_v63, 0  ;;  %vm9021_vm8 = vcmask 523520   ;;  %v1340_v25 = vsel %vm7375_vm3, %v6054_v58, 0  ;;  %3579 = vrot.lane.b32.xlu0 %v8033_v13, %s6092_s10  ;;  %v2792_v38 = vshrl.u32 %v5415_v48, 16  ;;  %vm9023_vm13 = vmmov %vm9018_vm1 }
 0x162   : > { %3207 = vst.msk [vmem:[#allocation2 + $0xe0] sm:$0xff] %vm9021_vm8, %v3169_v26  ;;  %1732 = vrot.lane.b32.xlu1 %v7889_v2, %s6091_s9  ;;  %v1506_v50 = vor.u32 %v1505_v29, %v1502_v61  ;;  %v2795_v20 = vshll.u32 %v5415_v48, 16  ;;  %v5358_v32 = vcombine.low %v1338_v37, %v1339_v55  ;;  %v1509_v8 = vshrl.u32 %v5357_v57, 16  ;;  %vm9024_vm3 = vmmov %vm9021_vm8  ;;  %v6058_v10 = vld [vmem:[%s6170_s8 + $0x64] sm:$0xf]  ;;  %v1721_v26 = vpop.permute.xlu1 %1720 }
 0x163   : > { %v1512_v15 = vshll.u32 %v5357_v57, 16  ;;  %v1341_v60 = vsel %vm7403_vm11, %v6055_v49, 0  ;;  %v1342_v18 = vsel %vm7527_vm4, %v6056_v44, 0  ;;  %vm9022_vm9 = vsmask.f32 4352  ;;  %vm9029_vm2 = vmmov %vm9018_vm1 }
 0x164   : > { %v1507_v13 = vsel %vm9022_vm9, %v8101_v12, %v1506_v50  ;;  %v2794_v2 = vrot.slane %v2792_v38, 3  ;;  %v2797_v1 = vrot.slane %v2795_v20, 4  ;;  %v1518_v45 = vshrl.u32 %v5358_v32, 16  ;;  %v6057_v12 = vld [vmem:[%s6170_s8 + $0x60] sm:$0xf]  ;;  %vm9030_vm5 = vmmov %vm9022_vm9 }
 0x165   : > { %1612 = vst.msk [vmem:[#allocation2 + $0x90] sm:$0xff] %vm9023_vm13, %v1507_v13  ;;  %v1511_v21 = vrot.slane %v1509_v8, 3  ;;  %v1514_v43 = vrot.slane %v1512_v15, 4  ;;  %v1521_v34 = vshll.u32 %v5358_v32, 16  ;;  %v5359_v40 = vcombine.low %v1340_v25, %v1341_v60  ;;  %3180 = vrot.lane.b32.xlu0 %v8145_v9, %s6091_s9  ;;  %v3939_v29 = vld [vmem:[#allocation2 + $0x160] sm:$0xff]  ;;  %vm9034_vm1 = vmmov %vm9030_vm5 }
 0x166   : > { %2497 = vrot.lane.b32.xlu1 %v2466_v6, %s6093_s11  ;;  %1757 = vst.msk [vmem:[#allocation2 + $0x90] sm:$0xff] %vm9024_vm3, %v7872_v19  ;;  %v2798_v53 = vor.u32 %v2797_v1, %v2794_v2  ;;  %v1520_v54 = vrot.slane %v1518_v45, 3  ;;  %vm9026_vm11 = vnez %v9025_v11  ;;  %vm9027_vm4 = vnez %v8920_v62  ;;  %5775 = vmatprep.mubr.msk.bf16.mxu1 %vm9029_vm2, %v3939_v29  ;;  %v6059_v62 = vld [vmem:[%s6170_s8 + $0x68] sm:$0xf]  ;;  %vm9035_vm8 = vmmov %vm9029_vm2  ;;  %v6061_v25 = vld [vmem:[%s6170_s8 + $0x70] sm:$0xf]  ;;  %v2486_v44 = vpop.permute.xlu1 %2485 }
 0x167   : > { %v1343_v42 = vsel %vm9026_vm11, %v6057_v12, 0  ;;  %v1344_v61 = vsel %vm9027_vm4, %v6058_v10, 0  ;;  %vm9028_vm0 = vcmask 785920   ;;  %v1515_v9 = vor.u32 %v1514_v43, %v1511_v21  ;;  %vm9036_vm9 = vmmov %vm9029_vm2  ;;  %v6063_v13 = vld [vmem:[%s6170_s8 + $0x78] sm:$0xf] }
 0x168   : > { %2522 = vst.msk [vmem:[#allocation2 + $0x90] sm:$0xff] %vm9028_vm0, %v7914_v24  ;;  %v1523_v6 = vrot.slane %v1521_v34, 4  ;;  %v1527_v48 = vshrl.u32 %v5359_v40, 16  ;;  %v1530_v19 = vshll.u32 %v5359_v40, 16  ;;  %v2799_v57 = vsel %vm9030_vm5, %v8157_v56, %v2798_v53  ;;  %v6060_v24 = vld [vmem:[%s6170_s8 + $0x6c] sm:$0xf]  ;;  %vm9038_vm11 = vmmov %vm9034_vm1 }
 0x169   : > { %vm9031_vm15 = vcmask 1048320   ;;  %v5360_v7 = vcombine.low %v1342_v18, %v1343_v42  ;;  %vm9032_vm10 = vnez %v8927_v46  ;;  %vm9033_vm14 = vnez %v8940_v36  ;;  %v3942_v63 = vld [vmem:[#allocation2 + $0x178] sm:$0xff]  ;;  %3512 = vrot.lane.b32.xlu0 %v8176_v4, %s6093_s11  ;;  %v6062_v4 = vld [vmem:[%s6170_s8 + $0x74] sm:$0xf]  ;;  %v3501_v42 = vpop.permute.xlu0 %3500 }
 0x16a   : > { %2855 = vst.msk [vmem:[#allocation2 + $0x90] sm:$0xff] %vm9031_vm15, %v7958_v31  ;;  %v1345_v0 = vsel %vm9032_vm10, %v6059_v62, 0  ;;  %v1346_v37 = vsel %vm9033_vm14, %v6060_v24, 0  ;;  %v1516_v3 = vsel %vm9034_vm1, %v1506_v50, %v1515_v9  ;;  %v1524_v55 = vor.u32 %v1523_v6, %v1520_v54  ;;  %5776 = vmatmul.mubr.msk.bf16.gmra.mrb[20].mxu1 %vm9035_vm8, %v3942_v63  ;;  %2830 = vrot.lane.b32.xlu1 %v2799_v57, %s6092_s10  ;;  %vm9040_vm5 = vmmov %vm9031_vm15  ;;  %v2819_v10 = vpop.permute.xlu1 %2818  ;;  %v3920_v57 = vld [vmem:[#allocation2 + $0xc8] sm:$0xff] }
 0x16b   : > { %v1529_v58 = vrot.slane %v1527_v48, 3  ;;  %v1532_v56 = vrot.slane %v1530_v19, 4  ;;  %1613 = vst.msk [vmem:[#allocation2 + $0xa8] sm:$0xff] %vm9036_vm9, %v1516_v3  ;;  %v1536_v46 = vshrl.u32 %v5360_v7, 16  ;;  %v1539_v31 = vshll.u32 %v5360_v7, 16  ;;  %vm9041_vm15 = vmmov %vm9024_vm3 }
 0x16c   : > { %v5361_v36 = vcombine.low %v1344_v61, %v1345_v0  ;;  %vm9037_vm13 = vnez %v8946_v41  ;;  %1758 = vst.msk [vmem:[#allocation2 + $0xa8] sm:$0xff] %vm9024_vm3, %v8001_v59  ;;  %v1525_v38 = vsel %vm9038_vm11, %v1515_v9, %v1524_v55  ;;  %vm9039_vm4 = vnez %v8962_v30  ;;  %vm9042_vm10 = vmmov %vm9034_vm1 }
 0x16d   : > { %v1347_v50 = vsel %vm9037_vm13, %v6061_v25, 0  ;;  %v1533_v20 = vor.u32 %v1532_v56, %v1529_v58  ;;  %v1348_v8 = vsel %vm9039_vm4, %v6062_v4, 0  ;;  %2523 = vst.msk [vmem:[#allocation2 + $0xa8] sm:$0xff] %vm9028_vm0, %v8057_v39  ;;  %v1538_v15 = vrot.slane %v1536_v46, 3  ;;  %3581 = vrot.lane.b32.xlu0 %v5451_v51, %s6092_s10  ;;  %vm9044_vm1 = vmmov %vm9028_vm0  ;;  %v3570_v24 = vpop.permute.xlu0 %3569 }
 0x16e   : > { %v5362_v32 = vcombine.low %v1346_v37, %v1347_v50  ;;  %1614 = vst.msk [vmem:[#allocation2 + $0xc0] sm:$0xff] %vm9029_vm2, %v1525_v38  ;;  %v1541_v41 = vrot.slane %v1539_v31, 4  ;;  %v1545_v49 = vshrl.u32 %v5361_v36, 16  ;;  %v1548_v60 = vshll.u32 %v5361_v36, 16  ;;  %vm9045_vm8 = vmmov %vm9029_vm2  ;;  %v1723_v37 = vpop.permute.xlu1 %1722 }
 0x16f   : > { %2856 = vst.msk [vmem:[#allocation2 + $0xa8] sm:$0xff] %vm9040_vm5, %v8103_v17  ;;  %v1534_v59 = vsel %vm9042_vm10, %v1524_v55, %v1533_v20  ;;  %vm9043_vm14 = vnez %v8965_v28  ;;  %v3917_v17 = vld [vmem:[#allocation2 + $0xb0] sm:$0xff]  ;;  %vm9046_vm9 = vmmov %vm9040_vm5  ;;  %v1350_v14 = vsel %vm8096_vm6, %v6064_v5, 0  ;;  %v1352_v35 = vsel %vm1319_vm7, %v7740_v23, 0 }
 0x170   : > { %1759 = vst.msk [vmem:[#allocation2 + $0xc0] sm:$0xff] %vm9041_vm15, %v8142_v16  ;;  %v1554_v30 = vshrl.u32 %v5362_v32, 16  ;;  %v1557_v18 = vshll.u32 %v5362_v32, 16  ;;  %v1349_v39 = vsel %vm9043_vm14, %v6063_v13, 0  ;;  %v1542_v16 = vor.u32 %v1541_v41, %v1538_v15  ;;  %vm9047_vm13 = vmmov %vm9024_vm3 }
 0x171   : > { %2524 = vst.msk [vmem:[#allocation2 + $0xc0] sm:$0xff] %vm9044_vm1, %v8162_v52  ;;  %v1547_v2 = vrot.slane %v1545_v49, 3  ;;  %v1550_v1 = vrot.slane %v1548_v60, 4  ;;  %v5363_v45 = vcombine.low %v1348_v8, %v1349_v39  ;;  %v3913_v21 = vld [vmem:[#allocation2 + $0x90] sm:$0xff]  ;;  %v1351_v52 = vsel %vm8120_vm12, %v7701_v47, 0  ;;  %vm9048_vm3 = vmmov %vm9028_vm0  ;;  %v3171_v56 = vpop.permute.xlu0 %3170 }
 0x172   : > { %1615 = vst.msk [vmem:[#allocation2 + $0xd8] sm:$0xff] %vm9045_vm8, %v1534_v59  ;;  %v1556_v28 = vrot.slane %v1554_v30, 3  ;;  %v1559_v43 = vrot.slane %v1557_v18, 4  ;;  %4223 = vmatmul.mubr.bf16.gmra.mrb[24].mxu0 %v3913_v21  ;;  %vm9049_vm11 = vmmov %vm9042_vm10  ;;  %v5364_v54 = vcombine.low %v1350_v14, %v1351_v52  ;;  %v5365_v11 = vcombine.low %v1352_v35, %v1352_v35  ;;  %v2488_v46 = vpop.permute.xlu1 %2487 }
 0x173   : > { %2857 = vst.msk [vmem:[#allocation2 + $0xc0] sm:$0xff] %vm9046_vm9, %v8202_v33  ;;  %v1543_v51 = vsel %vm9049_vm11, %v1533_v20, %v1542_v16  ;;  %v1551_v34 = vor.u32 %v1550_v1, %v1547_v2  ;;  %v1563_v40 = vshrl.u32 %v5363_v45, 16  ;;  %v1566_v33 = vshll.u32 %v5363_v45, 16  ;;  %4230 = vmatprep.mubr.bf16.mxu0 %v3917_v17  ;;  %vm9050_vm4 = vmmov %vm9029_vm2 }
 0x174   : > { %1760 = vst.msk [vmem:[#allocation2 + $0xd8] sm:$0xff] %vm9047_vm13, %v1721_v26  ;;  %v1560_v53 = vor.u32 %v1559_v43, %v1556_v28  ;;  %vm9051_vm6 = vmmov %vm9042_vm10  ;;  %v1572_v29 = vshrl.u32 %v5364_v54, 16  ;;  %v1575_v9 = vshll.u32 %v5364_v54, 16  ;;  %v1581_v23 = vshrl.u32 %v5365_v11, 16 }
 0x175   : > { %2525 = vst.msk [vmem:[#allocation2 + $0xd8] sm:$0xff] %vm9048_vm3, %v2486_v44  ;;  %v1552_v22 = vsel %vm9051_vm6, %v1542_v16, %v1551_v34  ;;  %v1565_v47 = vrot.slane %v1563_v40, 3  ;;  %v1568_v12 = vrot.slane %v1566_v33, 4  ;;  %vm9052_vm12 = vmmov %vm9029_vm2  ;;  %v1584_v6 = vshll.u32 %v5365_v11, 16 }
 0x176   : > { %1616 = vst.msk [vmem:[#allocation2 + $0xf0] sm:$0xff] %vm9050_vm4, %v1543_v51  ;;  %vm9053_vm0 = vmmov %vm9051_vm6  ;;  %v3916_v48 = vld [vmem:[#allocation2 + $0xa8] sm:$0xff]  ;;  %v1574_v19 = vrot.slane %v1572_v29, 3  ;;  %v1577_v26 = vrot.slane %v1575_v9, 4  ;;  %v1583_v62 = vrot.slane %v1581_v23, 3 }
 0x177   : > { %1617 = vst.msk [vmem:[#allocation2 + $0x108] sm:$0xff] %vm9052_vm12, %v1552_v22  ;;  %v1561_v61 = vsel %vm9053_vm0, %v1551_v34, %v1560_v53  ;;  %vm9054_vm2 = vmmov %vm9044_vm1  ;;  %v1569_v27 = vor.u32 %v1568_v12, %v1565_v47  ;;  %v1586_v0 = vrot.slane %v1584_v6, 4 }
 0x178   : > { %3539 = vst.msk [vmem:[#allocation2 + $0xe0] sm:$0xff] %vm9054_vm2, %v3501_v42  ;;  %vm9055_vm15 = vmmov %vm9050_vm4  ;;  %v1578_v63 = vor.u32 %v1577_v26, %v1574_v19  ;;  %v3503_v50 = vpop.permute.xlu0 %3502 }
 0x179   : > { %2858 = vst.msk [vmem:[#allocation2 + $0xd8] sm:$0xff] %vm9040_vm5, %v2819_v10  ;;  %vm9056_vm7 = vmmov %vm9053_vm0  ;;  %v1587_v3 = vor.u32 %v1586_v0, %v1583_v62  ;;  %v2821_v38 = vpop.permute.xlu1 %2820 }
 0x17a   : > { %1618 = vst.msk [vmem:[#allocation2 + $0x120] sm:$0xff] %vm9055_vm15, %v1561_v61  ;;  %v1570_v7 = vsel %vm9056_vm7, %v1560_v53, %v1569_v27  ;;  %vm9057_vm10 = vmmov %vm9050_vm4  ;;  %4231 = vmatmul.mubr.bf16.gmra.mrb[28].mxu0 %v3916_v48  ;;  %v3919_v31 = vld [vmem:[#allocation2 + $0xc0] sm:$0xff] }
 0x17b   : > { %1619 = vst.msk [vmem:[#allocation2 + $0x138] sm:$0xff] %vm9057_vm10, %v1570_v7  ;;  %vm9058_vm14 = vmmov %vm9040_vm5  ;;  %4238 = vmatprep.mubr.bf16.mxu0 %v3920_v57 }
 0x17c   : > { %3608 = vst.msk [vmem:[#allocation2 + $0xe0] sm:$0xff] %vm9058_vm14, %v3570_v24  ;;  %vm9059_vm1 = vmmov %vm9047_vm13  ;;  %v3572_v20 = vpop.permute.xlu0 %3571 }
 0x17d   : > { %1761 = vst.msk [vmem:[#allocation2 + $0xf0] sm:$0xff] %vm9059_vm1, %v1723_v37  ;;  %vm9060_vm8 = vmmov %vm9053_vm0  ;;  %v1725_v32 = vpop.permute.xlu1 %1724 }
 0x17e   : > { %v1579_v55 = vsel %vm9060_vm8, %v1569_v27, %v1578_v63  ;;  %vm9061_vm9 = vmmov %vm9050_vm4 }
 0x17f   : > { %1620 = vst.msk [vmem:[#allocation2 + $0x150] sm:$0xff] %vm9061_vm9, %v1579_v55  ;;  %vm9062_vm13 = vmmov %vm9053_vm0 }
 0x180   : > { %v1588_v58 = vsel %vm9062_vm13, %v1578_v63, %v1587_v3  ;;  %vm9063_vm3 = vmmov %vm9050_vm4  ;;  %v3922_v25 = vld [vmem:[#allocation2 + $0xd8] sm:$0xff]  ;;  %v3173_v4 = vpop.permute.xlu0 %3172 }
 0x181   : > { %1621 = vst.msk [vmem:[#allocation2 + $0x168] sm:$0xff] %vm9063_vm3, %v1588_v58  ;;  %vm9064_vm11 = vmmov %vm9059_vm1  ;;  %v2490_v8 = vpop.permute.xlu1 %2489 }
 0x182   : > { %3208 = vst.msk [vmem:[#allocation2 + $0xf8] sm:$0xff] %vm9064_vm11, %v3171_v56  ;;  %vm9065_vm4 = vmmov %vm9054_vm2  ;;  %4239 = vmatmul.mubr.bf16.gmra.mrb[32].mxu0 %v3919_v31  ;;  %v3897_v31 = vld [vmem:[#allocation2 + $0x10] sm:$0xff] }
 0x183   : > { %2526 = vst.msk [vmem:[#allocation2 + $0xf0] sm:$0xff] %vm9065_vm4, %v2488_v46  ;;  %v3923_v36 = vld [vmem:[#allocation2 + $0xe0] sm:$0xff]  ;;  %vm9066_vm6 = vmmov %vm9054_vm2 }
 0x184   : > { %4246 = vmatprep.mubr.bf16.mxu0 %v3923_v36  ;;  %3540 = vst.msk [vmem:[#allocation2 + $0xf8] sm:$0xff] %vm9066_vm6, %v3503_v50  ;;  %vm9067_vm12 = vmmov %vm9040_vm5 }
 0x185   : > { %2859 = vst.msk [vmem:[#allocation2 + $0xf0] sm:$0xff] %vm9067_vm12, %v2821_v38  ;;  %vm9068_vm0 = vmmov %vm9040_vm5 }
 0x186   : > { %3609 = vst.msk [vmem:[#allocation2 + $0xf8] sm:$0xff] %vm9068_vm0, %v3572_v20  ;;  %vm9069_vm2 = vmmov %vm9059_vm1  ;;  %v3900_v20 = vld [vmem:[#allocation2 + $0x28] sm:$0xff] }
 0x187   : > { %1762 = vst.msk [vmem:[#allocation2 + $0x108] sm:$0xff] %vm9069_vm2, %v1725_v32  ;;  %vm9070_vm5 = vmmov %vm9059_vm1 }
 0x188   : > { %3209 = vst.msk [vmem:[#allocation2 + $0x110] sm:$0xff] %vm9070_vm5, %v3173_v4  ;;  %vm9071_vm15 = vmmov %vm9065_vm4 }
 0x189   : > { %2527 = vst.msk [vmem:[#allocation2 + $0x108] sm:$0xff] %vm9071_vm15, %v2490_v8  ;;  %vm9072_vm7 = vmmov %vm9065_vm4  ;;  %v3903_v8 = vld [vmem:[#allocation2 + $0x40] sm:$0xff] }
 0x18a   : > { %4247 = vmatmul.mubr.bf16.gmra.mrb[36].mxu0 %v3922_v25  ;;  %vm9073_vm10 = vmmov %vm9068_vm0 }
 0x18b   : > { %vm9074_vm14 = vmmov %vm9068_vm0 }
 0x18c   : > { %v3925_v15 = vld [vmem:[#allocation2 + $0xf0] sm:$0xff]  ;;  %v3505_v49 = vpop.permute.xlu0 %3504  ;;  %vm9075_vm8 = vmmov %vm9059_vm1 }
 0x18d   : > { %v3926_v41 = vld [vmem:[#allocation2 + $0xf8] sm:$0xff]  ;;  %v2823_v60 = vpop.permute.xlu1 %2822  ;;  %3541 = vst.msk [vmem:[#allocation2 + $0x110] sm:$0xff] %vm9072_vm7, %v3505_v49  ;;  %vm9076_vm9 = vmmov %vm9065_vm4 }
 0x18e   : > { %4254 = vmatprep.mubr.bf16.mxu0 %v3926_v41  ;;  %2860 = vst.msk [vmem:[#allocation2 + $0x108] sm:$0xff] %vm9073_vm10, %v2823_v60  ;;  %vm9077_vm13 = vmmov %vm9065_vm4 }
 0x18f   : > { %vm9078_vm3 = vmmov %vm9068_vm0 }
 0x190   : > { %v3574_v59 = vpop.permute.xlu0 %3573  ;;  %vm9079_vm11 = vmmov %vm9068_vm0 }
 0x191   : > { %v1727_v44 = vpop.permute.xlu1 %1726  ;;  %3610 = vst.msk [vmem:[#allocation2 + $0x110] sm:$0xff] %vm9074_vm14, %v3574_v59  ;;  %vm9080_vm4 = vmmov %vm9059_vm1 }
 0x192   : > { %4255 = vmatmul.mubr.bf16.gmra.mrb[40].mxu0 %v3925_v15  ;;  %1763 = vst.msk [vmem:[#allocation2 + $0x120] sm:$0xff] %vm9059_vm1, %v1727_v44  ;;  %vm9081_vm6 = vmmov %vm9059_vm1 }
 0x193   : > { %vm9082_vm12 = vmmov %vm9072_vm7 }
 0x194   : > { %v3175_v30 = vpop.permute.xlu0 %3174  ;;  %vm9083_vm0 = vmmov %vm9072_vm7 }
 0x195   : > { %v2492_v18 = vpop.permute.xlu1 %2491  ;;  %3210 = vst.msk [vmem:[#allocation2 + $0x128] sm:$0xff] %vm9075_vm8, %v3175_v30  ;;  %v3928_v13 = vld [vmem:[#allocation2 + $0x108] sm:$0xff]  ;;  %vm9084_vm2 = vmmov %vm9078_vm3 }
 0x196   : > { %2528 = vst.msk [vmem:[#allocation2 + $0x120] sm:$0xff] %vm9076_vm9, %v2492_v18  ;;  %vm9085_vm5 = vmmov %vm9084_vm2 }
 0x197   : > { %vm9086_vm15 = vmmov %vm9059_vm1 }
 0x198   : > { %v3929_v39 = vld [vmem:[#allocation2 + $0x110] sm:$0xff]  ;;  %vm9087_vm7 = vmmov %vm9059_vm1 }
 0x199   : > { %4262 = vmatprep.mubr.bf16.mxu0 %v3929_v39  ;;  %vm9088_vm10 = vmmov %vm9083_vm0 }
 0x19a   : > { %4263 = vmatmul.mubr.bf16.gmra.mrb[44].mxu0 %v3928_v13  ;;  %vm9089_vm14 = vmmov %vm9083_vm0  ;;  %v3906_v13 = vld [vmem:[#allocation2 + $0x58] sm:$0xff] }
 0x19b   : > { %vm9090_vm1 = vmmov %vm9084_vm2 }
 0x19c   : > { %vm9091_vm8 = vmmov %vm9090_vm1 }
 0x19d   : > { %vm9092_vm9 = vmmov %vm9080_vm4 }
 0x1a0   : > { %v3507_v17 = vpop.permute.xlu0 %3506 }
 0x1a1   : > { %v2825_v16 = vpop.permute.xlu1 %2824  ;;  %3542 = vst.msk [vmem:[#allocation2 + $0x128] sm:$0xff] %vm9077_vm13, %v3507_v17  ;;  %vm9093_vm13 = vmmov %vm9080_vm4 }
 0x1a2   : > { %2861 = vst.msk [vmem:[#allocation2 + $0x120] sm:$0xff] %vm9078_vm3, %v2825_v16  ;;  %vm9094_vm3 = vmmov %vm9083_vm0 }
 0x1a4   : > { %v3576_v2 = vpop.permute.xlu0 %3575 }
 0x1a5   : > { %v1729_v1 = vpop.permute.xlu1 %1728  ;;  %3611 = vst.msk [vmem:[#allocation2 + $0x128] sm:$0xff] %vm9079_vm11, %v3576_v2  ;;  %vm9095_vm11 = vmmov %vm9083_vm0 }
 0x1a6   : > { %1764 = vst.msk [vmem:[#allocation2 + $0x138] sm:$0xff] %vm9080_vm4, %v1729_v1  ;;  %vm9096_vm4 = vmmov %vm9090_vm1 }
 0x1a9   : > { %v3931_v45 = vld [vmem:[#allocation2 + $0x120] sm:$0xff] }
 0x1aa   : > { %v8328_v52 = vpop.f32.mrb[0].mxu1 }
 0x1ab   : > { %v8331_v51 = vpop.f32.mrb[1].mxu1 }
 0x1ac   : > { %v3932_v28 = vld [vmem:[#allocation2 + $0x128] sm:$0xff]  ;;  %v8333_v40 = vpop.f32.mrb[2].mxu1 }
 0x1ad   : > { %4270 = vmatprep.mubr.bf16.mxu0 %v3932_v28  ;;  %v8336_v33 = vpop.f32.mrb[3].mxu1 }
 0x1ae   : > { %4271 = vmatmul.mubr.bf16.gmra.mrb[48].mxu0 %v3931_v45 }
 0x1af   : > { %v3177_v21 = vpop.permute.xlu0 %3176 }
 0x1b0   : > { %3211 = vst.msk [vmem:[#allocation2 + $0x140] sm:$0xff] %vm9081_vm6, %v3177_v21  ;;  %vm9097_vm6 = vmmov %vm9090_vm1 }
 0x1b1   : > { %v2494_v43 = vpop.permute.xlu1 %2493 }
 0x1b2   : > { %2529 = vst.msk [vmem:[#allocation2 + $0x138] sm:$0xff] %vm9082_vm12, %v2494_v43  ;;  %v8341_v12 = vpop.f32.mrb[4].mxu1  ;;  %vm9098_vm12 = vcmask 261120  }
 0x1b3   : > { %v8343_v11 = vpop.f32.mrb[5].mxu1 }
 0x1b4   : > { %v8345_v42 = vpop.f32.mrb[6].mxu1 }
 0x1b5   : > { %v3509_v5 = vpop.permute.xlu0 %3508  ;;  %v8347_v10 = vpop.f32.mrb[7].mxu1 }
 0x1b6   : > { %3543 = vst.msk [vmem:[#allocation2 + $0x140] sm:$0xff] %vm9083_vm0, %v3509_v5  ;;  %vm9099_vm0 = vmmov %vm9098_vm12 }
 0x1b7   : > { %v2827_v14 = vpop.permute.xlu1 %2826 }
 0x1b8   : > { %2862 = vst.msk [vmem:[#allocation2 + $0x138] sm:$0xff] %vm9084_vm2, %v2827_v14  ;;  %vm9100_vm2 = vmmov %vm9099_vm0  ;;  %v5906_v14 = vld [vmem:[%s8716_s3] sm:$0xff]  }
 0x1b9   : > { %v3578_v34 = vpop.permute.xlu0 %3577  ;;  %5779 = vmatprep.subr.bf16.mxu1 %v5906_v14 }
 0x1ba   : > { %3612 = vst.msk [vmem:[#allocation2 + $0x140] sm:$0xff] %vm9085_vm5, %v3578_v34  ;;  %vm9101_vm5 = vmmov %vm9099_vm0  ;;  %5780 = vmatpush3.bf16.msra.mxu1 %v5906_v14 }
 0x1bb   : > { %v1731_v53 = vpop.permute.xlu1 %1730 }
 0x1bc   : > { %1765 = vst.msk [vmem:[#allocation2 + $0x150] sm:$0xff] %vm9086_vm15, %v1731_v53  ;;  %vm9102_vm15 = vmmov %vm9099_vm0 }
 0x1bf   : > { %v3934_v54 = vld [vmem:[#allocation2 + $0x138] sm:$0xff] }
 0x1c1   : > { %v3935_v35 = vld [vmem:[#allocation2 + $0x140] sm:$0xff] }
 0x1c2   : > { %4278 = vmatprep.mubr.bf16.mxu0 %v3935_v35 }
 0x1c3   : > { %4279 = vmatmul.mubr.bf16.gmra.mrb[52].mxu0 %v3934_v54 }
 0x1c4   : > { %v3179_v22 = vpop.permute.xlu0 %3178 }
 0x1c5   : > { %v2496_v47 = vpop.permute.xlu1 %2495  ;;  %3212 = vst.msk [vmem:[#allocation2 + $0x158] sm:$0xff] %vm9087_vm7, %v3179_v22  ;;  %vm9103_vm7 = vmmov %vm9099_vm0 }
 0x1c6   : > { %2530 = vst.msk [vmem:[#allocation2 + $0x150] sm:$0xff] %vm9088_vm10, %v2496_v47  ;;  %vm9104_vm10 = vmmov %vm9099_vm0 }
 0x1c7   : > { %v8353_v23 = vpop.f32.mrb[8].mxu1 }
 0x1c8   : > { %v8357_v19 = vpop.f32.mrb[9].mxu1 }
 0x1c9   : > { %v8359_v57 = vpop.f32.mrb[10].mxu1 }
 0x1ca   : > { %v8363_v24 = vpop.f32.mrb[11].mxu1 }
 0x1cf   : > { %v3511_v61 = vpop.permute.xlu0 %3510 }
 0x1d0   : > { %v2829_v29 = vpop.permute.xlu1 %2828  ;;  %3544 = vst.msk [vmem:[#allocation2 + $0x158] sm:$0xff] %vm9089_vm14, %v3511_v61  ;;  %vm9105_vm14 = vmmov %vm9099_vm0 }
 0x1d1   : > { %2863 = vst.msk [vmem:[#allocation2 + $0x150] sm:$0xff] %vm9090_vm1, %v2829_v29  ;;  %vm9106_vm1 = vmmov %vm9099_vm0 }
 0x1d3   : > { %v3580_v9 = vpop.permute.xlu0 %3579 }
 0x1d4   : > { %v1733_v27 = vpop.permute.xlu1 %1732  ;;  %3613 = vst.msk [vmem:[#allocation2 + $0x158] sm:$0xff] %vm9091_vm8, %v3580_v9  ;;  %vm9107_vm8 = vmmov %vm9099_vm0 }
 0x1d5   : > { %1766 = vst.msk [vmem:[#allocation2 + $0x168] sm:$0xff] %vm9092_vm9, %v1733_v27  ;;  %v8408_v27 = vld [vmem:[%s8715_s2] ss:$0 sm:$0xff]  ;;  %vm9108_vm9 = vmmov %vm9099_vm0 }
 0x1d6   : > { %v5593_v63 = vpop.f32.mrb[0].mxu0 }
 0x1d7   : > { %v3181_v6 = vpop.permute.xlu0 %3180  ;;  %v5594_v3 = vpop.f32.mrb[1].mxu0 }
 0x1d8   : > { %v2498_v48 = vpop.permute.xlu1 %2497  ;;  %3213 = vst.msk [vmem:[#allocation2 + $0x170] sm:$0xff] %vm9093_vm13, %v3181_v6  ;;  %v3937_v26 = vld [vmem:[#allocation2 + $0x150] sm:$0xff]  ;;  %v8366_v58 = vadd.f32 %v5594_v3, %v5593_v63  ;;  %v5596_v56 = vpop.f32.mrb[2].mxu0  ;;  %vm9109_vm13 = vmmov %vm9099_vm0 }
 0x1d9   : > { %2531 = vst.msk [vmem:[#allocation2 + $0x168] sm:$0xff] %vm9094_vm3, %v2498_v48  ;;  %v5597_v36 = vpop.f32.mrb[3].mxu0  ;;  %vm9110_vm3 = vmmov %vm9099_vm0 }
 0x1da   : > { %v8368_v25 = vadd.f32 %v5597_v36, %v5596_v56 }
 0x1db   : > { %v3513_v7 = vpop.permute.xlu0 %3512  ;;  %v3938_v62 = vld [vmem:[#allocation2 + $0x158] sm:$0xff] }
 0x1dc   : > { %v2831_v0 = vpop.permute.xlu1 %2830  ;;  %3545 = vst.msk [vmem:[#allocation2 + $0x170] sm:$0xff] %vm9095_vm11, %v3513_v7  ;;  %4286 = vmatprep.mubr.bf16.mxu0 %v3938_v62  ;;  %vm9111_vm11 = vmmov %vm9099_vm0 }
 0x1dd   : > { %2864 = vst.msk [vmem:[#allocation2 + $0x168] sm:$0xff] %vm9096_vm4, %v2831_v0  ;;  %4287 = vmatmul.mubr.bf16.gmra.mrb[56].mxu0 %v3937_v26  ;;  %vm9112_vm4 = vmmov %vm9099_vm0 }
 0x1df   : > { %v3582_v37 = vpop.permute.xlu0 %3581  ;;  %v5599_v50 = vpop.f32.mrb[4].mxu0 }
 0x1e0   : > { %3614 = vst.msk [vmem:[#allocation2 + $0x170] sm:$0xff] %vm9097_vm6, %v3582_v37  ;;  %v5600_v38 = vpop.f32.mrb[5].mxu0  ;;  %vm9113_vm6 = vmmov %vm9099_vm0 }
 0x1e1   : > { %v8371_v32 = vadd.f32 %v5600_v38, %v5599_v50  ;;  %v5602_v4 = vpop.f32.mrb[6].mxu0 }
 0x1e2   : > { %v5603_v15 = vpop.f32.mrb[7].mxu0 }
 0x1e3   : > { %v8373_v41 = vadd.f32 %v5603_v15, %v5602_v4 }
 0x1e4   : > { %v3940_v55 = vld [vmem:[#allocation2 + $0x168] sm:$0xff] }
 0x1e7   : > { %v3941_v46 = vld [vmem:[#allocation2 + $0x170] sm:$0xff]  ;;  %v8376_v49 = vpop.f32.mrb[12].mxu1  ;;  %v5605_v44 = vpop.f32.mrb[8].mxu0 }
 0x1e8   : > { %4294 = vmatprep.mubr.bf16.mxu0 %v3941_v46  ;;  %v8379_v60 = vpop.f32.mrb[13].mxu1  ;;  %v5606_v18 = vpop.f32.mrb[9].mxu0 }
 0x1e9   : > { %4295 = vmatmul.mubr.bf16.gmra.mrb[60].mxu0 %v3940_v55  ;;  %v8381_v59 = vpop.f32.mrb[14].mxu1  ;;  %v8385_v39 = vadd.f32 %v5606_v18, %v5605_v44  ;;  %v5608_v17 = vpop.f32.mrb[10].mxu0 }
 0x1ea   : > { %5747 = vmatprep.mubr.msk.bf16.mxu0 %vm9098_vm12, %v3897_v31  ;;  %v8383_v30 = vpop.f32.mrb[15].mxu1  ;;  %v5609_v16 = vpop.f32.mrb[11].mxu0  ;;  %vm9114_vm12 = vmmov %vm9099_vm0 }
 0x1eb   : > { %v8387_v2 = vadd.f32 %v5609_v16, %v5608_v17 }
 0x1f1   : > { %5748 = vmatmul.mubr.msk.bf16.vlgmr.msra.gmra.mrb[64].mxu0 %vm9099_vm0, %v3900_v20 }
 0x1f2   : > { %5751 = vmatprep.mubr.msk.bf16.mxu0 %vm9100_vm2, %v3903_v8  ;;  %vm9115_vm2 = vmmov %vm9099_vm0 }
 0x1f9   : > { %5752 = vmatmul.mubr.msk.bf16.gmra.mrb[68].mxu0 %vm9101_vm5, %v3906_v13  ;;  %vm9116_vm5 = vmmov %vm9099_vm0 }
 0x204   : > { %v5611_v1 = vpop.f32.mrb[12].mxu0 }
 0x205   : > { %v5612_v45 = vpop.f32.mrb[13].mxu0 }
 0x206   : > { %v8390_v21 = vadd.f32 %v5612_v45, %v5611_v1  ;;  %v5614_v28 = vpop.f32.mrb[14].mxu0 }
 0x207   : > { %v5615_v43 = vpop.f32.mrb[15].mxu0 }
 0x208   : > { %v8392_v5 = vadd.f32 %v5615_v43, %v5614_v28 }
 0x21b   : > { %v8397_v34 = vpop.f32.mrb[16].mxu1 }
 0x21c   : > { %v8399_v53 = vpop.f32.mrb[17].mxu1 }
 0x21d   : > { %v5617_v54 = vpop.f32.mrb[16].mxu0  ;;  %v8401_v35 = vpop.f32.mrb[18].mxu1 }
 0x21e   : > { %v5618_v22 = vpop.f32.mrb[17].mxu0  ;;  %v8403_v47 = vpop.f32.mrb[19].mxu1 }
 0x21f   : > { %v5619_v61 = vadd.f32 %v5618_v22, %v5617_v54  ;;  %v5620_v29 = vpop.f32.mrb[18].mxu0 }
 0x220   : > { %v5621_v9 = vpop.f32.mrb[19].mxu0 }
 0x221   : > { %v5622_v6 = vadd.f32 %v5621_v9, %v5620_v29  ;;  %v4209_v48 = vadd.f32 %v5619_v61, %v8408_v27 }
 0x223   : > { %v4370_v26 = vadd.f32 %v8331_v51, %v4209_v48  ;;  %v4212_v7 = vadd.f32 %v5622_v6, %v8408_v27 }
 0x225   : > { %v4373_v62 = vadd.f32 %v8336_v33, %v4212_v7  ;;  %v4472_v0 = vmax.f32 %v4370_v26, 0.0  ;;  %v5907_v33 = vld [vmem:[%s8716_s3 + $0x8] sm:$0xff]  }
 0x226   : > { %5781 = vmatprep.subr.bf16.mxu1 %v5907_v33 }
 0x227   : > { %v4473_v37 = vmax.f32 %v4373_v62, 0.0  ;;  %5782 = vmatpush3.bf16.msra.mxu1 %v5907_v33 }
 0x229   : > { %v8414_v63 = vpack.c.bf16 %v4473_v37, %v4472_v0 }
 0x22f   : > { %v5623_v3 = vpop.f32.mrb[20].mxu0 }
 0x230   : > { %v5624_v55 = vpop.f32.mrb[21].mxu0 }
 0x231   : > { %v5625_v56 = vadd.f32 %v5624_v55, %v5623_v3  ;;  %v5626_v46 = vpop.f32.mrb[22].mxu0 }
 0x232   : > { %v5627_v31 = vpop.f32.mrb[23].mxu0 }
 0x233   : > { %v4217_v36 = vadd.f32 %v5625_v56, %v8408_v27  ;;  %v5628_v50 = vadd.f32 %v5627_v31, %v5626_v46 }
 0x235   : > { %v4378_v38 = vadd.f32 %v8328_v52, %v4217_v36  ;;  %v4220_v51 = vadd.f32 %v5628_v50, %v8408_v27 }
 0x237   : > { %v4381_v20 = vadd.f32 %v8333_v40, %v4220_v51  ;;  %v4474_v4 = vmax.f32 %v4378_v38, 0.0 }
 0x239   : > { %v4475_v8 = vmax.f32 %v4381_v20, 0.0 }
 0x23b   : > { %v8423_v15 = vpack.c.bf16 %v4475_v8, %v4474_v4 }
 0x23d   : > { %v8425_v44 = vpop.f32.mrb[20].mxu1 }
 0x23e   : > { %v8427_v18 = vpop.f32.mrb[21].mxu1 }
 0x23f   : > { %v8429_v13 = vpop.f32.mrb[22].mxu1 }
 0x240   : > { %v8431_v52 = vpop.f32.mrb[23].mxu1 }
 0x245   : > { %v5629_v17 = vpop.f32.mrb[24].mxu0 }
 0x246   : > { %v5630_v40 = vpop.f32.mrb[25].mxu0 }
 0x247   : > { %v5631_v16 = vadd.f32 %v5630_v40, %v5629_v17  ;;  %v5632_v1 = vpop.f32.mrb[26].mxu0 }
 0x248   : > { %v5633_v45 = vpop.f32.mrb[27].mxu0 }
 0x249   : > { %v5634_v28 = vadd.f32 %v5633_v45, %v5632_v1  ;;  %v4225_v43 = vadd.f32 %v5631_v16, %v8408_v27 }
 0x24b   : > { %v4386_v14 = vadd.f32 %v8343_v11, %v4225_v43  ;;  %v4228_v54 = vadd.f32 %v5634_v28, %v8408_v27 }
 0x24d   : > { %v4389_v22 = vadd.f32 %v8347_v10, %v4228_v54  ;;  %v5635_v61 = vpop.f32.mrb[28].mxu0  ;;  %v4476_v9 = vmax.f32 %v4386_v14, 0.0 }
 0x24e   : > { %v5636_v29 = vpop.f32.mrb[29].mxu0 }
 0x24f   : > { %v4477_v6 = vmax.f32 %v4389_v22, 0.0  ;;  %v5637_v48 = vadd.f32 %v5636_v29, %v5635_v61  ;;  %v5638_v26 = vpop.f32.mrb[30].mxu0 }
 0x250   : > { %v5639_v7 = vpop.f32.mrb[31].mxu0 }
 0x251   : > { %v8437_v62 = vpack.c.bf16 %v4477_v6, %v4476_v9  ;;  %v4233_v0 = vadd.f32 %v5637_v48, %v8408_v27  ;;  %v5640_v37 = vadd.f32 %v5639_v7, %v5638_v26 }
 0x253   : > { %v4394_v3 = vadd.f32 %v8341_v12, %v4233_v0  ;;  %v4236_v11 = vadd.f32 %v5640_v37, %v8408_v27 }
 0x255   : > { %v4397_v55 = vadd.f32 %v8345_v42, %v4236_v11  ;;  %v5641_v56 = vpop.f32.mrb[32].mxu0  ;;  %v4478_v46 = vmax.f32 %v4394_v3, 0.0 }
 0x256   : > { %v5642_v10 = vpop.f32.mrb[33].mxu0 }
 0x257   : > { %v4479_v31 = vmax.f32 %v4397_v55, 0.0  ;;  %v5643_v36 = vadd.f32 %v5642_v10, %v5641_v56  ;;  %v5644_v50 = vpop.f32.mrb[34].mxu0 }
 0x258   : > { %v5645_v38 = vpop.f32.mrb[35].mxu0 }
 0x259   : > { %v8443_v51 = vpack.c.bf16 %v4479_v31, %v4478_v46  ;;  %v5646_v20 = vadd.f32 %v5645_v38, %v5644_v50  ;;  %v4241_v33 = vadd.f32 %v5643_v36, %v8408_v27 }
 0x25b   : > { %v4402_v4 = vadd.f32 %v8357_v19, %v4241_v33  ;;  %v4244_v12 = vadd.f32 %v5646_v20, %v8408_v27 }
 0x25d   : > { %v4405_v8 = vadd.f32 %v8363_v24, %v4244_v12  ;;  %v5647_v17 = vpop.f32.mrb[36].mxu0  ;;  %v4480_v40 = vmax.f32 %v4402_v4, 0.0 }
 0x25e   : > { %v5648_v42 = vpop.f32.mrb[37].mxu0 }
 0x25f   : > { %v4481_v16 = vmax.f32 %v4405_v8, 0.0  ;;  %v5649_v1 = vadd.f32 %v5648_v42, %v5647_v17  ;;  %v5650_v45 = vpop.f32.mrb[38].mxu0  ;;  %v8472_v42 = vld [vmem:[%s8718_s5] sm:$0xff]  }
 0x260   : > { %v5651_v28 = vpop.f32.mrb[39].mxu0  ;;  %5815 = vmatprep.subr.bf16.mxu1 %v8472_v42 }
 0x261   : > { %v8449_v43 = vpack.c.bf16 %v4481_v16, %v4480_v40  ;;  %v4249_v14 = vadd.f32 %v5649_v1, %v8408_v27  ;;  %v5652_v54 = vadd.f32 %v5651_v28, %v5650_v45 }
 0x263   : > { %v4410_v22 = vadd.f32 %v8353_v23, %v4249_v14  ;;  %v4252_v19 = vadd.f32 %v5652_v54, %v8408_v27 }
 0x265   : > { %v4413_v61 = vadd.f32 %v8359_v57, %v4252_v19  ;;  %v4482_v29 = vmax.f32 %v4410_v22, 0.0  ;;  %v5653_v6 = vpop.f32.mrb[40].mxu0 }
 0x266   : > { %v5654_v48 = vpop.f32.mrb[41].mxu0 }
 0x267   : > { %v4483_v24 = vmax.f32 %v4413_v61, 0.0  ;;  %v5655_v26 = vadd.f32 %v5654_v48, %v5653_v6  ;;  %v5656_v7 = vpop.f32.mrb[42].mxu0 }
 0x268   : > { %v5657_v0 = vpop.f32.mrb[43].mxu0 }
 0x269   : > { %v8455_v9 = vpack.c.bf16 %v4483_v24, %v4482_v29  ;;  %v5658_v37 = vadd.f32 %v5657_v0, %v5656_v7  ;;  %v4257_v3 = vadd.f32 %v5655_v26, %v8408_v27 }
 0x26b   : > { %v4418_v11 = vadd.f32 %v8379_v60, %v4257_v3  ;;  %v4260_v23 = vadd.f32 %v5658_v37, %v8408_v27 }
 0x26d   : > { %v4421_v55 = vadd.f32 %v8383_v30, %v4260_v23  ;;  %v4484_v56 = vmax.f32 %v4418_v11, 0.0  ;;  %v5659_v46 = vpop.f32.mrb[44].mxu0 }
 0x26e   : > { %v5660_v31 = vpop.f32.mrb[45].mxu0 }
 0x26f   : > { %v4485_v57 = vmax.f32 %v4421_v55, 0.0  ;;  %v5661_v36 = vadd.f32 %v5660_v31, %v5659_v46  ;;  %v5662_v50 = vpop.f32.mrb[46].mxu0 }
 0x270   : > { %v5663_v38 = vpop.f32.mrb[47].mxu0 }
 0x271   : > { %v8461_v10 = vpack.c.bf16 %v4485_v57, %v4484_v56  ;;  %v4265_v20 = vadd.f32 %v5661_v36, %v8408_v27  ;;  %v5664_v33 = vadd.f32 %v5663_v38, %v5662_v50 }
 0x273   : > { %v4426_v4 = vadd.f32 %v8376_v49, %v4265_v20  ;;  %v4268_v60 = vadd.f32 %v5664_v33, %v8408_v27 }
 0x275   : > { %v4429_v12 = vadd.f32 %v8381_v59, %v4268_v60  ;;  %v4486_v8 = vmax.f32 %v4426_v4, 0.0 }
 0x277   : > { %v4487_v30 = vmax.f32 %v4429_v12, 0.0 }
 0x279   : > { %v8467_v17 = vpack.c.bf16 %v4487_v30, %v4486_v8 }
 0x281   : > { %v5665_v40 = vpop.f32.mrb[48].mxu0 }
 0x282   : > { %v5666_v16 = vpop.f32.mrb[49].mxu0 }
 0x283   : > { %v5667_v1 = vadd.f32 %v5666_v16, %v5665_v40  ;;  %v5668_v45 = vpop.f32.mrb[50].mxu0 }
 0x284   : > { %v5669_v49 = vpop.f32.mrb[51].mxu0 }
 0x285   : > { %v5670_v28 = vadd.f32 %v5669_v49, %v5668_v45  ;;  %v4273_v14 = vadd.f32 %v5667_v1, %v8408_v27 }
 0x287   : > { %v4434_v59 = vadd.f32 %v8399_v53, %v4273_v14  ;;  %v4276_v54 = vadd.f32 %v5670_v28, %v8408_v27  ;;  %v4185_v28 = vadd.f32 %v8371_v32, %v8408_v27 }
 0x289   : > { %v4437_v22 = vadd.f32 %v8403_v47, %v4276_v54  ;;  %v4488_v19 = vmax.f32 %v4434_v59, 0.0  ;;  %v4177_v59 = vadd.f32 %v8366_v58, %v8408_v27 }
 0x28b   : > { %v4489_v61 = vmax.f32 %v4437_v22, 0.0 }
 0x28d   : > { %v8479_v29 = vpack.c.bf16 %v4489_v61, %v4488_v19  ;;  %v4188_v19 = vadd.f32 %v8373_v41, %v8408_v27 }
 0x296   : > { %v5671_v24 = vpop.f32.mrb[52].mxu0 }
 0x297   : > { %v5672_v6 = vpop.f32.mrb[53].mxu0 }
 0x298   : > { %v5673_v48 = vadd.f32 %v5672_v6, %v5671_v24  ;;  %v5674_v26 = vpop.f32.mrb[54].mxu0 }
 0x299   : > { %v5675_v7 = vpop.f32.mrb[55].mxu0 }
 0x29a   : > { %v4281_v0 = vadd.f32 %v5673_v48, %v8408_v27  ;;  %v5676_v37 = vadd.f32 %v5675_v7, %v5674_v26  ;;  %v4180_v48 = vadd.f32 %v8368_v25, %v8408_v27  ;;  %v4204_v25 = vadd.f32 %v8392_v5, %v8408_v27 }
 0x29c   : > { %v4442_v3 = vadd.f32 %v8397_v34, %v4281_v0  ;;  %v4284_v53 = vadd.f32 %v5676_v37, %v8408_v27 }
 0x29e   : > { %v4445_v11 = vadd.f32 %v8401_v35, %v4284_v53  ;;  %v4490_v23 = vmax.f32 %v4442_v3, 0.0 }
 0x2a0   : > { %v4491_v47 = vmax.f32 %v4445_v11, 0.0  ;;  %v4201_v11 = vadd.f32 %v8390_v21, %v8408_v27  ;;  %v4196_v21 = vadd.f32 %v8387_v2, %v8408_v27  ;;  %v8547_v2 = vld [vmem:[%s8717_s4] ss:$0 sm:$0xff] }
 0x2a2   : > { %v8485_v55 = vpack.c.bf16 %v4491_v47, %v4490_v23  ;;  %v4193_v47 = vadd.f32 %v8385_v39, %v8408_v27 }
 0x2b0   : > { %v5677_v56 = vpop.f32.mrb[56].mxu0 }
 0x2b1   : > { %v5678_v57 = vpop.f32.mrb[57].mxu0 }
 0x2b2   : > { %v5679_v46 = vadd.f32 %v5678_v57, %v5677_v56  ;;  %v5680_v31 = vpop.f32.mrb[58].mxu0 }
 0x2b3   : > { %v5681_v36 = vpop.f32.mrb[59].mxu0 }
 0x2b4   : > { %v5682_v50 = vadd.f32 %v5681_v36, %v5680_v31  ;;  %v4289_v38 = vadd.f32 %v5679_v46, %v8408_v27  ;;  %v5909_v46 = vld [vmem:[%s8718_s5 + $0x8] sm:$0xff]  }
 0x2b6   : > { %v4450_v20 = vadd.f32 %v8427_v18, %v4289_v38  ;;  %v4292_v34 = vadd.f32 %v5682_v50, %v8408_v27 }
 0x2b8   : > { %v4453_v33 = vadd.f32 %v8431_v52, %v4292_v34  ;;  %v4492_v4 = vmax.f32 %v4450_v20, 0.0 }
 0x2ba   : > { %v4493_v35 = vmax.f32 %v4453_v33, 0.0 }
 0x2bc   : > { %v8491_v60 = vpack.c.bf16 %v4493_v35, %v4492_v4  ;;  %v5683_v12 = vpop.f32.mrb[60].mxu0 }
 0x2bd   : > { %v5684_v8 = vpop.f32.mrb[61].mxu0 }
 0x2be   : > { %v5685_v30 = vadd.f32 %v5684_v8, %v5683_v12  ;;  %v5686_v40 = vpop.f32.mrb[62].mxu0 }
 0x2bf   : > { %v5687_v16 = vpop.f32.mrb[63].mxu0 }
 0x2c0   : > { %v4297_v1 = vadd.f32 %v5685_v30, %v8408_v27  ;;  %v5688_v45 = vadd.f32 %v5687_v16, %v5686_v40 }
 0x2c2   : > { %v4458_v49 = vadd.f32 %v8425_v44, %v4297_v1  ;;  %v4300_v18 = vadd.f32 %v5688_v45, %v8408_v27 }
 0x2c4   : > { %v4461_v52 = vadd.f32 %v8429_v13, %v4300_v18  ;;  %v5749_v14 = vpop.f32.mrb[64].mxu0  ;;  %v4494_v61 = vmax.f32 %v4458_v49, 0.0 }
 0x2c5   : > { %v4346_v54 = vadd.f32 %v5749_v14, %v4185_v28  ;;  %v4337_v22 = vpop.f32.mrb[65].mxu0 }
 0x2c6   : > { %v4495_v24 = vmax.f32 %v4461_v52, 0.0  ;;  %v4338_v6 = vadd.f32 %v4337_v22, %v4177_v59  ;;  %v5750_v44 = vpop.f32.mrb[66].mxu0 }
 0x2c7   : > { %v4349_v26 = vadd.f32 %v5750_v44, %v4188_v19  ;;  %v4340_v32 = vpop.f32.mrb[67].mxu0  ;;  %v4466_v0 = vmax.f32 %v4346_v54, 0.0 }
 0x2c8   : > { %v4511_v7 = vpack.c.bf16 %v4495_v24, %v4494_v61  ;;  %v4341_v13 = vadd.f32 %v4340_v32, %v4180_v48  ;;  %v4464_v3 = vmax.f32 %v4338_v6, 0.0 }
 0x2c9   : > { %v4467_v37 = vmax.f32 %v4349_v26, 0.0 }
 0x2ca   : > { %v4465_v58 = vmax.f32 %v4341_v13, 0.0 }
 0x2cb   : > { %v4497_v53 = vpack.c.bf16 %v4467_v37, %v4466_v0 }
 0x2cc   : > { %v4496_v41 = vpack.c.bf16 %v4465_v58, %v4464_v3  ;;  %v5753_v23 = vpop.f32.mrb[68].mxu0 }
 0x2cd   : > { %v4362_v56 = vadd.f32 %v5753_v23, %v4201_v11  ;;  %v4353_v57 = vpop.f32.mrb[69].mxu0 }
 0x2ce   : > { %v4354_v31 = vadd.f32 %v4353_v57, %v4193_v47  ;;  %v5754_v36 = vpop.f32.mrb[70].mxu0  ;;  %5783 = vmatprep.mubr.msk.bf16.mxu1 %vm9102_vm15, %v4496_v41  ;;  %vm9117_vm15 = vmmov %vm9099_vm0 }
 0x2cf   : > { %v4365_v50 = vadd.f32 %v5754_v36, %v4204_v25  ;;  %v4356_v38 = vpop.f32.mrb[71].mxu0  ;;  %5784 = vmatmul.mubr.msk.bf16.vlgmr.msra.gmra.mrb[24].mxu1 %vm9103_vm7, %v4497_v53  ;;  %v4470_v20 = vmax.f32 %v4362_v56, 0.0  ;;  %vm9118_vm7 = vmmov %vm9099_vm0 }
 0x2d0   : > { %v4357_v39 = vadd.f32 %v4356_v38, %v4196_v21  ;;  %5816 = vmatpush3.bf16.msra.mxu1 %v8472_v42  ;;  %v4468_v34 = vmax.f32 %v4354_v31, 0.0 }
 0x2d1   : > { %v4471_v5 = vmax.f32 %v4365_v50, 0.0  ;;  %5817 = vmatprep.subr.bf16.mxu1 %v5909_v46 }
 0x2d2   : > { %v4469_v33 = vmax.f32 %v4357_v39, 0.0 }
 0x2d3   : > { %v4499_v4 = vpack.c.bf16 %v4471_v5, %v4470_v20 }
 0x2d4   : > { %v4498_v35 = vpack.c.bf16 %v4469_v33, %v4468_v34  ;;  %5818 = vmatpush3.bf16.msra.mxu1 %v5909_v46 }
 0x2d6   : > { %5787 = vmatprep.mubr.msk.bf16.mxu1 %vm9104_vm10, %v4498_v35  ;;  %vm9119_vm10 = vmmov %vm9099_vm0 }
 0x2d7   : > { %5788 = vmatmul.mubr.msk.bf16.gmra.mrb[28].mxu1 %vm9105_vm14, %v4499_v4  ;;  %vm9120_vm14 = vmmov %vm9099_vm0 }
 0x2d8   : > { %5791 = vmatprep.mubr.msk.bf16.mxu1 %vm9106_vm1, %v8414_v63  ;;  %vm9121_vm1 = vmmov %vm9099_vm0 }
 0x2df   : > { %5792 = vmatmul.mubr.msk.bf16.gmra.mrb[32].mxu1 %vm9107_vm8, %v8423_v15  ;;  %vm9122_vm8 = vmmov %vm9099_vm0 }
 0x2e0   : > { %5795 = vmatprep.mubr.msk.bf16.mxu1 %vm9108_vm9, %v8437_v62  ;;  %vm9123_vm9 = vmmov %vm9099_vm0 }
 0x2e7   : > { %5796 = vmatmul.mubr.msk.bf16.gmra.mrb[36].mxu1 %vm9109_vm13, %v8443_v51  ;;  %vm9124_vm13 = vmmov %vm9099_vm0 }
 0x2e8   : > { %5799 = vmatprep.mubr.msk.bf16.mxu1 %vm9110_vm3, %v8449_v43  ;;  %vm9125_vm3 = vmmov %vm9099_vm0 }
 0x2ef   : > { %5800 = vmatmul.mubr.msk.bf16.gmra.mrb[40].mxu1 %vm9111_vm11, %v8455_v9  ;;  %vm9126_vm11 = vmmov %vm9099_vm0 }
 0x2f0   : > { %5803 = vmatprep.mubr.msk.bf16.mxu1 %vm9112_vm4, %v8461_v10  ;;  %vm9127_vm4 = vmmov %vm9099_vm0 }
 0x2f7   : > { %5804 = vmatmul.mubr.msk.bf16.gmra.mrb[44].mxu1 %vm9113_vm6, %v8467_v17  ;;  %vm9128_vm6 = vmmov %vm9099_vm0 }
 0x2f8   : > { %5807 = vmatprep.mubr.msk.bf16.mxu1 %vm9114_vm12, %v8479_v29  ;;  %vm9129_vm12 = vmmov %vm9099_vm0 }
 0x2ff   : > { %5808 = vmatmul.mubr.msk.bf16.gmra.mrb[48].mxu1 %vm9099_vm0, %v8485_v55 }
 0x300   : > { %5811 = vmatprep.mubr.msk.bf16.mxu1 %vm9115_vm2, %v8491_v60  ;;  %vm9130_vm2 = vmmov %vm9099_vm0 }
 0x307   : > { %5812 = vmatmul.mubr.msk.bf16.gmra.mrb[52].mxu1 %vm9116_vm5, %v4511_v7  ;;  %vm9131_vm5 = vmmov %vm9099_vm0 }
 0x3a2   : > { %v5785_v27 = vpop.f32.mrb[24].mxu1 }
 0x3a3   : > { %v4626_v63 = vadd.f32 %v5785_v27, %v8547_v2  ;;  %v4617_v15 = vpop.f32.mrb[25].mxu1 }
 0x3a4   : > { %v4618_v62 = vadd.f32 %v8547_v2, %v4617_v15  ;;  %v5786_v51 = vpop.f32.mrb[26].mxu1 }
 0x3a5   : > { %v4629_v43 = vadd.f32 %v5786_v51, %v8547_v2  ;;  %v4620_v9 = vpop.f32.mrb[27].mxu1  ;;  %v4746_v17 = vmax.f32 %v4626_v63, 0.0 }
 0x3a6   : > { %v4621_v10 = vadd.f32 %v8547_v2, %v4620_v9  ;;  %v4744_v29 = vmax.f32 %v4618_v62, 0.0 }
 0x3a7   : > { %v4747_v42 = vmax.f32 %v4629_v43, 0.0 }
 0x3a8   : > { %v4745_v55 = vmax.f32 %v4621_v10, 0.0 }
 0x3a9   : > { %v4777_v60 = vpack.c.bf16 %v4747_v42, %v4746_v17 }
 0x3aa   : > { %v4776_v12 = vpack.c.bf16 %v4745_v55, %v4744_v29  ;;  %v5789_v8 = vpop.f32.mrb[28].mxu1 }
 0x3ab   : > { %v4642_v30 = vadd.f32 %v5789_v8, %v8547_v2  ;;  %v4633_v40 = vpop.f32.mrb[29].mxu1 }
 0x3ac   : > { %v4634_v16 = vadd.f32 %v8547_v2, %v4633_v40  ;;  %v5790_v1 = vpop.f32.mrb[30].mxu1  ;;  %5819 = vmatprep.mubr.msk.bf16.mxu1 %vm9117_vm15, %v4776_v12  ;;  %vm5216_vm15 = vcmask 48128  }
 0x3ad   : > { %v4645_v45 = vadd.f32 %v5790_v1, %v8547_v2  ;;  %v4636_v49 = vpop.f32.mrb[31].mxu1  ;;  %5820 = vmatmul.mubr.msk.bf16.vlgmr.msra.gmra.mrb[56].mxu1 %vm9118_vm7, %v4777_v60  ;;  %v4750_v28 = vmax.f32 %v4642_v30, 0.0 }
 0x3ae   : > { %v4637_v18 = vadd.f32 %v8547_v2, %v4636_v49  ;;  %v4748_v14 = vmax.f32 %v4634_v16, 0.0 }
 0x3af   : > { %v4751_v52 = vmax.f32 %v4645_v45, 0.0 }
 0x3b0   : > { %v4749_v59 = vmax.f32 %v4637_v18, 0.0 }
 0x3b1   : > { %v4779_v54 = vpack.c.bf16 %v4751_v52, %v4750_v28 }
 0x3b2   : > { %v4778_v22 = vpack.c.bf16 %v4749_v59, %v4748_v14  ;;  %v5793_v19 = vpop.f32.mrb[32].mxu1 }
 0x3b3   : > { %v4658_v61 = vadd.f32 %v5793_v19, %v8547_v2  ;;  %v4649_v24 = vpop.f32.mrb[33].mxu1 }
 0x3b4   : > { %v4650_v6 = vadd.f32 %v8547_v2, %v4649_v24  ;;  %v5794_v44 = vpop.f32.mrb[34].mxu1  ;;  %5823 = vmatprep.mubr.msk.bf16.mxu1 %vm9119_vm10, %v4778_v22 }
 0x3b5   : > { %v4661_v48 = vadd.f32 %v5794_v44, %v8547_v2  ;;  %v4652_v26 = vpop.f32.mrb[35].mxu1  ;;  %5824 = vmatmul.mubr.msk.bf16.gmra.mrb[60].mxu1 %vm9120_vm14, %v4779_v54  ;;  %v4754_v7 = vmax.f32 %v4658_v61, 0.0 }
 0x3b6   : > { %v4653_v32 = vadd.f32 %v8547_v2, %v4652_v26  ;;  %v4752_v0 = vmax.f32 %v4650_v6, 0.0 }
 0x3b7   : > { %v4755_v13 = vmax.f32 %v4661_v48, 0.0 }
 0x3b8   : > { %v4753_v37 = vmax.f32 %v4653_v32, 0.0 }
 0x3b9   : > { %v4781_v3 = vpack.c.bf16 %v4755_v13, %v4754_v7 }
 0x3ba   : > { %v4780_v58 = vpack.c.bf16 %v4753_v37, %v4752_v0  ;;  %v5797_v53 = vpop.f32.mrb[36].mxu1 }
 0x3bb   : > { %v4674_v11 = vadd.f32 %v5797_v53, %v8547_v2  ;;  %v4665_v41 = vpop.f32.mrb[37].mxu1 }
 0x3bc   : > { %v4666_v23 = vadd.f32 %v8547_v2, %v4665_v41  ;;  %v5798_v47 = vpop.f32.mrb[38].mxu1  ;;  %5827 = vmatprep.mubr.msk.bf16.mxu1 %vm9121_vm1, %v4780_v58 }
 0x3bd   : > { %v4677_v56 = vadd.f32 %v5798_v47, %v8547_v2  ;;  %v4668_v57 = vpop.f32.mrb[39].mxu1  ;;  %5828 = vmatmul.mubr.msk.bf16.gmra.mrb[64].mxu1 %vm9122_vm8, %v4781_v3  ;;  %v4758_v46 = vmax.f32 %v4674_v11, 0.0 }
 0x3be   : > { %v4669_v25 = vadd.f32 %v8547_v2, %v4668_v57  ;;  %v4756_v36 = vmax.f32 %v4666_v23, 0.0 }
 0x3bf   : > { %v4759_v31 = vmax.f32 %v4677_v56, 0.0 }
 0x3c0   : > { %v4757_v21 = vmax.f32 %v4669_v25, 0.0  ;;  %v8600_v25 = vld [vmem:[%s8719_s6] ss:$0 sm:$0xff] }
 0x3c1   : > { %v4783_v50 = vpack.c.bf16 %v4759_v31, %v4758_v46 }
 0x3c2   : > { %v4782_v38 = vpack.c.bf16 %v4757_v21, %v4756_v36  ;;  %v5801_v39 = vpop.f32.mrb[40].mxu1 }
 0x3c3   : > { %v4690_v20 = vadd.f32 %v5801_v39, %v8547_v2  ;;  %v4681_v5 = vpop.f32.mrb[41].mxu1 }
 0x3c4   : > { %v4682_v34 = vadd.f32 %v8547_v2, %v4681_v5  ;;  %v5802_v33 = vpop.f32.mrb[42].mxu1  ;;  %5831 = vmatprep.mubr.msk.bf16.mxu1 %vm9123_vm9, %v4782_v38 }
 0x3c5   : > { %v4693_v4 = vadd.f32 %v5802_v33, %v8547_v2  ;;  %v4684_v35 = vpop.f32.mrb[43].mxu1  ;;  %5832 = vmatmul.mubr.msk.bf16.gmra.mrb[68].mxu1 %vm9124_vm13, %v4783_v50  ;;  %v4762_v63 = vmax.f32 %v4690_v20, 0.0 }
 0x3c6   : > { %v4685_v27 = vadd.f32 %v8547_v2, %v4684_v35  ;;  %v4760_v62 = vmax.f32 %v4682_v34, 0.0 }
 0x3c7   : > { %v4763_v15 = vmax.f32 %v4693_v4, 0.0 }
 0x3c8   : > { %v4761_v51 = vmax.f32 %v4685_v27, 0.0 }
 0x3c9   : > { %v4785_v43 = vpack.c.bf16 %v4763_v15, %v4762_v63 }
 0x3ca   : > { %v4784_v9 = vpack.c.bf16 %v4761_v51, %v4760_v62  ;;  %v5805_v10 = vpop.f32.mrb[44].mxu1 }
 0x3cb   : > { %v4706_v17 = vadd.f32 %v5805_v10, %v8547_v2  ;;  %v4697_v42 = vpop.f32.mrb[45].mxu1 }
 0x3cc   : > { %v4698_v29 = vadd.f32 %v8547_v2, %v4697_v42  ;;  %v5806_v55 = vpop.f32.mrb[46].mxu1  ;;  %5835 = vmatprep.mubr.msk.bf16.mxu1 %vm9125_vm3, %v4784_v9 }
 0x3cd   : > { %v4709_v60 = vadd.f32 %v5806_v55, %v8547_v2  ;;  %v4700_v12 = vpop.f32.mrb[47].mxu1  ;;  %5836 = vmatmul.mubr.msk.bf16.gmra.mrb[72].mxu1 %vm9126_vm11, %v4785_v43  ;;  %v4766_v30 = vmax.f32 %v4706_v17, 0.0 }
 0x3ce   : > { %v4701_v8 = vadd.f32 %v8547_v2, %v4700_v12  ;;  %v4764_v16 = vmax.f32 %v4698_v29, 0.0 }
 0x3cf   : > { %v4767_v40 = vmax.f32 %v4709_v60, 0.0 }
 0x3d0   : > { %v4765_v1 = vmax.f32 %v4701_v8, 0.0 }
 0x3d1   : > { %v4787_v45 = vpack.c.bf16 %v4767_v40, %v4766_v30 }
 0x3d2   : > { %v4786_v49 = vpack.c.bf16 %v4765_v1, %v4764_v16  ;;  %v5809_v18 = vpop.f32.mrb[48].mxu1 }
 0x3d3   : > { %v4722_v28 = vadd.f32 %v5809_v18, %v8547_v2  ;;  %v4713_v52 = vpop.f32.mrb[49].mxu1 }
 0x3d4   : > { %v4714_v14 = vadd.f32 %v8547_v2, %v4713_v52  ;;  %v5810_v59 = vpop.f32.mrb[50].mxu1  ;;  %5839 = vmatprep.mubr.msk.bf16.mxu1 %vm9127_vm4, %v4786_v49 }
 0x3d5   : > { %v4725_v54 = vadd.f32 %v5810_v59, %v8547_v2  ;;  %v4716_v22 = vpop.f32.mrb[51].mxu1  ;;  %5840 = vmatmul.mubr.msk.bf16.gmra.mrb[76].mxu1 %vm9128_vm6, %v4787_v45  ;;  %v4770_v61 = vmax.f32 %v4722_v28, 0.0 }
 0x3d6   : > { %v4717_v19 = vadd.f32 %v8547_v2, %v4716_v22  ;;  %v4768_v6 = vmax.f32 %v4714_v14, 0.0 }
 0x3d7   : > { %v4771_v24 = vmax.f32 %v4725_v54, 0.0 }
 0x3d8   : > { %v4769_v44 = vmax.f32 %v4717_v19, 0.0 }
 0x3d9   : > { %v4789_v48 = vpack.c.bf16 %v4771_v24, %v4770_v61 }
 0x3da   : > { %v4788_v26 = vpack.c.bf16 %v4769_v44, %v4768_v6  ;;  %v5813_v32 = vpop.f32.mrb[52].mxu1 }
 0x3db   : > { %v4738_v7 = vadd.f32 %v5813_v32, %v8547_v2  ;;  %v4729_v13 = vpop.f32.mrb[53].mxu1 }
 0x3dc   : > { %v4730_v0 = vadd.f32 %v8547_v2, %v4729_v13  ;;  %v5814_v37 = vpop.f32.mrb[54].mxu1  ;;  %5843 = vmatprep.mubr.msk.bf16.mxu1 %vm9129_vm12, %v4788_v26 }
 0x3dd   : > { %v4741_v3 = vadd.f32 %v5814_v37, %v8547_v2  ;;  %v4732_v58 = vpop.f32.mrb[55].mxu1  ;;  %5844 = vmatmul.mubr.msk.bf16.gmra.mrb[80].mxu1 %vm9099_vm0, %v4789_v48  ;;  %v4774_v11 = vmax.f32 %v4738_v7, 0.0 }
 0x3de   : > { %v4733_v53 = vadd.f32 %v8547_v2, %v4732_v58  ;;  %v4772_v23 = vmax.f32 %v4730_v0, 0.0 }
 0x3df   : > { %v4775_v41 = vmax.f32 %v4741_v3, 0.0 }
 0x3e0   : > { %v4773_v47 = vmax.f32 %v4733_v53, 0.0 }
 0x3e1   : > { %v4791_v56 = vpack.c.bf16 %v4775_v41, %v4774_v11 }
 0x3e2   : > { %v4790_v57 = vpack.c.bf16 %v4773_v47, %v4772_v23 }
 0x3e4   : > { %5847 = vmatprep.mubr.msk.bf16.mxu1 %vm9130_vm2, %v4790_v57 }
 0x3e5   : > { %5848 = vmatmul.mubr.msk.bf16.gmra.mrb[84].mxu1 %vm9131_vm5, %v4791_v56 }
 0x480   : > { %v5821_v46 = vpop.f32.mrb[56].mxu1 }
 0x481   : > { %v4906_v31 = vadd.f32 %v5821_v46, %v8600_v25  ;;  %v4897_v36 = vpop.f32.mrb[57].mxu1 }
 0x482   : > { %v4898_v2 = vadd.f32 %v8600_v25, %v4897_v36  ;;  %v5822_v21 = vpop.f32.mrb[58].mxu1 }
 0x483   : > { %v5544_v50 = vmul.f32 -1.442695, %v4906_v31  ;;  %v4909_v38 = vadd.f32 %v5822_v21, %v8600_v25  ;;  %v4900_v39 = vpop.f32.mrb[59].mxu1 }
 0x484   : > { %v5542_v20 = vmul.f32 -1.442695, %v4898_v2  ;;  %v4901_v5 = vadd.f32 %v8600_v25, %v4900_v39 }
 0x485   : > { %5910 = vpow2.f32 %v5544_v50  ;;  %v5545_v34 = vmul.f32 -1.442695, %v4909_v38 }
 0x486   : > { %5912 = vpow2.f32 %v5542_v20  ;;  %v5543_v33 = vmul.f32 -1.442695, %v4901_v5 }
 0x487   : > { %5914 = vpow2.f32 %v5545_v34 }
 0x488   : > { %5916 = vpow2.f32 %v5543_v33  ;;  %v5825_v4 = vpop.f32.mrb[60].mxu1 }
 0x489   : > { %v4922_v35 = vadd.f32 %v5825_v4, %v8600_v25  ;;  %v4913_v27 = vpop.f32.mrb[61].mxu1 }
 0x48a   : > { %v4914_v63 = vadd.f32 %v8600_v25, %v4913_v27  ;;  %v5826_v15 = vpop.f32.mrb[62].mxu1 }
 0x48b   : > { %v5548_v62 = vmul.f32 -1.442695, %v4922_v35  ;;  %v4925_v51 = vadd.f32 %v5826_v15, %v8600_v25  ;;  %v4916_v43 = vpop.f32.mrb[63].mxu1 }
 0x48c   : > { %v5546_v9 = vmul.f32 -1.442695, %v4914_v63  ;;  %v4917_v10 = vadd.f32 %v8600_v25, %v4916_v43 }
 0x48d   : > { %5918 = vpow2.f32 %v5548_v62  ;;  %v5549_v17 = vmul.f32 -1.442695, %v4925_v51 }
 0x48e   : > { %5920 = vpow2.f32 %v5546_v9  ;;  %v5547_v42 = vmul.f32 -1.442695, %v4917_v10 }
 0x48f   : > { %v5911_v29 = vpop.eup %5910  ;;  %5922 = vpow2.f32 %v5549_v17 }
 0x490   : > { %v5913_v55 = vpop.eup %5912  ;;  %v5122_v60 = vadd.f32 1.0, %v5911_v29  ;;  %5924 = vpow2.f32 %v5547_v42  ;;  %v5829_v12 = vpop.f32.mrb[64].mxu1 }
 0x491   : > { %v5915_v8 = vpop.eup %5914  ;;  %v5120_v30 = vadd.f32 1.0, %v5913_v55  ;;  %v4938_v40 = vadd.f32 %v5829_v12, %v8600_v25  ;;  %v4929_v16 = vpop.f32.mrb[65].mxu1 }
 0x492   : > { %v5917_v1 = vpop.eup %5916  ;;  %5926 = vrcp.f32 %v5122_v60  ;;  %v5123_v45 = vadd.f32 1.0, %v5915_v8  ;;  %v4930_v49 = vadd.f32 %v8600_v25, %v4929_v16  ;;  %v5830_v18 = vpop.f32.mrb[66].mxu1 }
 0x493   : > { %5928 = vrcp.f32 %v5120_v30  ;;  %v5121_v28 = vadd.f32 1.0, %v5917_v1  ;;  %v5552_v52 = vmul.f32 -1.442695, %v4938_v40  ;;  %v4941_v14 = vadd.f32 %v5830_v18, %v8600_v25  ;;  %v4932_v59 = vpop.f32.mrb[67].mxu1 }
 0x494   : > { %5930 = vrcp.f32 %v5123_v45  ;;  %v5550_v54 = vmul.f32 -1.442695, %v4930_v49  ;;  %v4933_v22 = vadd.f32 %v8600_v25, %v4932_v59 }
 0x495   : > { %5932 = vrcp.f32 %v5121_v28  ;;  %v5553_v19 = vmul.f32 -1.442695, %v4941_v14 }
 0x496   : > { %5934 = vpow2.f32 %v5552_v52  ;;  %v5551_v61 = vmul.f32 -1.442695, %v4933_v22 }
 0x497   : > { %v5919_v24 = vpop.eup %5918  ;;  %5936 = vpow2.f32 %v5550_v54 }
 0x498   : > { %v5921_v6 = vpop.eup %5920  ;;  %v5126_v44 = vadd.f32 1.0, %v5919_v24  ;;  %5938 = vpow2.f32 %v5553_v19  ;;  %v5833_v48 = vpop.f32.mrb[68].mxu1 }
 0x499   : > { %v5923_v26 = vpop.eup %5922  ;;  %v5124_v32 = vadd.f32 1.0, %v5921_v6  ;;  %5940 = vpow2.f32 %v5551_v61  ;;  %v4954_v7 = vadd.f32 %v5833_v48, %v8600_v25  ;;  %v4945_v13 = vpop.f32.mrb[69].mxu1 }
 0x49a   : > { %v5925_v0 = vpop.eup %5924  ;;  %5942 = vrcp.f32 %v5126_v44  ;;  %v5127_v37 = vadd.f32 1.0, %v5923_v26  ;;  %v4946_v3 = vadd.f32 %v8600_v25, %v4945_v13  ;;  %v5834_v58 = vpop.f32.mrb[70].mxu1 }
 0x49b   : > { %5944 = vrcp.f32 %v5124_v32  ;;  %v5125_v53 = vadd.f32 1.0, %v5925_v0  ;;  %v5556_v11 = vmul.f32 -1.442695, %v4954_v7  ;;  %v4957_v41 = vadd.f32 %v5834_v58, %v8600_v25  ;;  %v4948_v23 = vpop.f32.mrb[71].mxu1 }
 0x49c   : > { %v5927_v47 = vpop.eup %5926  ;;  %5946 = vrcp.f32 %v5127_v37  ;;  %v5554_v56 = vmul.f32 -1.442695, %v4946_v3  ;;  %v4949_v57 = vadd.f32 %v8600_v25, %v4948_v23 }
 0x49d   : > { %v5929_v46 = vpop.eup %5928  ;;  %5219 = vst.msk [vmem:[%s8619_s16 + $0x10] sm:$0xff] %vm5216_vm15, %v5927_v47  ;;  %5948 = vrcp.f32 %v5125_v53  ;;  %v5557_v31 = vmul.f32 -1.442695, %v4957_v41 }
 0x49e   : > { %v5931_v36 = vpop.eup %5930  ;;  %5217 = vst.msk [vmem:[%s8619_s16] sm:$0xff] %vm5216_vm15, %v5929_v46  ;;  %5950 = vpow2.f32 %v5556_v11  ;;  %v5555_v2 = vmul.f32 -1.442695, %v4949_v57 }
 0x49f   : > { %v5933_v21 = vpop.eup %5932  ;;  %5220 = vst.msk [vmem:[%s8619_s16 + $0x18] sm:$0xff] %vm5216_vm15, %v5931_v36  ;;  %5952 = vpow2.f32 %v5554_v56 }
 0x4a0   : > { %v5935_v50 = vpop.eup %5934  ;;  %5218 = vst.msk [vmem:[%s8619_s16 + $0x8] sm:$0xff] %vm5216_vm15, %v5933_v21  ;;  %5954 = vpow2.f32 %v5557_v31  ;;  %v5837_v38 = vpop.f32.mrb[72].mxu1 }
 0x4a1   : > { %v5937_v39 = vpop.eup %5936  ;;  %v5130_v20 = vadd.f32 1.0, %v5935_v50  ;;  %5956 = vpow2.f32 %v5555_v2  ;;  %v4970_v5 = vadd.f32 %v5837_v38, %v8600_v25  ;;  %v4961_v34 = vpop.f32.mrb[73].mxu1 }
 0x4a2   : > { %v5939_v33 = vpop.eup %5938  ;;  %v5128_v4 = vadd.f32 1.0, %v5937_v39  ;;  %v4962_v35 = vadd.f32 %v8600_v25, %v4961_v34  ;;  %v5838_v27 = vpop.f32.mrb[74].mxu1 }
 0x4a3   : > { %v5941_v63 = vpop.eup %5940  ;;  %5958 = vrcp.f32 %v5130_v20  ;;  %v5131_v15 = vadd.f32 1.0, %v5939_v33  ;;  %v5560_v62 = vmul.f32 -1.442695, %v4970_v5  ;;  %v4973_v51 = vadd.f32 %v5838_v27, %v8600_v25  ;;  %v4964_v43 = vpop.f32.mrb[75].mxu1 }
 0x4a4   : > { %v5943_v9 = vpop.eup %5942  ;;  %5960 = vrcp.f32 %v5128_v4  ;;  %v5129_v10 = vadd.f32 1.0, %v5941_v63  ;;  %v5558_v17 = vmul.f32 -1.442695, %v4962_v35  ;;  %v4965_v42 = vadd.f32 %v8600_v25, %v4964_v43 }
 0x4a5   : > { %v5945_v29 = vpop.eup %5944  ;;  %5223 = vst.msk [vmem:[%s8619_s16 + $0x30] sm:$0xff] %vm5216_vm15, %v5943_v9  ;;  %5962 = vrcp.f32 %v5131_v15  ;;  %v5561_v55 = vmul.f32 -1.442695, %v4973_v51 }
 0x4a6   : > { %v5947_v60 = vpop.eup %5946  ;;  %5221 = vst.msk [vmem:[%s8619_s16 + $0x20] sm:$0xff] %vm5216_vm15, %v5945_v29  ;;  %5964 = vrcp.f32 %v5129_v10  ;;  %v5559_v12 = vmul.f32 -1.442695, %v4965_v42 }
 0x4a7   : > { %v5949_v8 = vpop.eup %5948  ;;  %5224 = vst.msk [vmem:[%s8619_s16 + $0x38] sm:$0xff] %vm5216_vm15, %v5947_v60  ;;  %5966 = vpow2.f32 %v5560_v62 }
 0x4a8   : > { %v5951_v30 = vpop.eup %5950  ;;  %5222 = vst.msk [vmem:[%s8619_s16 + $0x28] sm:$0xff] %vm5216_vm15, %v5949_v8  ;;  %5968 = vpow2.f32 %v5558_v17  ;;  %v5841_v40 = vpop.f32.mrb[76].mxu1 }
 0x4a9   : > { %v5953_v16 = vpop.eup %5952  ;;  %v5134_v1 = vadd.f32 1.0, %v5951_v30  ;;  %5970 = vpow2.f32 %v5561_v55  ;;  %v4986_v45 = vadd.f32 %v5841_v40, %v8600_v25  ;;  %v4977_v49 = vpop.f32.mrb[77].mxu1 }
 0x4aa   : > { %v5955_v18 = vpop.eup %5954  ;;  %v5132_v28 = vadd.f32 1.0, %v5953_v16  ;;  %5972 = vpow2.f32 %v5559_v12  ;;  %v4978_v52 = vadd.f32 %v8600_v25, %v4977_v49  ;;  %v5842_v14 = vpop.f32.mrb[78].mxu1 }
 0x4ab   : > { %v5957_v59 = vpop.eup %5956  ;;  %5974 = vrcp.f32 %v5134_v1  ;;  %v5135_v54 = vadd.f32 1.0, %v5955_v18  ;;  %v5564_v22 = vmul.f32 -1.442695, %v4986_v45  ;;  %v4989_v19 = vadd.f32 %v5842_v14, %v8600_v25  ;;  %v4980_v61 = vpop.f32.mrb[79].mxu1 }
 0x4ac   : > { %5976 = vrcp.f32 %v5132_v28  ;;  %v5133_v24 = vadd.f32 1.0, %v5957_v59  ;;  %v5562_v6 = vmul.f32 -1.442695, %v4978_v52  ;;  %v4981_v44 = vadd.f32 %v8600_v25, %v4980_v61 }
 0x4ad   : > { %v5959_v48 = vpop.eup %5958  ;;  %5978 = vrcp.f32 %v5135_v54  ;;  %v5565_v26 = vmul.f32 -1.442695, %v4989_v19 }
 0x4ae   : > { %v5961_v32 = vpop.eup %5960  ;;  %5227 = vst.msk [vmem:[%s8619_s16 + $0x50] sm:$0xff] %vm5216_vm15, %v5959_v48  ;;  %5980 = vrcp.f32 %v5133_v24  ;;  %v5563_v7 = vmul.f32 -1.442695, %v4981_v44 }
 0x4af   : > { %v5963_v13 = vpop.eup %5962  ;;  %5225 = vst.msk [vmem:[%s8619_s16 + $0x40] sm:$0xff] %vm5216_vm15, %v5961_v32  ;;  %5982 = vpow2.f32 %v5564_v22 }
 0x4b0   : > { %v5965_v0 = vpop.eup %5964  ;;  %5228 = vst.msk [vmem:[%s8619_s16 + $0x58] sm:$0xff] %vm5216_vm15, %v5963_v13  ;;  %5984 = vpow2.f32 %v5562_v6  ;;  %v5845_v37 = vpop.f32.mrb[80].mxu1 }
 0x4b1   : > { %v5967_v3 = vpop.eup %5966  ;;  %5226 = vst.msk [vmem:[%s8619_s16 + $0x48] sm:$0xff] %vm5216_vm15, %v5965_v0  ;;  %5986 = vpow2.f32 %v5565_v26  ;;  %v5002_v58 = vadd.f32 %v5845_v37, %v8600_v25  ;;  %v4993_v53 = vpop.f32.mrb[81].mxu1 }
 0x4b2   : > { %v5969_v11 = vpop.eup %5968  ;;  %v5138_v41 = vadd.f32 1.0, %v5967_v3  ;;  %5988 = vpow2.f32 %v5563_v7  ;;  %v4994_v23 = vadd.f32 %v8600_v25, %v4993_v53  ;;  %v5846_v47 = vpop.f32.mrb[82].mxu1 }
 0x4b3   : > { %v5971_v56 = vpop.eup %5970  ;;  %v5136_v57 = vadd.f32 1.0, %v5969_v11  ;;  %v5005_v46 = vadd.f32 %v5846_v47, %v8600_v25  ;;  %v4996_v31 = vpop.f32.mrb[83].mxu1  ;;  %v5568_v21 = vmul.f32 -1.442695, %v5002_v58 }
 0x4b4   : > { %v5973_v36 = vpop.eup %5972  ;;  %5990 = vrcp.f32 %v5138_v41  ;;  %v5139_v2 = vadd.f32 1.0, %v5971_v56  ;;  %v4997_v50 = vadd.f32 %v8600_v25, %v4996_v31  ;;  %v5566_v20 = vmul.f32 -1.442695, %v4994_v23 }
 0x4b5   : > { %v5975_v38 = vpop.eup %5974  ;;  %5992 = vrcp.f32 %v5136_v57  ;;  %v5137_v39 = vadd.f32 1.0, %v5973_v36  ;;  %v5569_v34 = vmul.f32 -1.442695, %v5005_v46 }
 0x4b6   : > { %v5977_v5 = vpop.eup %5976  ;;  %5231 = vst.msk [vmem:[%s8619_s16 + $0x70] sm:$0xff] %vm5216_vm15, %v5975_v38  ;;  %5994 = vrcp.f32 %v5139_v2  ;;  %v5567_v4 = vmul.f32 -1.442695, %v4997_v50 }
 0x4b7   : > { %v5979_v33 = vpop.eup %5978  ;;  %5229 = vst.msk [vmem:[%s8619_s16 + $0x60] sm:$0xff] %vm5216_vm15, %v5977_v5  ;;  %5996 = vrcp.f32 %v5137_v39 }
 0x4b8   : > { %v5981_v35 = vpop.eup %5980  ;;  %5232 = vst.msk [vmem:[%s8619_s16 + $0x78] sm:$0xff] %vm5216_vm15, %v5979_v33  ;;  %5998 = vpow2.f32 %v5568_v21  ;;  %v5849_v27 = vpop.f32.mrb[84].mxu1 }
 0x4b9   : > { %v5983_v63 = vpop.eup %5982  ;;  %5230 = vst.msk [vmem:[%s8619_s16 + $0x68] sm:$0xff] %vm5216_vm15, %v5981_v35  ;;  %6000 = vpow2.f32 %v5566_v20  ;;  %v5018_v15 = vadd.f32 %v5849_v27, %v8600_v25  ;;  %v5009_v62 = vpop.f32.mrb[85].mxu1 }
 0x4ba   : > { %v5985_v51 = vpop.eup %5984  ;;  %v5142_v43 = vadd.f32 1.0, %v5983_v63  ;;  %6002 = vpow2.f32 %v5569_v34  ;;  %v5010_v9 = vadd.f32 %v8600_v25, %v5009_v62  ;;  %v5850_v10 = vpop.f32.mrb[86].mxu1 }
 0x4bb   : > { %v5987_v17 = vpop.eup %5986  ;;  %v5140_v42 = vadd.f32 1.0, %v5985_v51  ;;  %6004 = vpow2.f32 %v5567_v4  ;;  %v5021_v29 = vadd.f32 %v5850_v10, %v8600_v25  ;;  %v5012_v55 = vpop.f32.mrb[87].mxu1  ;;  %v5572_v8 = vmul.f32 -1.442695, %v5018_v15 }
 0x4bc   : > { %v5989_v60 = vpop.eup %5988  ;;  %6006 = vrcp.f32 %v5142_v43  ;;  %v5143_v12 = vadd.f32 1.0, %v5987_v17  ;;  %v5013_v30 = vadd.f32 %v8600_v25, %v5012_v55  ;;  %v5570_v16 = vmul.f32 -1.442695, %v5010_v9 }
 0x4bd   : > { %6008 = vrcp.f32 %v5140_v42  ;;  %v5141_v40 = vadd.f32 1.0, %v5989_v60  ;;  %v5573_v45 = vmul.f32 -1.442695, %v5021_v29 }
 0x4be   : > { %v5991_v1 = vpop.eup %5990  ;;  %6010 = vrcp.f32 %v5143_v12  ;;  %v5571_v18 = vmul.f32 -1.442695, %v5013_v30 }
 0x4bf   : > { %v5993_v49 = vpop.eup %5992  ;;  %5235 = vst.msk [vmem:[%s8619_s16 + $0x90] sm:$0xff] %vm5216_vm15, %v5991_v1  ;;  %6012 = vrcp.f32 %v5141_v40 }
 0x4c0   : > { %v5995_v28 = vpop.eup %5994  ;;  %5233 = vst.msk [vmem:[%s8619_s16 + $0x80] sm:$0xff] %vm5216_vm15, %v5993_v49  ;;  %6014 = vpow2.f32 %v5572_v8 }
 0x4c1   : > { %v5997_v52 = vpop.eup %5996  ;;  %5236 = vst.msk [vmem:[%s8619_s16 + $0x98] sm:$0xff] %vm5216_vm15, %v5995_v28  ;;  %6016 = vpow2.f32 %v5570_v16 }
 0x4c2   : > { %v5999_v25 = vpop.eup %5998  ;;  %5234 = vst.msk [vmem:[%s8619_s16 + $0x88] sm:$0xff] %vm5216_vm15, %v5997_v52  ;;  %6018 = vpow2.f32 %v5573_v45 }
 0x4c3   : > { %v6001_v14 = vpop.eup %6000  ;;  %v5146_v59 = vadd.f32 1.0, %v5999_v25  ;;  %6020 = vpow2.f32 %v5571_v18 }
 0x4c4   : > { %v6003_v54 = vpop.eup %6002  ;;  %v5144_v22 = vadd.f32 1.0, %v6001_v14 }
 0x4c5   : > { %v6005_v19 = vpop.eup %6004  ;;  %6022 = vrcp.f32 %v5146_v59  ;;  %v5147_v61 = vadd.f32 1.0, %v6003_v54 }
 0x4c6   : > { %v6007_v24 = vpop.eup %6006  ;;  %6024 = vrcp.f32 %v5144_v22  ;;  %v5145_v6 = vadd.f32 1.0, %v6005_v19 }
 0x4c7   : > { %v6009_v44 = vpop.eup %6008  ;;  %5239 = vst.msk [vmem:[%s8619_s16 + $0xb0] sm:$0xff] %vm5216_vm15, %v6007_v24  ;;  %6026 = vrcp.f32 %v5147_v61 }
 0x4c8   : > { %v6011_v48 = vpop.eup %6010  ;;  %5237 = vst.msk [vmem:[%s8619_s16 + $0xa0] sm:$0xff] %vm5216_vm15, %v6009_v44  ;;  %6028 = vrcp.f32 %v5145_v6 }
 0x4c9   : > { %v6013_v26 = vpop.eup %6012  ;;  %5240 = vst.msk [vmem:[%s8619_s16 + $0xb8] sm:$0xff] %vm5216_vm15, %v6011_v48 }
 0x4ca   : > { %v6015_v32 = vpop.eup %6014  ;;  %5238 = vst.msk [vmem:[%s8619_s16 + $0xa8] sm:$0xff] %vm5216_vm15, %v6013_v26 }
 0x4cb   : > { %v6017_v7 = vpop.eup %6016  ;;  %v5150_v13 = vadd.f32 1.0, %v6015_v32 }
 0x4cc   : > { %v6019_v0 = vpop.eup %6018  ;;  %v5148_v37 = vadd.f32 1.0, %v6017_v7 }
 0x4cd   : > { %v6021_v3 = vpop.eup %6020  ;;  %6030 = vrcp.f32 %v5150_v13  ;;  %v5151_v58 = vadd.f32 1.0, %v6019_v0 }
 0x4ce   : > { %6032 = vrcp.f32 %v5148_v37  ;;  %v5149_v53 = vadd.f32 1.0, %v6021_v3 }
 0x4cf   : > { %v6023_v11 = vpop.eup %6022  ;;  %6034 = vrcp.f32 %v5151_v58 }
 0x4d0   : > { %v6025_v41 = vpop.eup %6024  ;;  %5243 = vst.msk [vmem:[%s8619_s16 + $0xd0] sm:$0xff] %vm5216_vm15, %v6023_v11  ;;  %6036 = vrcp.f32 %v5149_v53 }
 0x4d1   : > { %v6027_v23 = vpop.eup %6026  ;;  %5241 = vst.msk [vmem:[%s8619_s16 + $0xc0] sm:$0xff] %vm5216_vm15, %v6025_v41 }
 0x4d2   : > { %v6029_v47 = vpop.eup %6028  ;;  %5244 = vst.msk [vmem:[%s8619_s16 + $0xd8] sm:$0xff] %vm5216_vm15, %v6027_v23 }
 0x4d3   : > { %5242 = vst.msk [vmem:[%s8619_s16 + $0xc8] sm:$0xff] %vm5216_vm15, %v6029_v47 }
 0x4d7   : > { %v6031_v56 = vpop.eup %6030 }
 0x4d8   : > { %v6033_v57 = vpop.eup %6032  ;;  %5247 = vst.msk [vmem:[%s8619_s16 + $0xf0] sm:$0xff] %vm5216_vm15, %v6031_v56 }
 0x4d9   : > { %v6035_v46 = vpop.eup %6034  ;;  %5245 = vst.msk [vmem:[%s8619_s16 + $0xe0] sm:$0xff] %vm5216_vm15, %v6033_v57 }
 0x4da   : > { %v6037_v31 = vpop.eup %6036  ;;  %5248 = vst.msk [vmem:[%s8619_s16 + $0xf8] sm:$0xff] %vm5216_vm15, %v6035_v46 }
 0x4db   : > { %5246 = vst.msk [vmem:[%s8619_s16 + $0xe8] sm:$0xff] %vm5216_vm15, %v6037_v31 }
 0x4dc PF: > { %s17_s26 = sadd.s32 1, %s6087_s26   ;;  %s9132_s24 = smov %s6083_s25 }
 0x4dd   : > { %p14_p5 = scmp.ge.s32.totalorder %s17_s26, 4   ;;  %s9133_s25 = smov %s9135_s27 }
 0x4df   :  { %16 = sbr.rel (!%p14_p5) target bundleno = 2 (0x2), region = 78 }

</bundles_post_ra>
